<compile_context>
chip_gen: v7x
topology: tpu7x:2x2x1
jax: 0.10.0
libtpu: 0.0.40
codegen_flags: <defaults>
</compile_context>

<pallas_src>
import jax
import jax.numpy as jnp
from jax import lax
from jax.experimental import pallas as pl
from jax.experimental.pallas import tpu as pltpu


# ----------------------------------------------------------------------------
# Generation-aware VMEM limit
# ----------------------------------------------------------------------------
def _vmem_limit_bytes():
    cap = None
    try:
        info = pltpu.get_tpu_info()
        cap = getattr(info, "vmem_capacity_bytes", None)
    except Exception:
        cap = None
    if not cap:
        cap = 64 * 1024 * 1024          # conservative fallback (v7x-sized)
    # leave ~25% headroom for the double-buffered pipeline blocks, cap at 96MiB
    return int(min(cap * 3 // 4, 96 * 1024 * 1024))


# ----------------------------------------------------------------------------
# In-kernel helpers (traced)
# ----------------------------------------------------------------------------
def _zero_halo_border(pad_ref):
    """Zero only the 1-pixel border strips of the halo-padded scratch."""
    Hp, Wp, C = pad_ref.shape
    z_row = jnp.zeros((1, Wp, C), pad_ref.dtype)
    z_col = jnp.zeros((Hp, 1, C), pad_ref.dtype)
    pad_ref[0:1, :, :] = z_row
    pad_ref[Hp - 1:Hp, :, :] = z_row
    pad_ref[:, 0:1, :] = z_col
    pad_ref[:, Wp - 1:Wp, :] = z_col


def _conv3x3_from_halo(pad_ref, w_ref, b_ref):
    """3x3 'valid' conv over the halo-padded bf16 tile as 9 accumulated MXU
    matmuls (K = C per push, f32 accumulation).  No im2col materialization."""
    Hp, Wp, C = pad_ref.shape
    Hout, Wout = Hp - 2, Wp - 2
    M = Hout * Wout
    Cout = w_ref.shape[-1]
    acc = jnp.zeros((M, Cout), jnp.float32)
    for kh in range(3):
        for kw in range(3):
            t = kh * 3 + kw
            patch = pad_ref[kh:kh + Hout, kw:kw + Wout, :].reshape(M, C)
            acc = acc + jnp.dot(patch, w_ref[t * C:(t + 1) * C, :],
                                preferred_element_type=jnp.float32)
    return acc + b_ref[...]


# ----------------------------------------------------------------------------
# Kernel A: conv0 (space-to-depth 2x2 valid) + conv1 (3x3, pad=1) + BN1 stats
# ----------------------------------------------------------------------------
def _conv0_conv1_kernel(xs_ref, w0_ref, b0_ref, w1_ref, b1_ref,
                        y1_ref, sum_ref, ssq_ref, pad_ref):
    Hout, Wout, Cout = y1_ref.shape
    C0 = xs_ref.shape[-1]
    M = Hout * Wout

    _zero_halo_border(pad_ref)

    # --- conv0: stride-2 conv as a 2x2 valid conv over space-to-depth
    #     channels, 4 accumulated MXU matmuls straight from the input tile ---
    acc = jnp.zeros((M, Cout), jnp.float32)
    for dh in range(2):
        for dw in range(2):
            t = dh * 2 + dw
            patch = xs_ref[dh:dh + Hout, dw:dw + Wout, :].reshape(M, C0)
            acc = acc + jnp.dot(patch, w0_ref[t * C0:(t + 1) * C0, :],
                                preferred_element_type=jnp.float32)
    acc = acc + b0_ref[...]

    # y0 never leaves VMEM: write it (bf16) into the interior of conv1's halo
    pad_ref[1:1 + Hout, 1:1 + Wout, :] = (
        acc.reshape(Hout, Wout, Cout).astype(pad_ref.dtype))

    # --- conv1: 3x3 pad=1, 9 accumulated MXU matmuls from the padded scratch
    acc = _conv3x3_from_halo(pad_ref, w1_ref, b1_ref)

    y1_ref[...] = acc.reshape(Hout, Wout, Cout).astype(y1_ref.dtype)
    # per-batch partial BatchNorm stats (f32), reduced over N in the wrapper
    sum_ref[...] = jnp.sum(acc, axis=0, keepdims=True)
    ssq_ref[...] = jnp.sum(acc * acc, axis=0, keepdims=True)


def _fused_conv0_conv1(xs2d, w0f, b0, w1f, b1):
    N, H0p, W0p, C0 = xs2d.shape
    Hout, Wout = H0p - 1, W0p - 1
    Cout = w0f.shape[-1]

    out_shape = (jax.ShapeDtypeStruct((N, Hout, Wout, Cout), jnp.bfloat16),
                 jax.ShapeDtypeStruct((N, 1, Cout), jnp.float32),
                 jax.ShapeDtypeStruct((N, 1, Cout), jnp.float32))

    return pl.pallas_call(
        _conv0_conv1_kernel,
        out_shape=out_shape,
        grid=(N,),
        in_specs=[
            pl.BlockSpec((None, H0p, W0p, C0), lambda n: (n, 0, 0, 0)),
            pl.BlockSpec(w0f.shape, lambda n: (0, 0)),
            pl.BlockSpec((1, Cout), lambda n: (0, 0)),
            pl.BlockSpec(w1f.shape, lambda n: (0, 0)),
            pl.BlockSpec((1, Cout), lambda n: (0, 0)),
        ],
        out_specs=(
            pl.BlockSpec((None, Hout, Wout, Cout), lambda n: (n, 0, 0, 0)),
            pl.BlockSpec((None, 1, Cout), lambda n: (n, 0, 0)),
            pl.BlockSpec((None, 1, Cout), lambda n: (n, 0, 0)),
        ),
        scratch_shapes=[pltpu.VMEM((Hout + 2, Wout + 2, Cout), jnp.bfloat16)],
        compiler_params=pltpu.CompilerParams(
            dimension_semantics=("parallel",),
            vmem_limit_bytes=_vmem_limit_bytes()),
    )(xs2d, w0f, b0, w1f, b1)


# ----------------------------------------------------------------------------
# Kernel B: BN1 affine + ReLU (fused on input) + conv2 (3x3, pad=1) + BN2 stats
# ----------------------------------------------------------------------------
def _bnrelu_conv2_kernel(x_ref, scale_ref, shift_ref, w_ref, b_ref,
                         y_ref, sum_ref, ssq_ref, pad_ref):
    Hout, Wout, Cout = y_ref.shape

    _zero_halo_border(pad_ref)

    # fused BN1 affine + ReLU on the producer's raw conv output, written
    # straight into the halo-padded scratch (bf16)
    x = x_ref[...].astype(jnp.float32)
    a = jnp.maximum(x * scale_ref[...].reshape(1, 1, Cout)
                    + shift_ref[...].reshape(1, 1, Cout), 0.0)
    pad_ref[1:1 + Hout, 1:1 + Wout, :] = a.astype(pad_ref.dtype)

    acc = _conv3x3_from_halo(pad_ref, w_ref, b_ref)

    y_ref[...] = acc.reshape(Hout, Wout, Cout).astype(y_ref.dtype)
    sum_ref[...] = jnp.sum(acc, axis=0, keepdims=True)
    ssq_ref[...] = jnp.sum(acc * acc, axis=0, keepdims=True)


def _fused_bnrelu_conv2(y1, scale, shift, w2f, b2):
    N, Hout, Wout, Cout = y1.shape

    out_shape = (jax.ShapeDtypeStruct((N, Hout, Wout, Cout), jnp.bfloat16),
                 jax.ShapeDtypeStruct((N, 1, Cout), jnp.float32),
                 jax.ShapeDtypeStruct((N, 1, Cout), jnp.float32))

    return pl.pallas_call(
        _bnrelu_conv2_kernel,
        out_shape=out_shape,
        grid=(N,),
        in_specs=[
            pl.BlockSpec((None, Hout, Wout, Cout), lambda n: (n, 0, 0, 0)),
            pl.BlockSpec((1, Cout), lambda n: (0, 0)),
            pl.BlockSpec((1, Cout), lambda n: (0, 0)),
            pl.BlockSpec(w2f.shape, lambda n: (0, 0)),
            pl.BlockSpec((1, Cout), lambda n: (0, 0)),
        ],
        out_specs=(
            pl.BlockSpec((None, Hout, Wout, Cout), lambda n: (n, 0, 0, 0)),
            pl.BlockSpec((None, 1, Cout), lambda n: (n, 0, 0)),
            pl.BlockSpec((None, 1, Cout), lambda n: (n, 0, 0)),
        ),
        scratch_shapes=[pltpu.VMEM((Hout + 2, Wout + 2, Cout), jnp.bfloat16)],
        compiler_params=pltpu.CompilerParams(
            dimension_semantics=("parallel",),
            vmem_limit_bytes=_vmem_limit_bytes()),
    )(y1, scale, shift, w2f, b2)


# ----------------------------------------------------------------------------
# BatchNorm affine from per-batch partial stats (training-mode, biased var)
# ----------------------------------------------------------------------------
def _bn_affine(s, q, gamma, beta, count, eps=1e-5):
    s = jnp.sum(s, axis=0)                                  # (1, C)
    q = jnp.sum(q, axis=0)                                  # (1, C)
    mean = s / count
    var = jnp.maximum(q / count - mean * mean, 0.0)
    scale = gamma.reshape(1, -1) / jnp.sqrt(var + eps)
    shift = beta.reshape(1, -1) - mean * scale
    return scale, shift


# ----------------------------------------------------------------------------
# Module forward
# ----------------------------------------------------------------------------
def down_forward(x_nchw, p, eps=1e-5):
    """Forward of `down`.  x_nchw: (N, in_ch, H, W) -> (N, out_ch, ~H/2, ~W/2)."""
    # NCHW -> NHWC, activations carried in bf16 (halves HBM traffic); all
    # matmul accumulation / BN statistics stay f32 inside the kernels.
    x = jnp.transpose(x_nchw, (0, 2, 3, 1)).astype(jnp.bfloat16)
    N, H, W, Cin = x.shape
    Cout = p["b0"].shape[-1]

    # --- space-to-depth rearrange for the stride-2 first conv (k=3,s=2,p=1) --
    Hout0 = (H - 1) // 2 + 1
    Wout0 = (W - 1) // 2 + 1
    Hp, Wp = 2 * (Hout0 + 1), 2 * (Wout0 + 1)
    xp = jnp.pad(x, ((0, 0), (1, Hp - H - 1), (1, Wp - W - 1), (0, 0)))
    xs = xp.reshape(N, Hout0 + 1, 2, Wout0 + 1, 2, Cin)
    xs = jnp.transpose(xs, (0, 1, 3, 2, 4, 5))
    xs2d = xs.reshape(N, Hout0 + 1, Wout0 + 1, 4 * Cin)

    cnt = N * Hout0 * Wout0

    # --- fused conv0 + conv1 (+ per-batch BN1 partial stats); y0 stays in VMEM
    y1, s1, q1 = _fused_conv0_conv1(xs2d, p["w0f"], p["b0"], p["w1f"], p["b1"])
    scale1, shift1 = _bn_affine(s1, q1, p["g1"], p["be1"], cnt, eps)

    # --- conv2 with BN1 + ReLU fused onto its input (+ per-batch BN2 stats) --
    y2, s2, q2 = _fused_bnrelu_conv2(y1, scale1, shift1, p["w2f"], p["b2"])
    scale2, shift2 = _bn_affine(s2, q2, p["g2"], p["be2"], cnt, eps)

    # --- final BN2 + ReLU, fused by XLA into the NHWC->NCHW output transpose -
    z = jnp.maximum(y2.astype(jnp.float32) * scale2.reshape(1, 1, 1, Cout)
                    + shift2.reshape(1, 1, 1, Cout), 0.0)
    return jnp.transpose(z, (0, 3, 1, 2))


# ----------------------------------------------------------------------------
# Parameters
# ----------------------------------------------------------------------------
def init_params(key, in_ch, out_ch):
    """PyTorch-style init (uniform +-1/sqrt(fan_in)); raw HWIO weights."""
    def conv_init(k, cin, cout):
        kw_key, kb_key = jax.random.split(k)
        bound = 1.0 / (cin * 9) ** 0.5
        w = jax.random.uniform(kw_key, (3, 3, cin, cout), jnp.float32,
                               -bound, bound)
        b = jax.random.uniform(kb_key, (cout,), jnp.float32, -bound, bound)
        return w, b

    k0, k1, k2 = jax.random.split(key, 3)
    w0, b0 = conv_init(k0, in_ch, out_ch)
    w1, b1 = conv_init(k1, out_ch, out_ch)
    w2, b2 = conv_init(k2, out_ch, out_ch)
    ones = jnp.ones((out_ch,), jnp.float32)
    zeros = jnp.zeros((out_ch,), jnp.float32)
    return dict(w0=w0, b0=b0, w1=w1, b1=b1, g1=ones, be1=zeros,
                w2=w2, b2=b2, g2=ones, be2=zeros)


def _fold_stride2_weight(w):
    """(3,3,Cin,Cout) stride-2 kernel -> (2*2*4*Cin, Cout) for the
    space-to-depth formulation (2x2 valid conv over 4*Cin channels).
    Only valid for k=3, stride=2, pad=1 (as in the module)."""
    _, _, cin, cout = w.shape
    wf = jnp.zeros((2, 2, 2, 2, cin, cout), w.dtype)   # [dh, dw, a, b, ci, co]
    for dh in range(2):
        for a in range(2):
            kh = 2 * dh + a
            if kh > 2:
                continue
            for dw in range(2):
                for b in range(2):
                    kw = 2 * dw + b
                    if kw > 2:
                        continue
                    wf = wf.at[dh, dw, a, b].set(w[kh, kw])
    return wf.reshape(2 * 2 * 2 * 2 * cin, cout)


def prepare_params(raw):
    """Fold / reshape / cast parameters into the kernel-facing layout."""
    cout = raw["b0"].shape[0]
    return dict(
        w0f=_fold_stride2_weight(raw["w0"]).astype(jnp.bfloat16),
        w1f=raw["w1"].reshape(-1, cout).astype(jnp.bfloat16),
        w2f=raw["w2"].reshape(-1, cout).astype(jnp.bfloat16),
        b0=raw["b0"].reshape(1, cout),
        b1=raw["b1"].reshape(1, cout),
        b2=raw["b2"].reshape(1, cout),
        g1=raw["g1"], be1=raw["be1"],
        g2=raw["g2"], be2=raw["be2"],
    )


# ----------------------------------------------------------------------------
# Pure-XLA f32 reference for a loose self-check
# ----------------------------------------------------------------------------
def _ref_forward(x_nchw, raw, eps=1e-5):
    def conv(x, w_hwio, b, stride):
        w_oihw = jnp.transpose(w_hwio, (3, 2, 0, 1))
        y = lax.conv_general_dilated(
            x, w_oihw, (stride, stride), ((1, 1), (1, 1)),
            dimension_numbers=("NCHW", "OIHW", "NCHW"),
            precision=lax.Precision.HIGHEST)
        return y + b.reshape(1, -1, 1, 1)

    def bn_relu(y, gamma, beta):
        mean = jnp.mean(y, axis=(0, 2, 3), keepdims=True)
        var = jnp.mean((y - mean) ** 2, axis=(0, 2, 3), keepdims=True)
        z = ((y - mean) / jnp.sqrt(var + eps) * gamma.reshape(1, -1, 1, 1)
             + beta.reshape(1, -1, 1, 1))
        return jnp.maximum(z, 0.0)

    y0 = conv(x_nchw, raw["w0"], raw["b0"], 2)
    y1 = conv(y0, raw["w1"], raw["b1"], 1)
    z1 = bn_relu(y1, raw["g1"], raw["be1"])
    y2 = conv(z1, raw["w2"], raw["b2"], 1)
    return bn_relu(y2, raw["g2"], raw["be2"])


if __name__ == "__main__":
    key = jax.random.PRNGKey(0)
    pkey, xkey = jax.random.split(key)

    N, in_ch, out_ch, H, W = 2, 4, 8, 16, 16
    raw = init_params(pkey, in_ch, out_ch)
    params = prepare_params(raw)
    x = jax.random.normal(xkey, (N, in_ch, H, W), jnp.float32)

    fwd = jax.jit(down_forward)
    out = jax.block_until_ready(fwd(x, params))

    assert out.shape == (N, out_ch, H // 2, W // 2), out.shape
    assert bool(jnp.all(jnp.isfinite(out)))
    assert bool(jnp.all(out >= 0.0))          # module ends in ReLU

    # Loose numerical self-check vs. f32 XLA reference (bf16 activations +
    # bf16 MXU tolerance; training-mode BatchNorm semantics).
    ref = _ref_forward(x, raw)
    err = float(jnp.max(jnp.abs(out - ref)))
    assert err < 2e-1, err

    print("KERNEL_OK")
</pallas_src>

<mosaic_0001>
module attributes {stable_mosaic.version = 11 : i64} {
  func.func @_bnrelu_conv2_kernel(%arg0: i32, %arg1: memref<1x8x8x8xbf16, #tpu.memory_space<vmem>>, %arg2: memref<1x8xf32, #tpu.memory_space<vmem>>, %arg3: memref<1x8xf32, #tpu.memory_space<vmem>>, %arg4: memref<72x8xbf16, #tpu.memory_space<vmem>>, %arg5: memref<1x8xf32, #tpu.memory_space<vmem>>, %arg6: memref<1x8x8x8xbf16, #tpu.memory_space<vmem>>, %arg7: memref<1x1x8xf32, #tpu.memory_space<vmem>>, %arg8: memref<1x1x8xf32, #tpu.memory_space<vmem>>, %arg9: memref<10x10x8xbf16, #tpu.memory_space<vmem>>) attributes {dimension_semantics = [#tpu.dimension_semantics<parallel>], iteration_bounds = array<i64: 2>, scalar_prefetch = 0 : i64, scratch_operands = 1 : i64, tpu.core_type = #tpu.core_type<tc>, window_params = [{transform_indices = @transform_0, window_bounds = array<i64: 1, 8, 8, 8>}, {pipeline_mode = #tpu.pipeline_mode<synchronous>, transform_indices = @transform_1, window_bounds = array<i64: 1, 8>}, {pipeline_mode = #tpu.pipeline_mode<synchronous>, transform_indices = @transform_2, window_bounds = array<i64: 1, 8>}, {pipeline_mode = #tpu.pipeline_mode<synchronous>, transform_indices = @transform_3, window_bounds = array<i64: 72, 8>}, {pipeline_mode = #tpu.pipeline_mode<synchronous>, transform_indices = @transform_4, window_bounds = array<i64: 1, 8>}, {transform_indices = @transform_5, window_bounds = array<i64: 1, 8, 8, 8>}, {transform_indices = @transform_6, window_bounds = array<i64: 1, 1, 8>}, {transform_indices = @transform_7, window_bounds = array<i64: 1, 1, 8>}]} {
    %cst = arith.constant 0.000000e+00 : bf16
    %0 = vector.broadcast %cst : bf16 to vector<1x10x8xbf16>
    %cst_0 = arith.constant 0.000000e+00 : bf16
    %1 = vector.broadcast %cst_0 : bf16 to vector<10x1x8xbf16>
    %c0 = arith.constant 0 : index
    %c0_1 = arith.constant 0 : index
    %c0_2 = arith.constant 0 : index
    %2 = vector.load %arg9[%c0, %c0_1, %c0_2] : memref<10x10x8xbf16, #tpu.memory_space<vmem>>, vector<1x10x8xbf16>
    tpu.vector_store %arg9[%c0, %c0_1, %c0_2], %0 {strides = array<i32>} : memref<10x10x8xbf16, #tpu.memory_space<vmem>>, vector<1x10x8xbf16>,
    %c9 = arith.constant 9 : index
    %c0_3 = arith.constant 0 : index
    %c0_4 = arith.constant 0 : index
    %3 = vector.load %arg9[%c9, %c0_3, %c0_4] : memref<10x10x8xbf16, #tpu.memory_space<vmem>>, vector<1x10x8xbf16>
    tpu.vector_store %arg9[%c9, %c0_3, %c0_4], %0 {strides = array<i32>} : memref<10x10x8xbf16, #tpu.memory_space<vmem>>, vector<1x10x8xbf16>,
    %c0_5 = arith.constant 0 : index
    %c0_6 = arith.constant 0 : index
    %c0_7 = arith.constant 0 : index
    %4 = vector.load %arg9[%c0_5, %c0_6, %c0_7] : memref<10x10x8xbf16, #tpu.memory_space<vmem>>, vector<10x1x8xbf16>
    tpu.vector_store %arg9[%c0_5, %c0_6, %c0_7], %1 {strides = array<i32>} : memref<10x10x8xbf16, #tpu.memory_space<vmem>>, vector<10x1x8xbf16>,
    %c0_8 = arith.constant 0 : index
    %c9_9 = arith.constant 9 : index
    %c0_10 = arith.constant 0 : index
    %5 = vector.load %arg9[%c0_8, %c9_9, %c0_10] : memref<10x10x8xbf16, #tpu.memory_space<vmem>>, vector<10x1x8xbf16>
    tpu.vector_store %arg9[%c0_8, %c9_9, %c0_10], %1 {strides = array<i32>} : memref<10x10x8xbf16, #tpu.memory_space<vmem>>, vector<10x1x8xbf16>,
    %c0_11 = arith.constant 0 : index
    %c0_12 = arith.constant 0 : index
    %c0_13 = arith.constant 0 : index
    %c0_14 = arith.constant 0 : index
    %6 = vector.load %arg1[%c0_11, %c0_12, %c0_13, %c0_14] : memref<1x8x8x8xbf16, #tpu.memory_space<vmem>>, vector<1x8x8x8xbf16>
    %7 = vector.shape_cast %6 : vector<1x8x8x8xbf16> to vector<8x8x8xbf16>
    %8 = arith.extf %7 : vector<8x8x8xbf16> to vector<8x8x8xf32>
    %c0_15 = arith.constant 0 : index
    %c0_16 = arith.constant 0 : index
    %9 = vector.load %arg2[%c0_15, %c0_16] : memref<1x8xf32, #tpu.memory_space<vmem>>, vector<1x8xf32>
    %10 = vector.shape_cast %9 : vector<1x8xf32> to vector<1x1x8xf32>
    %11 = vector.broadcast %10 : vector<1x1x8xf32> to vector<8x8x8xf32>
    %12 = arith.mulf %8, %11 : vector<8x8x8xf32>
    %c0_17 = arith.constant 0 : index
    %c0_18 = arith.constant 0 : index
    %13 = vector.load %arg3[%c0_17, %c0_18] : memref<1x8xf32, #tpu.memory_space<vmem>>, vector<1x8xf32>
    %14 = vector.shape_cast %13 : vector<1x8xf32> to vector<1x1x8xf32>
    %15 = vector.broadcast %14 : vector<1x1x8xf32> to vector<8x8x8xf32>
    %16 = arith.addf %12, %15 : vector<8x8x8xf32>
    %cst_19 = arith.constant 0.000000e+00 : f32
    %17 = vector.broadcast %cst_19 : f32 to vector<8x8x8xf32>
    %18 = arith.maximumf %16, %17 : vector<8x8x8xf32>
    %19 = arith.truncf %18 : vector<8x8x8xf32> to vector<8x8x8xbf16>
    %c1 = arith.constant 1 : index
    %c1_20 = arith.constant 1 : index
    %c0_21 = arith.constant 0 : index
    %20 = vector.load %arg9[%c1, %c1_20, %c0_21] : memref<10x10x8xbf16, #tpu.memory_space<vmem>>, vector<8x8x8xbf16>
    tpu.vector_store %arg9[%c1, %c1_20, %c0_21], %19 {strides = array<i32>} : memref<10x10x8xbf16, #tpu.memory_space<vmem>>, vector<8x8x8xbf16>,
    %cst_22 = arith.constant 0.000000e+00 : f32
    %21 = vector.broadcast %cst_22 : f32 to vector<64x8xf32>
    %c0_23 = arith.constant 0 : index
    %c0_24 = arith.constant 0 : index
    %c0_25 = arith.constant 0 : index
    %22 = vector.load %arg9[%c0_23, %c0_24, %c0_25] : memref<10x10x8xbf16, #tpu.memory_space<vmem>>, vector<8x8x8xbf16>
    %23 = vector.shape_cast %22 : vector<8x8x8xbf16> to vector<64x8xbf16>
    %c0_26 = arith.constant 0 : index
    %c0_27 = arith.constant 0 : index
    %24 = vector.load %arg4[%c0_26, %c0_27] : memref<72x8xbf16, #tpu.memory_space<vmem>>, vector<8x8xbf16>
    %cst_28 = arith.constant dense<0.000000e+00> : vector<64x8xf32>
    %25 = tpu.matmul %23, %24, %cst_28 {dimension_numbers = #tpu.dot_dimension_numbers<[1], [0], [0], [1], [0, 0, 1, 1], [], []>} : vector<64x8xbf16>, vector<8x8xbf16>, vector<64x8xf32> -> vector<64x8xf32>
    %26 = arith.addf %21, %25 : vector<64x8xf32>
    %c0_29 = arith.constant 0 : index
    %c1_30 = arith.constant 1 : index
    %c0_31 = arith.constant 0 : index
    %27 = vector.load %arg9[%c0_29, %c1_30, %c0_31] : memref<10x10x8xbf16, #tpu.memory_space<vmem>>, vector<8x8x8xbf16>
    %28 = vector.shape_cast %27 : vector<8x8x8xbf16> to vector<64x8xbf16>
    %c8 = arith.constant 8 : index
    %c0_32 = arith.constant 0 : index
    %29 = vector.load %arg4[%c8, %c0_32] : memref<72x8xbf16, #tpu.memory_space<vmem>>, vector<8x8xbf16>
    %cst_33 = arith.constant dense<0.000000e+00> : vector<64x8xf32>
    %30 = tpu.matmul %28, %29, %cst_33 {dimension_numbers = #tpu.dot_dimension_numbers<[1], [0], [0], [1], [0, 0, 1, 1], [], []>} : vector<64x8xbf16>, vector<8x8xbf16>, vector<64x8xf32> -> vector<64x8xf32>
    %31 = arith.addf %26, %30 : vector<64x8xf32>
    %c0_34 = arith.constant 0 : index
    %c2 = arith.constant 2 : index
    %c0_35 = arith.constant 0 : index
    %32 = vector.load %arg9[%c0_34, %c2, %c0_35] : memref<10x10x8xbf16, #tpu.memory_space<vmem>>, vector<8x8x8xbf16>
    %33 = vector.shape_cast %32 : vector<8x8x8xbf16> to vector<64x8xbf16>
    %c16 = arith.constant 16 : index
    %c0_36 = arith.constant 0 : index
    %34 = vector.load %arg4[%c16, %c0_36] : memref<72x8xbf16, #tpu.memory_space<vmem>>, vector<8x8xbf16>
    %cst_37 = arith.constant dense<0.000000e+00> : vector<64x8xf32>
    %35 = tpu.matmul %33, %34, %cst_37 {dimension_numbers = #tpu.dot_dimension_numbers<[1], [0], [0], [1], [0, 0, 1, 1], [], []>} : vector<64x8xbf16>, vector<8x8xbf16>, vector<64x8xf32> -> vector<64x8xf32>
    %36 = arith.addf %31, %35 : vector<64x8xf32>
    %c1_38 = arith.constant 1 : index
    %c0_39 = arith.constant 0 : index
    %c0_40 = arith.constant 0 : index
    %37 = vector.load %arg9[%c1_38, %c0_39, %c0_40] : memref<10x10x8xbf16, #tpu.memory_space<vmem>>, vector<8x8x8xbf16>
    %38 = vector.shape_cast %37 : vector<8x8x8xbf16> to vector<64x8xbf16>
    %c24 = arith.constant 24 : index
    %c0_41 = arith.constant 0 : index
    %39 = vector.load %arg4[%c24, %c0_41] : memref<72x8xbf16, #tpu.memory_space<vmem>>, vector<8x8xbf16>
    %cst_42 = arith.constant dense<0.000000e+00> : vector<64x8xf32>
    %40 = tpu.matmul %38, %39, %cst_42 {dimension_numbers = #tpu.dot_dimension_numbers<[1], [0], [0], [1], [0, 0, 1, 1], [], []>} : vector<64x8xbf16>, vector<8x8xbf16>, vector<64x8xf32> -> vector<64x8xf32>
    %41 = arith.addf %36, %40 : vector<64x8xf32>
    %c1_43 = arith.constant 1 : index
    %c1_44 = arith.constant 1 : index
    %c0_45 = arith.constant 0 : index
    %42 = vector.load %arg9[%c1_43, %c1_44, %c0_45] : memref<10x10x8xbf16, #tpu.memory_space<vmem>>, vector<8x8x8xbf16>
    %43 = vector.shape_cast %42 : vector<8x8x8xbf16> to vector<64x8xbf16>
    %c32 = arith.constant 32 : index
    %c0_46 = arith.constant 0 : index
    %44 = vector.load %arg4[%c32, %c0_46] : memref<72x8xbf16, #tpu.memory_space<vmem>>, vector<8x8xbf16>
    %cst_47 = arith.constant dense<0.000000e+00> : vector<64x8xf32>
    %45 = tpu.matmul %43, %44, %cst_47 {dimension_numbers = #tpu.dot_dimension_numbers<[1], [0], [0], [1], [0, 0, 1, 1], [], []>} : vector<64x8xbf16>, vector<8x8xbf16>, vector<64x8xf32> -> vector<64x8xf32>
    %46 = arith.addf %41, %45 : vector<64x8xf32>
    %c1_48 = arith.constant 1 : index
    %c2_49 = arith.constant 2 : index
    %c0_50 = arith.constant 0 : index
    %47 = vector.load %arg9[%c1_48, %c2_49, %c0_50] : memref<10x10x8xbf16, #tpu.memory_space<vmem>>, vector<8x8x8xbf16>
    %48 = vector.shape_cast %47 : vector<8x8x8xbf16> to vector<64x8xbf16>
    %c40 = arith.constant 40 : index
    %c0_51 = arith.constant 0 : index
    %49 = vector.load %arg4[%c40, %c0_51] : memref<72x8xbf16, #tpu.memory_space<vmem>>, vector<8x8xbf16>
    %cst_52 = arith.constant dense<0.000000e+00> : vector<64x8xf32>
    %50 = tpu.matmul %48, %49, %cst_52 {dimension_numbers = #tpu.dot_dimension_numbers<[1], [0], [0], [1], [0, 0, 1, 1], [], []>} : vector<64x8xbf16>, vector<8x8xbf16>, vector<64x8xf32> -> vector<64x8xf32>
    %51 = arith.addf %46, %50 : vector<64x8xf32>
    %c2_53 = arith.constant 2 : index
    %c0_54 = arith.constant 0 : index
    %c0_55 = arith.constant 0 : index
    %52 = vector.load %arg9[%c2_53, %c0_54, %c0_55] : memref<10x10x8xbf16, #tpu.memory_space<vmem>>, vector<8x8x8xbf16>
    %53 = vector.shape_cast %52 : vector<8x8x8xbf16> to vector<64x8xbf16>
    %c48 = arith.constant 48 : index
    %c0_56 = arith.constant 0 : index
    %54 = vector.load %arg4[%c48, %c0_56] : memref<72x8xbf16, #tpu.memory_space<vmem>>, vector<8x8xbf16>
    %cst_57 = arith.constant dense<0.000000e+00> : vector<64x8xf32>
    %55 = tpu.matmul %53, %54, %cst_57 {dimension_numbers = #tpu.dot_dimension_numbers<[1], [0], [0], [1], [0, 0, 1, 1], [], []>} : vector<64x8xbf16>, vector<8x8xbf16>, vector<64x8xf32> -> vector<64x8xf32>
    %56 = arith.addf %51, %55 : vector<64x8xf32>
    %c2_58 = arith.constant 2 : index
    %c1_59 = arith.constant 1 : index
    %c0_60 = arith.constant 0 : index
    %57 = vector.load %arg9[%c2_58, %c1_59, %c0_60] : memref<10x10x8xbf16, #tpu.memory_space<vmem>>, vector<8x8x8xbf16>
    %58 = vector.shape_cast %57 : vector<8x8x8xbf16> to vector<64x8xbf16>
    %c56 = arith.constant 56 : index
    %c0_61 = arith.constant 0 : index
    %59 = vector.load %arg4[%c56, %c0_61] : memref<72x8xbf16, #tpu.memory_space<vmem>>, vector<8x8xbf16>
    %cst_62 = arith.constant dense<0.000000e+00> : vector<64x8xf32>
    %60 = tpu.matmul %58, %59, %cst_62 {dimension_numbers = #tpu.dot_dimension_numbers<[1], [0], [0], [1], [0, 0, 1, 1], [], []>} : vector<64x8xbf16>, vector<8x8xbf16>, vector<64x8xf32> -> vector<64x8xf32>
    %61 = arith.addf %56, %60 : vector<64x8xf32>
    %c2_63 = arith.constant 2 : index
    %c2_64 = arith.constant 2 : index
    %c0_65 = arith.constant 0 : index
    %62 = vector.load %arg9[%c2_63, %c2_64, %c0_65] : memref<10x10x8xbf16, #tpu.memory_space<vmem>>, vector<8x8x8xbf16>
    %63 = vector.shape_cast %62 : vector<8x8x8xbf16> to vector<64x8xbf16>
    %c64 = arith.constant 64 : index
    %c0_66 = arith.constant 0 : index
    %64 = vector.load %arg4[%c64, %c0_66] : memref<72x8xbf16, #tpu.memory_space<vmem>>, vector<8x8xbf16>
    %cst_67 = arith.constant dense<0.000000e+00> : vector<64x8xf32>
    %65 = tpu.matmul %63, %64, %cst_67 {dimension_numbers = #tpu.dot_dimension_numbers<[1], [0], [0], [1], [0, 0, 1, 1], [], []>} : vector<64x8xbf16>, vector<8x8xbf16>, vector<64x8xf32> -> vector<64x8xf32>
    %66 = arith.addf %61, %65 : vector<64x8xf32>
    %c0_68 = arith.constant 0 : index
    %c0_69 = arith.constant 0 : index
    %67 = vector.load %arg5[%c0_68, %c0_69] : memref<1x8xf32, #tpu.memory_space<vmem>>, vector<1x8xf32>
    %68 = vector.broadcast %67 : vector<1x8xf32> to vector<64x8xf32>
    %69 = arith.addf %66, %68 : vector<64x8xf32>
    %70 = vector.shape_cast %69 : vector<64x8xf32> to vector<8x8x8xf32>
    %71 = arith.truncf %70 : vector<8x8x8xf32> to vector<8x8x8xbf16>
    %c0_70 = arith.constant 0 : index
    %c0_71 = arith.constant 0 : index
    %c0_72 = arith.constant 0 : index
    %c0_73 = arith.constant 0 : index
    %72 = vector.load %arg6[%c0_70, %c0_71, %c0_72, %c0_73] : memref<1x8x8x8xbf16, #tpu.memory_space<vmem>>, vector<1x8x8x8xbf16>
    %73 = vector.shape_cast %72 : vector<1x8x8x8xbf16> to vector<8x8x8xbf16>
    %74 = vector.shape_cast %71 : vector<8x8x8xbf16> to vector<1x8x8x8xbf16>
    tpu.vector_store %arg6[%c0_70, %c0_71, %c0_72, %c0_73], %74 {strides = array<i32>} : memref<1x8x8x8xbf16, #tpu.memory_space<vmem>>, vector<1x8x8x8xbf16>,
    %cst_74 = arith.constant dense<0.000000e+00> : vector<8xf32>
    %75 = vector.multi_reduction <add>, %69, %cst_74 [0] : vector<64x8xf32> to vector<8xf32>
    %76 = vector.shape_cast %75 : vector<8xf32> to vector<1x8xf32>
    %c0_75 = arith.constant 0 : index
    %c0_76 = arith.constant 0 : index
    %c0_77 = arith.constant 0 : index
    %77 = vector.load %arg7[%c0_75, %c0_76, %c0_77] : memref<1x1x8xf32, #tpu.memory_space<vmem>>, vector<1x1x8xf32>
    %78 = vector.shape_cast %77 : vector<1x1x8xf32> to vector<1x8xf32>
    %79 = vector.shape_cast %76 : vector<1x8xf32> to vector<1x1x8xf32>
    tpu.vector_store %arg7[%c0_75, %c0_76, %c0_77], %79 {strides = array<i32>} : memref<1x1x8xf32, #tpu.memory_space<vmem>>, vector<1x1x8xf32>,
    %80 = arith.mulf %69, %69 : vector<64x8xf32>
    %cst_78 = arith.constant dense<0.000000e+00> : vector<8xf32>
    %81 = vector.multi_reduction <add>, %80, %cst_78 [0] : vector<64x8xf32> to vector<8xf32>
    %82 = vector.shape_cast %81 : vector<8xf32> to vector<1x8xf32>
    %c0_79 = arith.constant 0 : index
    %c0_80 = arith.constant 0 : index
    %c0_81 = arith.constant 0 : index
    %83 = vector.load %arg8[%c0_79, %c0_80, %c0_81] : memref<1x1x8xf32, #tpu.memory_space<vmem>>, vector<1x1x8xf32>
    %84 = vector.shape_cast %83 : vector<1x1x8xf32> to vector<1x8xf32>
    %85 = vector.shape_cast %82 : vector<1x8xf32> to vector<1x1x8xf32>
    tpu.vector_store %arg8[%c0_79, %c0_80, %c0_81], %85 {strides = array<i32>} : memref<1x1x8xf32, #tpu.memory_space<vmem>>, vector<1x1x8xf32>,
    return
  }
  func.func @transform_0(%arg0: i32) -> (i32, i32, i32, i32) {
    %c0_i32 = arith.constant 0 : i32
    %c0_i32_0 = arith.constant 0 : i32
    %c0_i32_1 = arith.constant 0 : i32
    %c0_i32_2 = arith.constant 0 : i32
    return %arg0, %c0_i32, %c0_i32_0, %c0_i32_1 : i32, i32, i32, i32
  }
  func.func @transform_1(%arg0: i32) -> (i32, i32) {
    %c0_i32 = arith.constant 0 : i32
    %c0_i32_0 = arith.constant 0 : i32
    %c0_i32_1 = arith.constant 0 : i32
    return %c0_i32, %c0_i32_0 : i32, i32
  }
  func.func @transform_2(%arg0: i32) -> (i32, i32) {
    %c0_i32 = arith.constant 0 : i32
    %c0_i32_0 = arith.constant 0 : i32
    %c0_i32_1 = arith.constant 0 : i32
    return %c0_i32, %c0_i32_0 : i32, i32
  }
  func.func @transform_3(%arg0: i32) -> (i32, i32) {
    %c0_i32 = arith.constant 0 : i32
    %c0_i32_0 = arith.constant 0 : i32
    %c0_i32_1 = arith.constant 0 : i32
    return %c0_i32, %c0_i32_0 : i32, i32
  }
  func.func @transform_4(%arg0: i32) -> (i32, i32) {
    %c0_i32 = arith.constant 0 : i32
    %c0_i32_0 = arith.constant 0 : i32
    %c0_i32_1 = arith.constant 0 : i32
    return %c0_i32, %c0_i32_0 : i32, i32
  }
  func.func @transform_5(%arg0: i32) -> (i32, i32, i32, i32) {
    %c0_i32 = arith.constant 0 : i32
    %c0_i32_0 = arith.constant 0 : i32
    %c0_i32_1 = arith.constant 0 : i32
    %c0_i32_2 = arith.constant 0 : i32
    return %arg0, %c0_i32, %c0_i32_0, %c0_i32_1 : i32, i32, i32, i32
  }
  func.func @transform_6(%arg0: i32) -> (i32, i32, i32) {
    %c0_i32 = arith.constant 0 : i32
    %c0_i32_0 = arith.constant 0 : i32
    %c0_i32_1 = arith.constant 0 : i32
    return %arg0, %c0_i32, %c0_i32_0 : i32, i32, i32
  }
  func.func @transform_7(%arg0: i32) -> (i32, i32, i32) {
    %c0_i32 = arith.constant 0 : i32
    %c0_i32_0 = arith.constant 0 : i32
    %c0_i32_1 = arith.constant 0 : i32
    return %arg0, %c0_i32, %c0_i32_0 : i32, i32, i32
  }
}

module attributes {stable_mosaic.version = 11 : i64} {
  func.func @_conv0_conv1_kernel(%arg0: i32, %arg1: memref<1x9x9x16xbf16, #tpu.memory_space<vmem>>, %arg2: memref<64x8xbf16, #tpu.memory_space<vmem>>, %arg3: memref<1x8xf32, #tpu.memory_space<vmem>>, %arg4: memref<72x8xbf16, #tpu.memory_space<vmem>>, %arg5: memref<1x8xf32, #tpu.memory_space<vmem>>, %arg6: memref<1x8x8x8xbf16, #tpu.memory_space<vmem>>, %arg7: memref<1x1x8xf32, #tpu.memory_space<vmem>>, %arg8: memref<1x1x8xf32, #tpu.memory_space<vmem>>, %arg9: memref<10x10x8xbf16, #tpu.memory_space<vmem>>) attributes {dimension_semantics = [#tpu.dimension_semantics<parallel>], iteration_bounds = array<i64: 2>, scalar_prefetch = 0 : i64, scratch_operands = 1 : i64, tpu.core_type = #tpu.core_type<tc>, window_params = [{transform_indices = @transform_0, window_bounds = array<i64: 1, 9, 9, 16>}, {pipeline_mode = #tpu.pipeline_mode<synchronous>, transform_indices = @transform_1, window_bounds = array<i64: 64, 8>}, {pipeline_mode = #tpu.pipeline_mode<synchronous>, transform_indices = @transform_2, window_bounds = array<i64: 1, 8>}, {pipeline_mode = #tpu.pipeline_mode<synchronous>, transform_indices = @transform_3, window_bounds = array<i64: 72, 8>}, {pipeline_mode = #tpu.pipeline_mode<synchronous>, transform_indices = @transform_4, window_bounds = array<i64: 1, 8>}, {transform_indices = @transform_5, window_bounds = array<i64: 1, 8, 8, 8>}, {transform_indices = @transform_6, window_bounds = array<i64: 1, 1, 8>}, {transform_indices = @transform_7, window_bounds = array<i64: 1, 1, 8>}]} {
    %cst = arith.constant 0.000000e+00 : bf16
    %0 = vector.broadcast %cst : bf16 to vector<1x10x8xbf16>
    %cst_0 = arith.constant 0.000000e+00 : bf16
    %1 = vector.broadcast %cst_0 : bf16 to vector<10x1x8xbf16>
    %c0 = arith.constant 0 : index
    %c0_1 = arith.constant 0 : index
    %c0_2 = arith.constant 0 : index
    %2 = vector.load %arg9[%c0, %c0_1, %c0_2] : memref<10x10x8xbf16, #tpu.memory_space<vmem>>, vector<1x10x8xbf16>
    tpu.vector_store %arg9[%c0, %c0_1, %c0_2], %0 {strides = array<i32>} : memref<10x10x8xbf16, #tpu.memory_space<vmem>>, vector<1x10x8xbf16>,
    %c9 = arith.constant 9 : index
    %c0_3 = arith.constant 0 : index
    %c0_4 = arith.constant 0 : index
    %3 = vector.load %arg9[%c9, %c0_3, %c0_4] : memref<10x10x8xbf16, #tpu.memory_space<vmem>>, vector<1x10x8xbf16>
    tpu.vector_store %arg9[%c9, %c0_3, %c0_4], %0 {strides = array<i32>} : memref<10x10x8xbf16, #tpu.memory_space<vmem>>, vector<1x10x8xbf16>,
    %c0_5 = arith.constant 0 : index
    %c0_6 = arith.constant 0 : index
    %c0_7 = arith.constant 0 : index
    %4 = vector.load %arg9[%c0_5, %c0_6, %c0_7] : memref<10x10x8xbf16, #tpu.memory_space<vmem>>, vector<10x1x8xbf16>
    tpu.vector_store %arg9[%c0_5, %c0_6, %c0_7], %1 {strides = array<i32>} : memref<10x10x8xbf16, #tpu.memory_space<vmem>>, vector<10x1x8xbf16>,
    %c0_8 = arith.constant 0 : index
    %c9_9 = arith.constant 9 : index
    %c0_10 = arith.constant 0 : index
    %5 = vector.load %arg9[%c0_8, %c9_9, %c0_10] : memref<10x10x8xbf16, #tpu.memory_space<vmem>>, vector<10x1x8xbf16>
    tpu.vector_store %arg9[%c0_8, %c9_9, %c0_10], %1 {strides = array<i32>} : memref<10x10x8xbf16, #tpu.memory_space<vmem>>, vector<10x1x8xbf16>,
    %cst_11 = arith.constant 0.000000e+00 : f32
    %6 = vector.broadcast %cst_11 : f32 to vector<64x8xf32>
    %c0_12 = arith.constant 0 : index
    %c0_13 = arith.constant 0 : index
    %c0_14 = arith.constant 0 : index
    %c0_15 = arith.constant 0 : index
    %7 = vector.load %arg1[%c0_12, %c0_13, %c0_14, %c0_15] : memref<1x9x9x16xbf16, #tpu.memory_space<vmem>>, vector<1x8x8x16xbf16>
    %8 = vector.shape_cast %7 : vector<1x8x8x16xbf16> to vector<8x8x16xbf16>
    %9 = vector.shape_cast %8 : vector<8x8x16xbf16> to vector<64x16xbf16>
    %c0_16 = arith.constant 0 : index
    %c0_17 = arith.constant 0 : index
    %10 = vector.load %arg2[%c0_16, %c0_17] : memref<64x8xbf16, #tpu.memory_space<vmem>>, vector<16x8xbf16>
    %cst_18 = arith.constant dense<0.000000e+00> : vector<64x8xf32>
    %11 = tpu.matmul %9, %10, %cst_18 {dimension_numbers = #tpu.dot_dimension_numbers<[1], [0], [0], [1], [0, 0, 1, 1], [], []>} : vector<64x16xbf16>, vector<16x8xbf16>, vector<64x8xf32> -> vector<64x8xf32>
    %12 = arith.addf %6, %11 : vector<64x8xf32>
    %c0_19 = arith.constant 0 : index
    %c0_20 = arith.constant 0 : index
    %c1 = arith.constant 1 : index
    %c0_21 = arith.constant 0 : index
    %13 = vector.load %arg1[%c0_19, %c0_20, %c1, %c0_21] : memref<1x9x9x16xbf16, #tpu.memory_space<vmem>>, vector<1x8x8x16xbf16>
    %14 = vector.shape_cast %13 : vector<1x8x8x16xbf16> to vector<8x8x16xbf16>
    %15 = vector.shape_cast %14 : vector<8x8x16xbf16> to vector<64x16xbf16>
    %c16 = arith.constant 16 : index
    %c0_22 = arith.constant 0 : index
    %16 = vector.load %arg2[%c16, %c0_22] : memref<64x8xbf16, #tpu.memory_space<vmem>>, vector<16x8xbf16>
    %cst_23 = arith.constant dense<0.000000e+00> : vector<64x8xf32>
    %17 = tpu.matmul %15, %16, %cst_23 {dimension_numbers = #tpu.dot_dimension_numbers<[1], [0], [0], [1], [0, 0, 1, 1], [], []>} : vector<64x16xbf16>, vector<16x8xbf16>, vector<64x8xf32> -> vector<64x8xf32>
    %18 = arith.addf %12, %17 : vector<64x8xf32>
    %c0_24 = arith.constant 0 : index
    %c1_25 = arith.constant 1 : index
    %c0_26 = arith.constant 0 : index
    %c0_27 = arith.constant 0 : index
    %19 = vector.load %arg1[%c0_24, %c1_25, %c0_26, %c0_27] : memref<1x9x9x16xbf16, #tpu.memory_space<vmem>>, vector<1x8x8x16xbf16>
    %20 = vector.shape_cast %19 : vector<1x8x8x16xbf16> to vector<8x8x16xbf16>
    %21 = vector.shape_cast %20 : vector<8x8x16xbf16> to vector<64x16xbf16>
    %c32 = arith.constant 32 : index
    %c0_28 = arith.constant 0 : index
    %22 = vector.load %arg2[%c32, %c0_28] : memref<64x8xbf16, #tpu.memory_space<vmem>>, vector<16x8xbf16>
    %cst_29 = arith.constant dense<0.000000e+00> : vector<64x8xf32>
    %23 = tpu.matmul %21, %22, %cst_29 {dimension_numbers = #tpu.dot_dimension_numbers<[1], [0], [0], [1], [0, 0, 1, 1], [], []>} : vector<64x16xbf16>, vector<16x8xbf16>, vector<64x8xf32> -> vector<64x8xf32>
    %24 = arith.addf %18, %23 : vector<64x8xf32>
    %c0_30 = arith.constant 0 : index
    %c1_31 = arith.constant 1 : index
    %c1_32 = arith.constant 1 : index
    %c0_33 = arith.constant 0 : index
    %25 = vector.load %arg1[%c0_30, %c1_31, %c1_32, %c0_33] : memref<1x9x9x16xbf16, #tpu.memory_space<vmem>>, vector<1x8x8x16xbf16>
    %26 = vector.shape_cast %25 : vector<1x8x8x16xbf16> to vector<8x8x16xbf16>
    %27 = vector.shape_cast %26 : vector<8x8x16xbf16> to vector<64x16xbf16>
    %c48 = arith.constant 48 : index
    %c0_34 = arith.constant 0 : index
    %28 = vector.load %arg2[%c48, %c0_34] : memref<64x8xbf16, #tpu.memory_space<vmem>>, vector<16x8xbf16>
    %cst_35 = arith.constant dense<0.000000e+00> : vector<64x8xf32>
    %29 = tpu.matmul %27, %28, %cst_35 {dimension_numbers = #tpu.dot_dimension_numbers<[1], [0], [0], [1], [0, 0, 1, 1], [], []>} : vector<64x16xbf16>, vector<16x8xbf16>, vector<64x8xf32> -> vector<64x8xf32>
    %30 = arith.addf %24, %29 : vector<64x8xf32>
    %c0_36 = arith.constant 0 : index
    %c0_37 = arith.constant 0 : index
    %31 = vector.load %arg3[%c0_36, %c0_37] : memref<1x8xf32, #tpu.memory_space<vmem>>, vector<1x8xf32>
    %32 = vector.broadcast %31 : vector<1x8xf32> to vector<64x8xf32>
    %33 = arith.addf %30, %32 : vector<64x8xf32>
    %34 = vector.shape_cast %33 : vector<64x8xf32> to vector<8x8x8xf32>
    %35 = arith.truncf %34 : vector<8x8x8xf32> to vector<8x8x8xbf16>
    %c1_38 = arith.constant 1 : index
    %c1_39 = arith.constant 1 : index
    %c0_40 = arith.constant 0 : index
    %36 = vector.load %arg9[%c1_38, %c1_39, %c0_40] : memref<10x10x8xbf16, #tpu.memory_space<vmem>>, vector<8x8x8xbf16>
    tpu.vector_store %arg9[%c1_38, %c1_39, %c0_40], %35 {strides = array<i32>} : memref<10x10x8xbf16, #tpu.memory_space<vmem>>, vector<8x8x8xbf16>,
    %cst_41 = arith.constant 0.000000e+00 : f32
    %37 = vector.broadcast %cst_41 : f32 to vector<64x8xf32>
    %c0_42 = arith.constant 0 : index
    %c0_43 = arith.constant 0 : index
    %c0_44 = arith.constant 0 : index
    %38 = vector.load %arg9[%c0_42, %c0_43, %c0_44] : memref<10x10x8xbf16, #tpu.memory_space<vmem>>, vector<8x8x8xbf16>
    %39 = vector.shape_cast %38 : vector<8x8x8xbf16> to vector<64x8xbf16>
    %c0_45 = arith.constant 0 : index
    %c0_46 = arith.constant 0 : index
    %40 = vector.load %arg4[%c0_45, %c0_46] : memref<72x8xbf16, #tpu.memory_space<vmem>>, vector<8x8xbf16>
    %cst_47 = arith.constant dense<0.000000e+00> : vector<64x8xf32>
    %41 = tpu.matmul %39, %40, %cst_47 {dimension_numbers = #tpu.dot_dimension_numbers<[1], [0], [0], [1], [0, 0, 1, 1], [], []>} : vector<64x8xbf16>, vector<8x8xbf16>, vector<64x8xf32> -> vector<64x8xf32>
    %42 = arith.addf %37, %41 : vector<64x8xf32>
    %c0_48 = arith.constant 0 : index
    %c1_49 = arith.constant 1 : index
    %c0_50 = arith.constant 0 : index
    %43 = vector.load %arg9[%c0_48, %c1_49, %c0_50] : memref<10x10x8xbf16, #tpu.memory_space<vmem>>, vector<8x8x8xbf16>
    %44 = vector.shape_cast %43 : vector<8x8x8xbf16> to vector<64x8xbf16>
    %c8 = arith.constant 8 : index
    %c0_51 = arith.constant 0 : index
    %45 = vector.load %arg4[%c8, %c0_51] : memref<72x8xbf16, #tpu.memory_space<vmem>>, vector<8x8xbf16>
    %cst_52 = arith.constant dense<0.000000e+00> : vector<64x8xf32>
    %46 = tpu.matmul %44, %45, %cst_52 {dimension_numbers = #tpu.dot_dimension_numbers<[1], [0], [0], [1], [0, 0, 1, 1], [], []>} : vector<64x8xbf16>, vector<8x8xbf16>, vector<64x8xf32> -> vector<64x8xf32>
    %47 = arith.addf %42, %46 : vector<64x8xf32>
    %c0_53 = arith.constant 0 : index
    %c2 = arith.constant 2 : index
    %c0_54 = arith.constant 0 : index
    %48 = vector.load %arg9[%c0_53, %c2, %c0_54] : memref<10x10x8xbf16, #tpu.memory_space<vmem>>, vector<8x8x8xbf16>
    %49 = vector.shape_cast %48 : vector<8x8x8xbf16> to vector<64x8xbf16>
    %c16_55 = arith.constant 16 : index
    %c0_56 = arith.constant 0 : index
    %50 = vector.load %arg4[%c16_55, %c0_56] : memref<72x8xbf16, #tpu.memory_space<vmem>>, vector<8x8xbf16>
    %cst_57 = arith.constant dense<0.000000e+00> : vector<64x8xf32>
    %51 = tpu.matmul %49, %50, %cst_57 {dimension_numbers = #tpu.dot_dimension_numbers<[1], [0], [0], [1], [0, 0, 1, 1], [], []>} : vector<64x8xbf16>, vector<8x8xbf16>, vector<64x8xf32> -> vector<64x8xf32>
    %52 = arith.addf %47, %51 : vector<64x8xf32>
    %c1_58 = arith.constant 1 : index
    %c0_59 = arith.constant 0 : index
    %c0_60 = arith.constant 0 : index
    %53 = vector.load %arg9[%c1_58, %c0_59, %c0_60] : memref<10x10x8xbf16, #tpu.memory_space<vmem>>, vector<8x8x8xbf16>
    %54 = vector.shape_cast %53 : vector<8x8x8xbf16> to vector<64x8xbf16>
    %c24 = arith.constant 24 : index
    %c0_61 = arith.constant 0 : index
    %55 = vector.load %arg4[%c24, %c0_61] : memref<72x8xbf16, #tpu.memory_space<vmem>>, vector<8x8xbf16>
    %cst_62 = arith.constant dense<0.000000e+00> : vector<64x8xf32>
    %56 = tpu.matmul %54, %55, %cst_62 {dimension_numbers = #tpu.dot_dimension_numbers<[1], [0], [0], [1], [0, 0, 1, 1], [], []>} : vector<64x8xbf16>, vector<8x8xbf16>, vector<64x8xf32> -> vector<64x8xf32>
    %57 = arith.addf %52, %56 : vector<64x8xf32>
    %c1_63 = arith.constant 1 : index
    %c1_64 = arith.constant 1 : index
    %c0_65 = arith.constant 0 : index
    %58 = vector.load %arg9[%c1_63, %c1_64, %c0_65] : memref<10x10x8xbf16, #tpu.memory_space<vmem>>, vector<8x8x8xbf16>
    %59 = vector.shape_cast %58 : vector<8x8x8xbf16> to vector<64x8xbf16>
    %c32_66 = arith.constant 32 : index
    %c0_67 = arith.constant 0 : index
    %60 = vector.load %arg4[%c32_66, %c0_67] : memref<72x8xbf16, #tpu.memory_space<vmem>>, vector<8x8xbf16>
    %cst_68 = arith.constant dense<0.000000e+00> : vector<64x8xf32>
    %61 = tpu.matmul %59, %60, %cst_68 {dimension_numbers = #tpu.dot_dimension_numbers<[1], [0], [0], [1], [0, 0, 1, 1], [], []>} : vector<64x8xbf16>, vector<8x8xbf16>, vector<64x8xf32> -> vector<64x8xf32>
    %62 = arith.addf %57, %61 : vector<64x8xf32>
    %c1_69 = arith.constant 1 : index
    %c2_70 = arith.constant 2 : index
    %c0_71 = arith.constant 0 : index
    %63 = vector.load %arg9[%c1_69, %c2_70, %c0_71] : memref<10x10x8xbf16, #tpu.memory_space<vmem>>, vector<8x8x8xbf16>
    %64 = vector.shape_cast %63 : vector<8x8x8xbf16> to vector<64x8xbf16>
    %c40 = arith.constant 40 : index
    %c0_72 = arith.constant 0 : index
    %65 = vector.load %arg4[%c40, %c0_72] : memref<72x8xbf16, #tpu.memory_space<vmem>>, vector<8x8xbf16>
    %cst_73 = arith.constant dense<0.000000e+00> : vector<64x8xf32>
    %66 = tpu.matmul %64, %65, %cst_73 {dimension_numbers = #tpu.dot_dimension_numbers<[1], [0], [0], [1], [0, 0, 1, 1], [], []>} : vector<64x8xbf16>, vector<8x8xbf16>, vector<64x8xf32> -> vector<64x8xf32>
    %67 = arith.addf %62, %66 : vector<64x8xf32>
    %c2_74 = arith.constant 2 : index
    %c0_75 = arith.constant 0 : index
    %c0_76 = arith.constant 0 : index
    %68 = vector.load %arg9[%c2_74, %c0_75, %c0_76] : memref<10x10x8xbf16, #tpu.memory_space<vmem>>, vector<8x8x8xbf16>
    %69 = vector.shape_cast %68 : vector<8x8x8xbf16> to vector<64x8xbf16>
    %c48_77 = arith.constant 48 : index
    %c0_78 = arith.constant 0 : index
    %70 = vector.load %arg4[%c48_77, %c0_78] : memref<72x8xbf16, #tpu.memory_space<vmem>>, vector<8x8xbf16>
    %cst_79 = arith.constant dense<0.000000e+00> : vector<64x8xf32>
    %71 = tpu.matmul %69, %70, %cst_79 {dimension_numbers = #tpu.dot_dimension_numbers<[1], [0], [0], [1], [0, 0, 1, 1], [], []>} : vector<64x8xbf16>, vector<8x8xbf16>, vector<64x8xf32> -> vector<64x8xf32>
    %72 = arith.addf %67, %71 : vector<64x8xf32>
    %c2_80 = arith.constant 2 : index
    %c1_81 = arith.constant 1 : index
    %c0_82 = arith.constant 0 : index
    %73 = vector.load %arg9[%c2_80, %c1_81, %c0_82] : memref<10x10x8xbf16, #tpu.memory_space<vmem>>, vector<8x8x8xbf16>
    %74 = vector.shape_cast %73 : vector<8x8x8xbf16> to vector<64x8xbf16>
    %c56 = arith.constant 56 : index
    %c0_83 = arith.constant 0 : index
    %75 = vector.load %arg4[%c56, %c0_83] : memref<72x8xbf16, #tpu.memory_space<vmem>>, vector<8x8xbf16>
    %cst_84 = arith.constant dense<0.000000e+00> : vector<64x8xf32>
    %76 = tpu.matmul %74, %75, %cst_84 {dimension_numbers = #tpu.dot_dimension_numbers<[1], [0], [0], [1], [0, 0, 1, 1], [], []>} : vector<64x8xbf16>, vector<8x8xbf16>, vector<64x8xf32> -> vector<64x8xf32>
    %77 = arith.addf %72, %76 : vector<64x8xf32>
    %c2_85 = arith.constant 2 : index
    %c2_86 = arith.constant 2 : index
    %c0_87 = arith.constant 0 : index
    %78 = vector.load %arg9[%c2_85, %c2_86, %c0_87] : memref<10x10x8xbf16, #tpu.memory_space<vmem>>, vector<8x8x8xbf16>
    %79 = vector.shape_cast %78 : vector<8x8x8xbf16> to vector<64x8xbf16>
    %c64 = arith.constant 64 : index
    %c0_88 = arith.constant 0 : index
    %80 = vector.load %arg4[%c64, %c0_88] : memref<72x8xbf16, #tpu.memory_space<vmem>>, vector<8x8xbf16>
    %cst_89 = arith.constant dense<0.000000e+00> : vector<64x8xf32>
    %81 = tpu.matmul %79, %80, %cst_89 {dimension_numbers = #tpu.dot_dimension_numbers<[1], [0], [0], [1], [0, 0, 1, 1], [], []>} : vector<64x8xbf16>, vector<8x8xbf16>, vector<64x8xf32> -> vector<64x8xf32>
    %82 = arith.addf %77, %81 : vector<64x8xf32>
    %c0_90 = arith.constant 0 : index
    %c0_91 = arith.constant 0 : index
    %83 = vector.load %arg5[%c0_90, %c0_91] : memref<1x8xf32, #tpu.memory_space<vmem>>, vector<1x8xf32>
    %84 = vector.broadcast %83 : vector<1x8xf32> to vector<64x8xf32>
    %85 = arith.addf %82, %84 : vector<64x8xf32>
    %86 = vector.shape_cast %85 : vector<64x8xf32> to vector<8x8x8xf32>
    %87 = arith.truncf %86 : vector<8x8x8xf32> to vector<8x8x8xbf16>
    %c0_92 = arith.constant 0 : index
    %c0_93 = arith.constant 0 : index
    %c0_94 = arith.constant 0 : index
    %c0_95 = arith.constant 0 : index
    %88 = vector.load %arg6[%c0_92, %c0_93, %c0_94, %c0_95] : memref<1x8x8x8xbf16, #tpu.memory_space<vmem>>, vector<1x8x8x8xbf16>
    %89 = vector.shape_cast %88 : vector<1x8x8x8xbf16> to vector<8x8x8xbf16>
    %90 = vector.shape_cast %87 : vector<8x8x8xbf16> to vector<1x8x8x8xbf16>
    tpu.vector_store %arg6[%c0_92, %c0_93, %c0_94, %c0_95], %90 {strides = array<i32>} : memref<1x8x8x8xbf16, #tpu.memory_space<vmem>>, vector<1x8x8x8xbf16>,
    %cst_96 = arith.constant dense<0.000000e+00> : vector<8xf32>
    %91 = vector.multi_reduction <add>, %85, %cst_96 [0] : vector<64x8xf32> to vector<8xf32>
    %92 = vector.shape_cast %91 : vector<8xf32> to vector<1x8xf32>
    %c0_97 = arith.constant 0 : index
    %c0_98 = arith.constant 0 : index
    %c0_99 = arith.constant 0 : index
    %93 = vector.load %arg7[%c0_97, %c0_98, %c0_99] : memref<1x1x8xf32, #tpu.memory_space<vmem>>, vector<1x1x8xf32>
    %94 = vector.shape_cast %93 : vector<1x1x8xf32> to vector<1x8xf32>
    %95 = vector.shape_cast %92 : vector<1x8xf32> to vector<1x1x8xf32>
    tpu.vector_store %arg7[%c0_97, %c0_98, %c0_99], %95 {strides = array<i32>} : memref<1x1x8xf32, #tpu.memory_space<vmem>>, vector<1x1x8xf32>,
    %96 = arith.mulf %85, %85 : vector<64x8xf32>
    %cst_100 = arith.constant dense<0.000000e+00> : vector<8xf32>
    %97 = vector.multi_reduction <add>, %96, %cst_100 [0] : vector<64x8xf32> to vector<8xf32>
    %98 = vector.shape_cast %97 : vector<8xf32> to vector<1x8xf32>
    %c0_101 = arith.constant 0 : index
    %c0_102 = arith.constant 0 : index
    %c0_103 = arith.constant 0 : index
    %99 = vector.load %arg8[%c0_101, %c0_102, %c0_103] : memref<1x1x8xf32, #tpu.memory_space<vmem>>, vector<1x1x8xf32>
    %100 = vector.shape_cast %99 : vector<1x1x8xf32> to vector<1x8xf32>
    %101 = vector.shape_cast %98 : vector<1x8xf32> to vector<1x1x8xf32>
    tpu.vector_store %arg8[%c0_101, %c0_102, %c0_103], %101 {strides = array<i32>} : memref<1x1x8xf32, #tpu.memory_space<vmem>>, vector<1x1x8xf32>,
    return
  }
  func.func @transform_0(%arg0: i32) -> (i32, i32, i32, i32) {
    %c0_i32 = arith.constant 0 : i32
    %c0_i32_0 = arith.constant 0 : i32
    %c0_i32_1 = arith.constant 0 : i32
    %c0_i32_2 = arith.constant 0 : i32
    return %arg0, %c0_i32, %c0_i32_0, %c0_i32_1 : i32, i32, i32, i32
  }
  func.func @transform_1(%arg0: i32) -> (i32, i32) {
    %c0_i32 = arith.constant 0 : i32
    %c0_i32_0 = arith.constant 0 : i32
    %c0_i32_1 = arith.constant 0 : i32
    return %c0_i32, %c0_i32_0 : i32, i32
  }
  func.func @transform_2(%arg0: i32) -> (i32, i32) {
    %c0_i32 = arith.constant 0 : i32
    %c0_i32_0 = arith.constant 0 : i32
    %c0_i32_1 = arith.constant 0 : i32
    return %c0_i32, %c0_i32_0 : i32, i32
  }
  func.func @transform_3(%arg0: i32) -> (i32, i32) {
    %c0_i32 = arith.constant 0 : i32
    %c0_i32_0 = arith.constant 0 : i32
    %c0_i32_1 = arith.constant 0 : i32
    return %c0_i32, %c0_i32_0 : i32, i32
  }
  func.func @transform_4(%arg0: i32) -> (i32, i32) {
    %c0_i32 = arith.constant 0 : i32
    %c0_i32_0 = arith.constant 0 : i32
    %c0_i32_1 = arith.constant 0 : i32
    return %c0_i32, %c0_i32_0 : i32, i32
  }
  func.func @transform_5(%arg0: i32) -> (i32, i32, i32, i32) {
    %c0_i32 = arith.constant 0 : i32
    %c0_i32_0 = arith.constant 0 : i32
    %c0_i32_1 = arith.constant 0 : i32
    %c0_i32_2 = arith.constant 0 : i32
    return %arg0, %c0_i32, %c0_i32_0, %c0_i32_1 : i32, i32, i32, i32
  }
  func.func @transform_6(%arg0: i32) -> (i32, i32, i32) {
    %c0_i32 = arith.constant 0 : i32
    %c0_i32_0 = arith.constant 0 : i32
    %c0_i32_1 = arith.constant 0 : i32
    return %arg0, %c0_i32, %c0_i32_0 : i32, i32, i32
  }
  func.func @transform_7(%arg0: i32) -> (i32, i32, i32) {
    %c0_i32 = arith.constant 0 : i32
    %c0_i32_0 = arith.constant 0 : i32
    %c0_i32_1 = arith.constant 0 : i32
    return %arg0, %c0_i32, %c0_i32_0 : i32, i32, i32
  }
}

</mosaic_0001>

<bundles_post_ra>
// kernel: down_forward.3
= control target key start
LH: loop header
LB: loop body
LE: loop exit
PB: predicated region body
PF: predicated region fallthrough
CT: control target
= control target key end

     0   :  { %s2696_s24 = smov 0   ;;  %s3311_s0 = inlined_call_operand.vmem [shape: bf16[2,8,8,8], index: 0, kind: input, shape index: {}]   ;;  %s3312_s1 = inlined_call_operand.vmem [shape: f32[1,8], index: 1, kind: input, shape index: {}]   ;;  %s3313_s2 = inlined_call_operand.vmem [shape: f32[1,8], index: 2, kind: input, shape index: {}]   ;;  %s3314_s3 = inlined_call_operand.vmem [shape: bf16[72,8], index: 3, kind: input, shape index: {}]   ;;  %s3315_s4 = inlined_call_operand.vmem [shape: f32[1,8], index: 4, kind: input, shape index: {}]   ;;  %s3316_s5 = inlined_call_operand.vmem [shape: bf16[2,8,8,8], index: 5, kind: output, shape index: {0}]   ;;  %s3317_s6 = inlined_call_operand.vmem [shape: f32[2,1,8], index: 6, kind: output, shape index: {1}]   ;;  %s3318_s7 = inlined_call_operand.vmem [shape: f32[2,1,8], index: 7, kind: output, shape index: {2}]  }
   0x1 LB: > { %s2268_s25 = sadd.s32 4294967295, %s2653_s24   ;;  %p2272_p0 = scmp.ge.s32.totalorder %s2653_s24, 1  ;;  %s2653_s24 = sphi %s2696_s24, %s18_s24  }
   0x2   : > { %p242_p1 = scmp.lt.s32.totalorder %s2653_s24, 3 }
   0x4   : > { %p243_p2 = pnand %p2272_p0, %p242_p1 }
   0x5   : > { %v718_v0 = vld [vmem:[%s3314_s3 + $0x4] sm:$0xf] (!%p243_p2)  ;;  %vm744_vm0 = vcmask (!%p243_p2), 1043456   ;;  %v1318_v1 = vld [vmem:[%s3314_s3 + $0x10] sm:$0xf] (!%p243_p2)  ;;  %p280_p3 = scmp.lt.s32.totalorder (!%p243_p2), %s2268_s25, 1 }
   0x6   : > { %246 = sbr.rel (%p243_p2) target bundleno = 392 (0x188), region = 40  ;;  %2616 = vmatprep.subr.msk.bf16.mxu1 (!%p243_p2), %vm744_vm0, %v718_v0  ;;  %2620 = vmatprep.subr.msk.bf16.mxu0 (!%p243_p2), %vm744_vm0, %v1318_v1  ;;  %v746_v2 = vsel (!%p243_p2), %vm744_vm0, %v718_v0, 0  ;;  %v2714_v3 = vsel (!%p243_p2), %vm744_vm0, %v1318_v1, 0  ;;  %vm297_vm1 = vcmask (!%p243_p2), 60416   ;;  %v310_v4 = vld [vmem:[#allocation2 + $0x8] sm:$0x1] (!%p243_p2) }
   0x7   : > { %2461 = vmatpush3.bf16.msra.mxu1 (!%p243_p2), %v746_v2  ;;  %2501 = vmatpush3.bf16.msra.mxu0 (!%p243_p2), %v2714_v3  ;;  %v2655_v5 = vmov (!%p243_p2), 0   ;;  %vm299_vm2 = vcmask (!%p243_p2), 57344   ;;  %vm305_vm3 = vsmask.f32 (!%p243_p2), 256  ;;  %vm337_vm4 = vsmask.f32 (!%p243_p2), 7938 }
   0x8   : > { %298 = vst.msk [vmem:[#allocation2] sm:$0xf] (!%p243_p2), %vm297_vm1, %v2655_v5  ;;  %302 = vst.msk [vmem:[#allocation2 + $0x48] sm:$0xf] (!%p243_p2), %vm297_vm1, %v2655_v5  ;;  %v342_v7 = vld [vmem:[#allocation2 + $0xc] sm:$0x1] (!%p243_p2) }
   0x9   : > { %300 = vst.msk [vmem:[#allocation2 + $0x4] sm:$0x1] (!%p243_p2), %vm299_vm2, %v2655_v5  ;;  %vm2723_vm5 = vmand (!%p243_p2), %vm299_vm2, %vm305_vm3  ;;  %v2740_v10 = vld [vmem:[%s3312_s1] ss:$0 sm:$0xff] (!%p243_p2)  ;;  %v313_v13 = vld [vmem:[#allocation2 + $0x10] sm:$0x1] (!%p243_p2) }
   0xa   : > { %303 = vst.msk [vmem:[#allocation2 + $0x4c] sm:$0x1] (!%p243_p2), %vm299_vm2, %v2655_v5  ;;  %v311_v8 = vsel (!%p243_p2), %vm2723_vm5, 0, %v310_v4  ;;  %vm2733_vm6 = vmand (!%p243_p2), %vm299_vm2, %vm337_vm4  ;;  %v2754_v12 = vld [vmem:[%s3314_s3] sm:$0xf] (!%p243_p2)  ;;  %v314_v16 = vsel (!%p243_p2), %vm2723_vm5, 0, %v313_v13 }
   0xb   : > { %312 = vst [vmem:[#allocation2 + $0x8] sm:$0x1] (!%p243_p2), %v311_v8  ;;  %v343_v11 = vsel (!%p243_p2), %vm2733_vm6, 0, %v342_v7  ;;  %v2760_v15 = vld [vmem:[%s3313_s2] ss:$0 sm:$0xff] (!%p243_p2)  ;;  %2617 = vmatprep.subr.msk.bf16.mxu1 (!%p243_p2), %vm744_vm0, %v2754_v12  ;;  %vm2818_vm7 = vmand (!%p243_p2), %vm297_vm1, %vm337_vm4  ;;  %vm731_vm11 = vcmask (!%p243_p2), 64512  }
   0xc   : > { %344 = vst [vmem:[#allocation2 + $0xc] sm:$0x1] (!%p243_p2), %v343_v11  ;;  %v345_v17 = vld [vmem:[#allocation2 + $0x14] sm:$0x1] (!%p243_p2)  ;;  %315 = vst [vmem:[#allocation2 + $0x10] sm:$0x1] (!%p243_p2), %v314_v16 }
   0xd   : > { %s3330_s25 = smov (!%p280_p3, %s2268_s25), 1  ;;  %v346_v19 = vsel %vm2733_vm6, 0, %v345_v17  ;;  %v2771_v21 = vld [vmem:[%s3314_s3 + $0x14] sm:$0xf]  ;;  %v316_v22 = vld [vmem:[#allocation2 + $0x18] sm:$0x1] }
   0xe   : > { %s2386_s30 = sshll.u32 %s3330_s25, 5  ;;  %347 = vst [vmem:[#allocation2 + $0x14] sm:$0x1] %v346_v19  ;;  %2622 = vmatprep.subr.msk.bf16.mxu0 %vm744_vm0, %v2771_v21  ;;  %v317_v24 = vsel %vm2723_vm5, 0, %v316_v22  ;;  %v348_v25 = vld [vmem:[#allocation2 + $0x1c] sm:$0x1]  ;;  %s292_s17 = scalar_lea.vmem %s3317_s6, %s3330_s25 }
   0xf   : > { %s2747_s12 = scalar_lea.vmem %s3311_s0, %s2386_s30  ;;  %v319_v27 = vld [vmem:[#allocation2 + $0x20] sm:$0x1]  ;;  %318 = vst [vmem:[#allocation2 + $0x18] sm:$0x1] %v317_v24  ;;  %v349_v32 = vsel %vm2733_vm6, 0, %v348_v25  ;;  %vm937_vm12 = vcmask 1042432   ;;  %s3264_s15 = scalar_lea.vmem %s3316_s5, %s2386_s30 }
  0x10   : > { %v2397_v14 = vld [vmem:[%s2747_s12] sm:$0xff]   ;;  %v2412_v23 = vld [vmem:[%s2747_s12 + $0x8] sm:$0xff]   ;;  %v320_v33 = vsel %vm2723_vm5, 0, %v319_v27  ;;  %350 = vst [vmem:[#allocation2 + $0x1c] sm:$0x1] %v349_v32  ;;  %v2797_v46 = vld [vmem:[%s2747_s12 + $0x10] sm:$0xff]   ;;  %s295_s20 = scalar_lea.vmem %s3318_s7, %s3330_s25 }
  0x11   : > { %v2398_v18 = vunpack.c.l.bf16 %v2397_v14  ;;  %v2399_v20 = vunpack.c.h.bf16 %v2397_v14  ;;  %v2402_v26 = vunpack.c.l.bf16 %v2412_v23  ;;  %v2403_v28 = vunpack.c.h.bf16 %v2412_v23  ;;  %v307_v29 = vld [vmem:[#allocation2] sm:$0x1]  ;;  %v351_v34 = vld [vmem:[#allocation2 + $0x24] sm:$0x1]  ;;  %321 = vst [vmem:[#allocation2 + $0x20] sm:$0x1] %v320_v33 }
  0x12   : > { %v308_v35 = vsel %vm2723_vm5, 0, %v307_v29  ;;  %v339_v36 = vld [vmem:[#allocation2 + $0x4] sm:$0x1]  ;;  %v352_v38 = vsel %vm2733_vm6, 0, %v351_v34  ;;  %v322_v40 = vld [vmem:[#allocation2 + $0x28] sm:$0x1]  ;;  %v2406_v53 = vunpack.c.l.bf16 %v2797_v46  ;;  %v2407_v1 = vunpack.c.h.bf16 %v2797_v46 }
  0x13   : > { %v392_v30 = vmul.f32 %v2398_v18, %v2740_v10  ;;  %v393_v31 = vmul.f32 %v2399_v20, %v2740_v10  ;;  %v394_v37 = vmul.f32 %v2402_v26, %v2740_v10  ;;  %v395_v39 = vmul.f32 %v2403_v28, %v2740_v10  ;;  %309 = vst [vmem:[#allocation2] sm:$0x1] %v308_v35  ;;  %v354_v45 = vld [vmem:[#allocation2 + $0x2c] sm:$0x1]  ;;  %v325_v50 = vld [vmem:[#allocation2 + $0x30] sm:$0x1] }
  0x14   : > { %v340_v41 = vsel %vm2733_vm6, 0, %v339_v36  ;;  %353 = vst [vmem:[#allocation2 + $0x24] sm:$0x1] %v352_v38  ;;  %v323_v44 = vsel %vm2723_vm5, 0, %v322_v40  ;;  %v355_v49 = vsel %vm2733_vm6, 0, %v354_v45  ;;  %v326_v54 = vsel %vm2723_vm5, 0, %v325_v50 }
  0x15   : > { %v407_v42 = vadd.f32 %v2760_v15, %v392_v30  ;;  %v408_v43 = vadd.f32 %v2760_v15, %v393_v31  ;;  %341 = vst [vmem:[#allocation2 + $0x4] sm:$0x1] %v340_v41  ;;  %v409_v47 = vadd.f32 %v2760_v15, %v394_v37  ;;  %v410_v48 = vadd.f32 %v2760_v15, %v395_v39  ;;  %v328_v57 = vld [vmem:[#allocation2 + $0x38] sm:$0x1]  ;;  %v357_v61 = vld [vmem:[#allocation2 + $0x34] sm:$0x1] }
  0x16   : > { %324 = vst [vmem:[#allocation2 + $0x28] sm:$0x1] %v323_v44  ;;  %356 = vst [vmem:[#allocation2 + $0x2c] sm:$0x1] %v355_v49  ;;  %v329_v60 = vsel %vm2723_vm5, 0, %v328_v57  ;;  %v358_v0 = vsel %vm2733_vm6, 0, %v357_v61  ;;  %v396_v7 = vmul.f32 %v2406_v53, %v2740_v10  ;;  %v397_v46 = vmul.f32 %v2407_v1, %v2740_v10 }
  0x17   : > { %v415_v51 = vmax.f32 %v407_v42, 0.0  ;;  %v416_v52 = vmax.f32 %v408_v43, 0.0  ;;  %v417_v55 = vmax.f32 %v409_v47, 0.0  ;;  %v418_v56 = vmax.f32 %v410_v48, 0.0  ;;  %327 = vst [vmem:[#allocation2 + $0x30] sm:$0x1] %v326_v54 }
  0x18   : > { %330 = vst [vmem:[#allocation2 + $0x38] sm:$0x1] %v329_v60  ;;  %359 = vst [vmem:[#allocation2 + $0x34] sm:$0x1] %v358_v0  ;;  %v538_v8 = vld [vmem:[#allocation2 + $0x8] sm:$0xf]  ;;  %v411_v40 = vadd.f32 %v2760_v15, %v396_v7  ;;  %v2850_v0 = vadd.f32 %v2760_v15, %v397_v46 }
  0x19   : > { %v2388_v58 = vpack.c.bf16 %v415_v51, %v415_v51  ;;  %v2389_v59 = vpack.c.bf16 %v416_v52, %v416_v52  ;;  %v2390_v62 = vpack.c.bf16 %v417_v55, %v417_v55  ;;  %v2391_v63 = vpack.c.bf16 %v418_v56, %v418_v56  ;;  %v541_v11 = vld [vmem:[#allocation2 + $0xc] sm:$0x1]  ;;  %v544_v24 = vld [vmem:[#allocation2 + $0x10] sm:$0xf]  ;;  %v547_v26 = vld [vmem:[#allocation2 + $0x14] sm:$0x1] }
  0x1a   : > { %v2812_v13 = vld [vmem:[#allocation2] sm:$0xf]  ;;  %v550_v34 = vld [vmem:[#allocation2 + $0x18] sm:$0xf]  ;;  %v553_v39 = vld [vmem:[#allocation2 + $0x1c] sm:$0x1] }
  0x1b   : > { %v456_v2 = vshrl.u32 %v2388_v58, 16  ;;  %v459_v4 = vshll.u32 %v2388_v58, 16  ;;  %v464_v5 = vshrl.u32 %v2389_v59, 16  ;;  %v467_v14 = vshll.u32 %v2389_v59, 16  ;;  %v556_v44 = vld [vmem:[#allocation2 + $0x20] sm:$0xf] }
  0x1c   : > { %v472_v16 = vshrl.u32 %v2390_v62, 16  ;;  %v475_v17 = vshll.u32 %v2390_v62, 16  ;;  %v480_v18 = vshrl.u32 %v2391_v63, 16  ;;  %v607_v20 = vshrl.u32 %v2812_v13, 16  ;;  %v2822_v35 = vld [vmem:[#allocation2 + $0x4] sm:$0x1] }
  0x1d   : > { %v458_v19 = vrot.slane %v456_v2, 7  ;;  %v610_v22 = vshll.u32 %v2812_v13, 16  ;;  %v466_v23 = vrot.slane %v464_v5, 7  ;;  %v483_v29 = vshll.u32 %v2391_v63, 16  ;;  %v360_v45 = vld [vmem:[#allocation2 + $0x3c] sm:$0x1] }
  0x1e   : > { %v474_v27 = vrot.slane %v472_v16, 7  ;;  %v482_v28 = vrot.slane %v480_v18, 7  ;;  %v609_v32 = vrot.slane %v607_v20, 4  ;;  %v559_v51 = vld [vmem:[#allocation2 + $0x24] sm:$0x1]  ;;  %v2837_v52 = vld [vmem:[%s2747_s12 + $0x18] sm:$0xff]  }
  0x1f   : > { %v461_v30 = vor.u32 %v459_v4, %v458_v19  ;;  %v462_v31 = vrot.slane %v458_v19, 4  ;;  %v612_v33 = vrot.slane %v610_v22, 5  ;;  %v469_v36 = vor.u32 %v467_v14, %v466_v23  ;;  %v331_v60 = vld [vmem:[#allocation2 + $0x40] sm:$0x1]  ;;  %v363_v61 = vld [vmem:[#allocation2 + $0x44] sm:$0x1] }
  0x20   : > { %v470_v37 = vrot.slane %v466_v23, 4  ;;  %v477_v38 = vor.u32 %v475_v17, %v474_v27  ;;  %v478_v43 = vrot.slane %v474_v27, 4  ;;  %v485_v50 = vor.u32 %v483_v29, %v482_v28 }
  0x21   : > { %v539_v41 = vsel %vm2818_vm7, %v461_v30, %v538_v8  ;;  %v542_v42 = vsel %vm2723_vm5, %v462_v31, %v541_v11  ;;  %v545_v47 = vsel %vm2818_vm7, %v469_v36, %v544_v24  ;;  %v613_v53 = vor.u32 %v612_v33, %v609_v32 }
  0x22   : > { %540 = vst [vmem:[#allocation2 + $0x8] sm:$0xf] %v539_v41  ;;  %543 = vst [vmem:[#allocation2 + $0xc] sm:$0x1] %v542_v42  ;;  %v548_v48 = vsel %vm2723_vm5, %v470_v37, %v547_v26  ;;  %v551_v49 = vsel %vm2818_vm7, %v477_v38, %v550_v34  ;;  %v616_v54 = vshll.u32 %v2822_v35, 16  ;;  %v554_v55 = vsel %vm2723_vm5, %v478_v43, %v553_v39 }
  0x23   : > { %546 = vst [vmem:[#allocation2 + $0x10] sm:$0xf] %v545_v47  ;;  %549 = vst [vmem:[#allocation2 + $0x14] sm:$0x1] %v548_v48  ;;  %v486_v56 = vrot.slane %v482_v28, 4  ;;  %v557_v57 = vsel %vm2818_vm7, %v485_v50, %v556_v44  ;;  %v419_v58 = vmax.f32 %v411_v40, 0.0  ;;  %v2410_v63 = vunpack.c.l.bf16 %v2837_v52 }
  0x24   : > { %552 = vst [vmem:[#allocation2 + $0x18] sm:$0xf] %v551_v49  ;;  %555 = vst [vmem:[#allocation2 + $0x1c] sm:$0x1] %v554_v55  ;;  %v361_v59 = vsel %vm2733_vm6, 0, %v360_v45  ;;  %v614_v1 = vrot.slane %v613_v53, 4 }
  0x25   : > { %vm603_vm8 = vsmask.f32 3328  ;;  %vm604_vm9 = vsmask.f32 7440  ;;  %558 = vst [vmem:[#allocation2 + $0x20] sm:$0xf] %v557_v57  ;;  %v560_v62 = vsel %vm2723_vm5, %v486_v56, %v559_v51  ;;  %v2868_v14 = vpack.c.bf16 %v419_v58, %v419_v58 }
  0x26   : > { %362 = vst [vmem:[#allocation2 + $0x3c] sm:$0x1] %v361_v59  ;;  %561 = vst [vmem:[#allocation2 + $0x24] sm:$0x1] %v560_v62  ;;  %v618_v2 = vrot.slane %v616_v54, 5  ;;  %v332_v4 = vsel %vm2723_vm5, 0, %v331_v60  ;;  %v398_v19 = vmul.f32 %v2410_v63, %v2740_v10 }
  0x27   : > { %v364_v5 = vsel %vm2733_vm6, 0, %v363_v61  ;;  %vm2856_vm10 = vmor %vm603_vm8, %vm604_vm9  ;;  %v2862_v8 = vsel %vm744_vm0, %v2754_v12, 0  ;;  %v2866_v11 = vsel %vm744_vm0, %v2771_v21, 0  ;;  %333 = vst [vmem:[#allocation2 + $0x40] sm:$0x1] %v332_v4  ;;  %v420_v23 = vmax.f32 %v2850_v0, 0.0 }
  0x28   : > { %365 = vst [vmem:[#allocation2 + $0x44] sm:$0x1] %v364_v5  ;;  %v619_v24 = vsel %vm2856_vm10, %v614_v1, %v618_v2  ;;  %v488_v33 = vshrl.u32 %v2868_v14, 16  ;;  %v413_v45 = vadd.f32 %v2760_v15, %v398_v19  ;;  %vm938_vm13 = vcmask 1046532  }
  0x29   : > { %v2870_v16 = vld [vmem:[#allocation2 + $0x8] sm:$0xf]  ;;  %v2872_v17 = vld [vmem:[#allocation2 + $0xc] sm:$0x1]  ;;  %vm2956_vm14 = vmor %vm937_vm12, %vm938_vm13 }
  0x2a   : > { %v1190_v18 = vld [vmem:[#allocation2 + $0x8] sm:$0xf]  ;;  %v621_v20 = vshrl.u32 %v2870_v16, 16  ;;  %v624_v12 = vshll.u32 %v2870_v16, 16  ;;  %v630_v22 = vshll.u32 %v2872_v17, 16 }
  0x2b   : > { %v2878_v21 = vld [vmem:[#allocation2 + $0xc] sm:$0x1]  ;;  %v1192_v26 = vld [vmem:[#allocation2 + $0x10] sm:$0xf]  ;;  %v2883_v27 = vld [vmem:[#allocation2 + $0x14] sm:$0x1] }
  0x2c   : > { %v1207_v28 = vshrl.u32 %v1190_v18, 16  ;;  %v1210_v29 = vshll.u32 %v1190_v18, 16  ;;  %v623_v30 = vrot.slane %v621_v20, 4  ;;  %v626_v31 = vrot.slane %v624_v12, 5  ;;  %v2887_v39 = vld [vmem:[#allocation2 + $0x10] sm:$0xf] }
  0x2d   : > { %v1216_v32 = vshll.u32 %v2878_v21, 16  ;;  %v1221_v37 = vshrl.u32 %v1192_v26, 16  ;;  %v1224_v38 = vshll.u32 %v1192_v26, 16  ;;  %v632_v41 = vrot.slane %v630_v22, 5  ;;  %v2890_v43 = vld [vmem:[#allocation2 + $0x18] sm:$0xf] }
  0x2e   : > { %v1209_v34 = vrot.slane %v1207_v28, 4  ;;  %v1212_v36 = vrot.slane %v1210_v29, 5  ;;  %v627_v40 = vor.u32 %v626_v31, %v623_v30  ;;  %v1230_v42 = vshll.u32 %v2883_v27, 16  ;;  %v2892_v44 = vld [vmem:[#allocation2 + $0x14] sm:$0x1] }
  0x2f   : > { %v1218_v47 = vrot.slane %v1216_v32, 5  ;;  %v1223_v48 = vrot.slane %v1221_v37, 4  ;;  %v1226_v49 = vrot.slane %v1224_v38, 5  ;;  %v635_v53 = vshrl.u32 %v2887_v39, 16  ;;  %v2897_v57 = vld [vmem:[#allocation2 + $0x1c] sm:$0x1] }
  0x30   : > { %v1213_v46 = vor.u32 %v1212_v36, %v1209_v34  ;;  %v628_v50 = vrot.slane %v627_v40, 4  ;;  %v1232_v51 = vrot.slane %v1230_v42, 5  ;;  %v638_v54 = vshll.u32 %v2887_v39, 16  ;;  %v1194_v0 = vld [vmem:[#allocation2 + $0x18] sm:$0xf] }
  0x31   : > { %v1227_v56 = vor.u32 %v1226_v49, %v1223_v48  ;;  %v644_v58 = vshll.u32 %v2892_v44, 16  ;;  %v649_v59 = vshrl.u32 %v2890_v43, 16  ;;  %v637_v61 = vrot.slane %v635_v53, 4  ;;  %v2906_v18 = vld [vmem:[#allocation2 + $0x1c] sm:$0x1] }
  0x32   : > { %v1214_v55 = vrot.slane %v1213_v46, 4  ;;  %v633_v60 = vsel %vm2856_vm10, %v628_v50, %v632_v41  ;;  %v640_v62 = vrot.slane %v638_v54, 5  ;;  %v652_v63 = vshll.u32 %v2890_v43, 16  ;;  %v1196_v26 = vld [vmem:[#allocation2 + $0x20] sm:$0xf] }
  0x33   : > { %v2287_v1 = vcombine.low %v619_v24, %v633_v60  ;;  %v1228_v4 = vrot.slane %v1227_v56, 4  ;;  %v646_v5 = vrot.slane %v644_v58, 5  ;;  %v651_v20 = vrot.slane %v649_v59, 4  ;;  %v2912_v29 = vld [vmem:[#allocation2 + $0x24] sm:$0x1] }
  0x34   : > { %v1219_v2 = vsel %vm2856_vm10, %v1214_v55, %v1218_v47  ;;  %v641_v19 = vor.u32 %v640_v62, %v637_v61  ;;  %v654_v12 = vrot.slane %v652_v63, 5  ;;  %v658_v22 = vshll.u32 %v2897_v57, 16  ;;  %v2921_v48 = vld [vmem:[#allocation2 + $0x20] sm:$0xf]  ;;  %v562_v58 = vld [vmem:[#allocation2 + $0x28] sm:$0xf] }
  0x35   : > { %2462 = vmatprep.mubr.msk.bf16.mxu1 %vm731_vm11, %v2287_v1  ;;  %v1233_v28 = vsel %vm2856_vm10, %v1228_v4, %v1232_v51  ;;  %v1235_v24 = vshrl.u32 %v1194_v0, 16  ;;  %v421_v30 = vmax.f32 %v413_v45, 0.0  ;;  %v2914_v31 = vpack.c.bf16 %v420_v23, %v420_v23  ;;  %v565_v59 = vld [vmem:[#allocation2 + $0x2c] sm:$0x1] }
  0x36   : > { %v2327_v32 = vcombine.low %v1219_v2, %v1233_v28  ;;  %v642_v34 = vrot.slane %v641_v19, 4  ;;  %v655_v36 = vor.u32 %v654_v12, %v651_v20  ;;  %v660_v37 = vrot.slane %v658_v22, 5  ;;  %v2935_v19 = vld [vmem:[%s3314_s3 + $0x8] sm:$0xf] }
  0x37   : > { %v1237_v38 = vrot.slane %v1235_v24, 4  ;;  %v1238_v40 = vshll.u32 %v1194_v0, 16  ;;  %v1244_v41 = vshll.u32 %v2906_v18, 16  ;;  %v1249_v42 = vshrl.u32 %v1196_v26, 16 }
  0x38   : > { %2502 = vmatprep.mubr.msk.bf16.mxu0 %vm731_vm11, %v2327_v32  ;;  %v647_v46 = vsel %vm2856_vm10, %v642_v34, %v646_v5  ;;  %v656_v47 = vrot.slane %v655_v36, 4  ;;  %v1252_v45 = vshll.u32 %v1196_v26, 16  ;;  %v1258_v23 = vshll.u32 %v2912_v29, 16  ;;  %v1419_v32 = vld [vmem:[#allocation2 + $0x8] sm:$0xe] }
  0x39   : > { %v1240_v49 = vrot.slane %v1238_v40, 5  ;;  %v1251_v50 = vrot.slane %v1249_v42, 4  ;;  %v491_v51 = vshll.u32 %v2868_v14, 16  ;;  %v2411_v53 = vunpack.c.h.bf16 %v2837_v52 }
  0x3a   : > { %v661_v54 = vsel %vm2856_vm10, %v656_v47, %v660_v37  ;;  %v1246_v55 = vrot.slane %v1244_v41, 5  ;;  %v1254_v56 = vrot.slane %v1252_v45, 5  ;;  %v2394_v60 = vpack.c.bf16 %v421_v30, %v421_v30  ;;  %v568_v30 = vld [vmem:[#allocation2 + $0x30] sm:$0xf] }
  0x3b   : > { %v2288_v61 = vcombine.low %v647_v46, %v661_v54  ;;  %v1241_v62 = vor.u32 %v1240_v49, %v1237_v38  ;;  %v490_v63 = vrot.slane %v488_v33, 7  ;;  %v663_v0 = vshrl.u32 %v2921_v48, 16  ;;  %v1420_v38 = vld [vmem:[#allocation2 + $0x10] sm:$0xe]  ;;  %v2383_v46 = vld [vmem:[%s3315_s4] ss:$0 sm:$0xff] }
  0x3c   : > { %v1255_v1 = vor.u32 %v1254_v56, %v1251_v50  ;;  %v1260_v2 = vrot.slane %v1258_v23, 5  ;;  %v666_v4 = vshll.u32 %v2921_v48, 16  ;;  %v496_v5 = vshrl.u32 %v2914_v31, 16  ;;  %v1585_v50 = vld [vmem:[%s3314_s3 + $0x18] sm:$0xf] }
  0x3d   : > { %v1445_v20 = vrot.slane %v2878_v21, 5  ;;  %2463 = vmatmul.mubr.msk.bf16.vlgmr.msra.gmra.mrb[0].mxu1 %vm731_vm11, %v2288_v61  ;;  %v1242_v12 = vrot.slane %v1241_v62, 4  ;;  %v493_v14 = vor.u32 %v491_v51, %v490_v63  ;;  %v494_v33 = vrot.slane %v490_v63, 4  ;;  %v1422_v51 = vld [vmem:[#allocation2 + $0x20] sm:$0xe] }
  0x3e   : > { %v1449_v22 = vrot.slane %v2883_v27, 5  ;;  %2471 = vmatpush3.bf16.msra.mxu1 %v2862_v8  ;;  %v1256_v26 = vrot.slane %v1255_v1, 4  ;;  %v2941_v28 = vrot.slane %v663_v0, 4  ;;  %v498_v24 = vrot.slane %v496_v5, 7  ;;  %v571_v27 = vld [vmem:[#allocation2 + $0x34] sm:$0x1] }
  0x3f   : > { %v1247_v34 = vsel %vm2856_vm10, %v1242_v12, %v1246_v55  ;;  %v563_v21 = vsel %vm2818_vm7, %v493_v14, %v562_v58  ;;  %v566_v36 = vsel %vm2723_vm5, %v494_v33, %v565_v59  ;;  %v499_v37 = vshll.u32 %v2914_v31, 16  ;;  %2618 = vmatprep.subr.msk.bf16.mxu1 %vm744_vm0, %v2935_v19  ;;  %v1421_v31 = vld [vmem:[#allocation2 + $0x18] sm:$0xe]  ;;  %v2964_v55 = vld [vmem:[#allocation2 + $0x24] sm:$0x1] }
  0x40   : > { %v1261_v8 = vsel %vm2856_vm10, %v1256_v26, %v1260_v2  ;;  %564 = vst [vmem:[#allocation2 + $0x28] sm:$0xf] %v563_v21  ;;  %567 = vst [vmem:[#allocation2 + $0x2c] sm:$0x1] %v566_v36  ;;  %v668_v40 = vrot.slane %v666_v4, 5  ;;  %v502_v41 = vrot.slane %v498_v24, 4  ;;  %v399_v33 = vmul.f32 %v2411_v53, %v2740_v10 }
  0x41   : > { %v504_v42 = vshrl.u32 %v2394_v60, 16  ;;  %v2328_v47 = vcombine.low %v1247_v34, %v1261_v8  ;;  %v501_v45 = vor.u32 %v499_v37, %v498_v24  ;;  %v507_v23 = vshll.u32 %v2394_v60, 16  ;;  %v574_v62 = vld [vmem:[#allocation2 + $0x38] sm:$0xf]  ;;  %v577_v63 = vld [vmem:[#allocation2 + $0x3c] sm:$0x1] }
  0x42   : > { %v2335_v49 = vrot.slane %v1419_v32, 9  ;;  %v1453_v54 = vrot.slane %v2906_v18, 5  ;;  %v572_v58 = vsel %vm2723_vm5, %v502_v41, %v571_v27  ;;  %v2336_v59 = vrot.slane %v1420_v38, 9 }
  0x43   : > { %v506_v56 = vrot.slane %v504_v42, 7  ;;  %2503 = vmatmul.mubr.msk.bf16.vlgmr.msra.gmra.mrb[0].mxu0 %vm731_vm11, %v2328_v47  ;;  %v1457_v61 = vrot.slane %v2912_v29, 5  ;;  %v569_v60 = vsel %vm2818_vm7, %v501_v45, %v568_v30  ;;  %573 = vst [vmem:[#allocation2 + $0x34] sm:$0x1] %v572_v58  ;;  %v2337_v0 = vrot.slane %v1421_v31, 9 }
  0x44   : > { %v1446_v18 = vsel %vm2956_vm14, %v2335_v49, %v1445_v20  ;;  %2511 = vmatpush3.bf16.msra.mxu0 %v2866_v11  ;;  %570 = vst [vmem:[#allocation2 + $0x30] sm:$0xf] %v569_v60  ;;  %v1450_v4 = vsel %vm2956_vm14, %v2336_v59, %v1449_v22  ;;  %v2338_v5 = vrot.slane %v1422_v51, 9  ;;  %v669_v29 = vor.u32 %v668_v40, %v2941_v28  ;;  %v3016_v58 = vld [vmem:[%s3314_s3 + $0x1c] sm:$0xf] }
  0x45   : > { %v509_v1 = vor.u32 %v507_v23, %v506_v56  ;;  %v510_v2 = vrot.slane %v506_v56, 4  ;;  %v672_v12 = vshll.u32 %v2964_v55, 16  ;;  %v2343_v14 = vcombine.low %v1446_v18, %v1450_v4  ;;  %2623 = vmatprep.subr.msk.bf16.mxu0 %vm744_vm0, %v1585_v50 }
  0x46   : > { %v1454_v28 = vsel %vm2956_vm14, %v2337_v0, %v1453_v54  ;;  %v1458_v10 = vsel %vm2956_vm14, %v2338_v5, %v1457_v61  ;;  %v670_v34 = vrot.slane %v669_v29, 4  ;;  %v414_v37 = vadd.f32 %v2760_v15, %v399_v33 }
  0x47   : > { %v575_v20 = vsel %vm2818_vm7, %v509_v1, %v574_v62  ;;  %v578_v11 = vsel %vm2723_vm5, %v510_v2, %v577_v63  ;;  %v2987_v26 = vld [vmem:[#allocation2 + $0x28] sm:$0xf]  ;;  %v2989_v22 = vld [vmem:[#allocation2 + $0x2c] sm:$0x1]  ;;  %2512 = vmatprep.mubr.msk.bf16.mxu0 %vm731_vm11, %v2343_v14  ;;  %v674_v21 = vrot.slane %v672_v12, 5  ;;  %v2344_v47 = vcombine.low %v1454_v28, %v1458_v10 }
  0x48   : > { %576 = vst [vmem:[#allocation2 + $0x38] sm:$0xf] %v575_v20  ;;  %579 = vst [vmem:[#allocation2 + $0x3c] sm:$0x1] %v578_v11  ;;  %v2994_v24 = vld [vmem:[#allocation2 + $0x2c] sm:$0x1] }
  0x49   : > { %v677_v30 = vshrl.u32 %v2987_v26, 16  ;;  %v680_v32 = vshll.u32 %v2987_v26, 16  ;;  %v686_v52 = vshll.u32 %v2989_v22, 16  ;;  %v1423_v53 = vld [vmem:[#allocation2 + $0x28] sm:$0xe]  ;;  %v1461_v36 = vrot.slane %v2994_v24, 5 }
  0x4a   : > { %v3003_v40 = vld [vmem:[#allocation2 + $0x34] sm:$0x1]  ;;  %v2339_v41 = vrot.slane %v1423_v53, 9  ;;  %v422_v23 = vmax.f32 %v414_v37, 0.0  ;;  %v1619_v61 = vsel %vm744_vm0, %v1585_v50, 0  ;;  %v675_v63 = vsel %vm2856_vm10, %v670_v34, %v674_v21 }
  0x4b   : > { %v679_v27 = vrot.slane %v677_v30, 4  ;;  %v682_v38 = vrot.slane %v680_v32, 5  ;;  %v688_v8 = vrot.slane %v686_v52, 5  ;;  %v3005_v42 = vld [vmem:[#allocation2 + $0x30] sm:$0xf]  ;;  %v700_v31 = vshll.u32 %v3003_v40, 16 }
  0x4c   : > { %v3008_v45 = vld [vmem:[#allocation2 + $0x34] sm:$0x1]  ;;  %v691_v51 = vshrl.u32 %v3005_v42, 16  ;;  %v694_v54 = vshll.u32 %v3005_v42, 16  ;;  %v1424_v15 = vld [vmem:[#allocation2 + $0x30] sm:$0xe]  ;;  %v2395_v62 = vpack.c.bf16 %v422_v23, %v422_v23  ;;  %v1462_v4 = vsel %vm2956_vm14, %v2339_v41, %v1461_v36 }
  0x4d   : > { %v683_v49 = vor.u32 %v682_v38, %v679_v27  ;;  %v1465_v56 = vrot.slane %v3008_v45, 5  ;;  %v702_v59 = vrot.slane %v700_v31, 5  ;;  %v2340_v60 = vrot.slane %v1424_v15, 9  ;;  %v913_v34 = vld [vmem:[#allocation2] sm:$0xe] }
  0x4e   : > { %v693_v2 = vrot.slane %v691_v51, 4  ;;  %v696_v5 = vrot.slane %v694_v54, 5  ;;  %v512_v11 = vshrl.u32 %v2395_v62, 16  ;;  %v515_v33 = vshll.u32 %v2395_v62, 16  ;;  %v914_v21 = vld [vmem:[#allocation2 + $0x8] sm:$0xe] }
  0x4f   : > { %v684_v18 = vrot.slane %v683_v49, 4  ;;  %v3021_v0 = vld [vmem:[#allocation2 + $0x38] sm:$0xf]  ;;  %v3023_v1 = vld [vmem:[#allocation2 + $0x3c] sm:$0x1]  ;;  %2513 = vmatmul.mubr.msk.bf16.vlgmr.msra.gmra.mrb[0].mxu0 %vm731_vm11, %v2344_v47  ;;  %v1466_v20 = vsel %vm2956_vm14, %v2340_v60, %v1465_v56  ;;  %v942_v41 = vrot.slane %v2822_v35, 5 }
  0x50   : > { %v705_v29 = vshrl.u32 %v3021_v0, 16  ;;  %v708_v12 = vshll.u32 %v3021_v0, 16  ;;  %v714_v50 = vshll.u32 %v3023_v1, 16  ;;  %2521 = vmatpush3.bf16.msra.mxu0 %v1619_v61  ;;  %v697_v30 = vor.u32 %v696_v5, %v693_v2  ;;  %v580_v38 = vld [vmem:[#allocation2 + $0x40] sm:$0xf] }
  0x51   : > { %v689_v14 = vsel %vm2856_vm10, %v684_v18, %v688_v8  ;;  %2624 = vmatprep.subr.msk.bf16.mxu0 %vm744_vm0, %v3016_v58  ;;  %v2345_v10 = vcombine.low %v1462_v4, %v1466_v20  ;;  %v514_v53 = vrot.slane %v512_v11, 7  ;;  %v583_v8 = vld [vmem:[#allocation2 + $0x44] sm:$0x1]  ;;  %v946_v31 = vrot.slane %v2872_v17, 5  ;;  %v334_v49 = vld [vmem:[#allocation2 + $0x48] sm:$0x1] }
  0x52   : > { %v2289_v28 = vcombine.low %v675_v63, %v689_v14  ;;  %v707_v32 = vrot.slane %v705_v29, 4  ;;  %v710_v52 = vrot.slane %v708_v12, 5  ;;  %v698_v36 = vrot.slane %v697_v30, 4  ;;  %v915_v61 = vld [vmem:[#allocation2 + $0x10] sm:$0xe] }
  0x53   : > { %v716_v27 = vrot.slane %v714_v50, 5  ;;  %2516 = vmatprep.mubr.msk.bf16.mxu0 %vm731_vm11, %v2345_v10  ;;  %v517_v47 = vor.u32 %v515_v33, %v514_v53  ;;  %v518_v23 = vrot.slane %v514_v53, 4  ;;  %v2303_v15 = vrot.slane %v913_v34, 9  ;;  %v3047_v62 = vld [vmem:[#allocation2 + $0x3c] sm:$0x1] }
  0x54   : > { %2466 = vmatprep.mubr.msk.bf16.mxu1 %vm731_vm11, %v2289_v28  ;;  %v711_v37 = vor.u32 %v710_v52, %v707_v32  ;;  %v703_v51 = vsel %vm2856_vm10, %v698_v36, %v702_v59  ;;  %v2304_v56 = vrot.slane %v914_v21, 9  ;;  %v916_v17 = vld [vmem:[#allocation2 + $0x18] sm:$0xe]  ;;  %v2295_v18 = vcombine.low %v2812_v13, %v2870_v16  ;;  %v1694_v4 = vld [vmem:[#allocation2 + $0x10] sm:$0xf] }
  0x55   : > { %v581_v60 = vsel %vm2818_vm7, %v517_v47, %v580_v38  ;;  %v584_v35 = vsel %vm2723_vm5, %v518_v23, %v583_v8  ;;  %v1425_v59 = vld [vmem:[#allocation2 + $0x38] sm:$0xe]  ;;  %v335_v2 = vsel %vm2723_vm5, 0, %v334_v49  ;;  %v950_v5 = vrot.slane %v2892_v44, 5  ;;  %v1081_v44 = vld [vmem:[%s3314_s3 + $0xc] sm:$0xf] }
  0x56   : > { %v712_v54 = vrot.slane %v711_v37, 4  ;;  %582 = vst [vmem:[#allocation2 + $0x40] sm:$0xf] %v581_v60  ;;  %585 = vst [vmem:[#allocation2 + $0x44] sm:$0x1] %v584_v35  ;;  %v954_v29 = vrot.slane %v2897_v57, 5  ;;  %v3059_v12 = vsel %vm2956_vm14, %v2303_v15, %v942_v41  ;;  %v3063_v13 = vsel %vm2956_vm14, %v2304_v56, %v946_v31 }
  0x57   : > { %336 = vst [vmem:[#allocation2 + $0x48] sm:$0x1] %v335_v2  ;;  %v1696_v16 = vld [vmem:[#allocation2 + $0x18] sm:$0xf]  ;;  %v2341_v6 = vrot.slane %v1425_v59, 9  ;;  %v1469_v50 = vrot.slane %v3047_v62, 5  ;;  %v2296_v52 = vcombine.low %v2887_v39, %v2890_v43  ;;  %v2297_v10 = vcombine.low %v2921_v48, %v2987_v26 }
  0x58   : > { %v717_v63 = vsel %vm2856_vm10, %v712_v54, %v716_v27  ;;  %v2305_v14 = vrot.slane %v915_v61, 9  ;;  %v2306_v20 = vrot.slane %v916_v17, 9  ;;  %v1711_v57 = vshrl.u32 %v1694_v4, 16  ;;  %v917_v30 = vld [vmem:[#allocation2 + $0x20] sm:$0xe] }
  0x59   : > { %v2290_v25 = vcombine.low %v703_v51, %v717_v63  ;;  %v1714_v11 = vshll.u32 %v1694_v4, 16  ;;  %v998_v33 = vsel %vm744_vm0, %v2935_v19, 0  ;;  %v3075_v28 = vsel %vm744_vm0, %v3016_v58, 0  ;;  %v3083_v34 = vld [vmem:[#allocation2 + $0x28] sm:$0xe] }
  0x5a   : > { %v1725_v32 = vshrl.u32 %v1696_v16, 16  ;;  %v2311_v53 = vcombine.low %v3059_v12, %v3063_v13  ;;  %v3085_v21 = vld [vmem:[#allocation2 + $0x14] sm:$0x1]  ;;  %v1728_v19 = vshll.u32 %v1696_v16, 16  ;;  %v1698_v36 = vld [vmem:[#allocation2 + $0x20] sm:$0xf]  ;;  %v1470_v27 = vsel %vm2956_vm14, %v2341_v6, %v1469_v50 }
  0x5b   : > { %2467 = vmatmul.mubr.msk.bf16.gmra.mrb[4].mxu1 %vm731_vm11, %v2290_v25  ;;  %v2298_v39 = vcombine.low %v3005_v42, %v3021_v0  ;;  %v3095_v43 = vsel %vm2956_vm14, %v2305_v14, %v950_v5  ;;  %v3099_v48 = vsel %vm2956_vm14, %v2306_v20, %v954_v29  ;;  %v3101_v26 = vld [vmem:[#allocation2 + $0x1c] sm:$0x1]  ;;  %v1713_v41 = vrot.slane %v1711_v57, 4  ;;  %v1700_v51 = vld [vmem:[#allocation2 + $0x28] sm:$0xf] }
  0x5c   : > { %2472 = vmatprep.mubr.msk.bf16.mxu1 %vm731_vm11, %v2295_v18  ;;  %v1716_v31 = vrot.slane %v1714_v11, 5  ;;  %v3105_v47 = vsel %vm744_vm0, %v1081_v44, 0  ;;  %v1727_v23 = vrot.slane %v1725_v32, 4  ;;  %v1730_v49 = vrot.slane %v1728_v19, 5  ;;  %v2638_v56 = vld [vmem:[#allocation2 + $0x10] ss:$8 sps:$4 sm:$0xff]  }
  0x5d   : > { %v3087_v37 = vld [vmem:[#allocation2 + $0x44] sm:$0x1]  ;;  %v1426_v58 = vld [vmem:[#allocation2 + $0x40] sm:$0xe]  ;;  %v1739_v54 = vshrl.u32 %v1698_v36, 16  ;;  %v2307_v61 = vrot.slane %v917_v30, 9  ;;  %v2312_v63 = vcombine.low %v3095_v43, %v3099_v48 }
  0x5e   : > { %v2342_v38 = vrot.slane %v1426_v58, 9  ;;  %v1473_v8 = vrot.slane %v3087_v37, 5  ;;  %v958_v60 = vrot.slane %v2964_v55, 5  ;;  %v1742_v35 = vshll.u32 %v1698_v36, 16  ;;  %v3114_v59 = vld [vmem:[#allocation2 + $0x30] sm:$0xe] }
  0x5f   : > { %v2308_v18 = vrot.slane %v3083_v34, 9  ;;  %v1720_v2 = vshll.u32 %v3085_v21, 16  ;;  %v1702_v25 = vld [vmem:[#allocation2 + $0x30] sm:$0xf]  ;;  %v1717_v4 = vor.u32 %v1716_v31, %v1713_v41  ;;  %v1731_v5 = vor.u32 %v1730_v49, %v1727_v23  ;;  %v3119_v29 = vld [vmem:[#allocation2 + $0x24] sm:$0x1] }
  0x60   : > { %v1474_v15 = vsel %vm2956_vm14, %v2342_v38, %v1473_v8  ;;  %v1734_v55 = vshll.u32 %v3101_v26, 16  ;;  %v1753_v16 = vshrl.u32 %v1700_v51, 16  ;;  %v962_v6 = vrot.slane %v2989_v22, 5  ;;  %v3124_v50 = vld [vmem:[#allocation2 + $0x2c] sm:$0x1] }
  0x61   : > { %v2346_v17 = vcombine.low %v1470_v27, %v1474_v15  ;;  %v1741_v14 = vrot.slane %v1739_v54, 4  ;;  %v1744_v20 = vrot.slane %v1742_v35, 5  ;;  %v1756_v57 = vshll.u32 %v1700_v51, 16  ;;  %v366_v11 = vld [vmem:[#allocation2 + $0x4c] sm:$0x1] }
  0x62   : > { %v966_v30 = vrot.slane %v3003_v40, 5  ;;  %v1755_v32 = vrot.slane %v1753_v16, 4  ;;  %v2639_v34 = vld [vmem:[#allocation2 + $0x20] ss:$8 sps:$4 sm:$0xff]   ;;  %v1722_v22 = vrot.slane %v1720_v2, 5  ;;  %v1770_v36 = vshll.u32 %v1702_v25, 16 }
  0x63   : > { %2473 = vmatmul.mubr.msk.bf16.vlgmr.msra.gmra.mrb[0].mxu1 %vm731_vm11, %v2296_v52  ;;  %2517 = vmatmul.mubr.msk.bf16.gmra.mrb[4].mxu0 %vm731_vm11, %v2346_v17  ;;  %v1704_v52 = vld [vmem:[#allocation2 + $0x38] sm:$0xf]  ;;  %v1758_v19 = vrot.slane %v1756_v57, 5  ;;  %v1718_v38 = vrot.slane %v1717_v4, 4  ;;  %v1732_v8 = vrot.slane %v1731_v5, 4  ;;  %v1736_v41 = vrot.slane %v1734_v55, 5 }
  0x64   : > { %2481 = vmatpush3.bf16.msra.mxu1 %v998_v33  ;;  %2476 = vmatprep.mubr.msk.bf16.mxu1 %vm731_vm11, %v2297_v10  ;;  %v2309_v33 = vrot.slane %v3114_v59, 9  ;;  %v1767_v10 = vshrl.u32 %v1702_v25, 16  ;;  %v2640_v58 = vld [vmem:[#allocation2 + $0x30] ss:$8 sps:$4 sm:$0xff]   ;;  %v1748_v31 = vshll.u32 %v3119_v29, 16  ;;  %v1745_v23 = vor.u32 %v1744_v20, %v1741_v14 }
  0x65   : > { %2619 = vmatprep.subr.msk.bf16.mxu1 %vm744_vm0, %v1081_v44  ;;  %2522 = vmatprep.mubr.msk.bf16.mxu0 %vm731_vm11, %v2638_v56  ;;  %v3131_v44 = vsel %vm2956_vm14, %v2307_v61, %v958_v60  ;;  %v920_v27 = vld [vmem:[#allocation2 + $0x38] sm:$0xe]  ;;  %v1762_v40 = vshll.u32 %v3124_v50, 16  ;;  %v1781_v49 = vshrl.u32 %v1704_v52, 16  ;;  %v1784_v51 = vshll.u32 %v1704_v52, 16 }
  0x66   : > { %v1706_v54 = vld [vmem:[#allocation2 + $0x40] sm:$0xf]  ;;  %v1759_v15 = vor.u32 %v1758_v19, %v1755_v32  ;;  %v1769_v56 = vrot.slane %v1767_v10, 4  ;;  %v1772_v61 = vrot.slane %v1770_v36, 5  ;;  %v367_v60 = vsel %vm2733_vm6, 0, %v366_v11 }
  0x67   : > { %v1708_v35 = vld [vmem:[#allocation2 + $0x48] sm:$0xf]  ;;  %v2310_v17 = vrot.slane %v920_v27, 9  ;;  %v970_v59 = vrot.slane %v3023_v1, 5  ;;  %v3142_v2 = vld [vmem:[#allocation2 + $0x34] sm:$0x1]  ;;  %v963_v9 = vsel %vm2956_vm14, %v2308_v18, %v962_v6  ;;  %v1723_v42 = vsel %vm2856_vm10, %v1718_v38, %v1722_v22 }
  0x68   : > { %v1783_v25 = vrot.slane %v1781_v49, 4  ;;  %v1786_v4 = vrot.slane %v1784_v51, 5  ;;  %368 = vst [vmem:[#allocation2 + $0x4c] sm:$0x1] %v367_v60  ;;  %v3155_v0 = vld [vmem:[%s3314_s3 + $0x20] sm:$0xf]  ;;  %v1737_v12 = vsel %vm2856_vm10, %v1732_v8, %v1736_v41  ;;  %v1773_v6 = vor.u32 %v1772_v61, %v1769_v56 }
  0x69   : > { %v3157_v1 = vld [vmem:[#allocation2 + $0x3c] sm:$0x1]  ;;  %v1798_v5 = vshll.u32 %v1706_v54, 16  ;;  %v1746_v13 = vrot.slane %v1745_v23, 4  ;;  %v1809_v18 = vshrl.u32 %v1708_v35, 16  ;;  %v1760_v55 = vrot.slane %v1759_v15, 4 }
  0x6a   : > { %v1764_v16 = vrot.slane %v1762_v40, 5  ;;  %v1776_v14 = vshll.u32 %v3142_v2, 16  ;;  %v967_v20 = vsel %vm2956_vm14, %v2309_v33, %v966_v30  ;;  %v1787_v57 = vor.u32 %v1786_v4, %v1783_v25  ;;  %v3170_v32 = vld [vmem:[#allocation2 + $0x44] sm:$0x1]  ;;  %v2641_v19 = vld [vmem:[#allocation2 + $0x40] ss:$8 sps:$4 sm:$0xff]  }
  0x6b   : > { %2477 = vmatmul.mubr.msk.bf16.gmra.mrb[4].mxu1 %vm731_vm11, %v2298_v39  ;;  %v1795_v39 = vshrl.u32 %v1706_v54, 16  ;;  %2523 = vmatmul.mubr.msk.bf16.vlgmr.msra.gmra.mrb[0].mxu0 %vm731_vm11, %v2639_v34  ;;  %v1790_v11 = vshll.u32 %v3157_v1, 16  ;;  %v1812_v52 = vshll.u32 %v1708_v35, 16  ;;  %v1800_v34 = vrot.slane %v1798_v5, 5  ;;  %v1198_v27 = vld [vmem:[#allocation2 + $0x28] sm:$0xf] }
  0x6c   : > { %2482 = vmatprep.mubr.msk.bf16.mxu1 %vm731_vm11, %v2311_v53  ;;  %v1750_v53 = vrot.slane %v1748_v31, 5  ;;  %2531 = vmatpush3.bf16.msra.mxu0 %v3075_v28  ;;  %v2313_v28 = vcombine.low %v3131_v44, %v963_v9  ;;  %v1811_v22 = vrot.slane %v1809_v18, 4  ;;  %v971_v36 = vsel %vm2956_vm14, %v2310_v17, %v970_v59  ;;  %v1200_v49 = vld [vmem:[#allocation2 + $0x30] sm:$0xf]  ;;  %v1924_v61 = vld [vmem:[#allocation2 + $0x18] sm:$0xe] }
  0x6d   : > { %2526 = vmatprep.mubr.msk.bf16.mxu0 %vm731_vm11, %v2640_v58  ;;  %2625 = vmatprep.subr.msk.bf16.mxu0 %vm744_vm0, %v3155_v0  ;;  %v1797_v10 = vrot.slane %v1795_v39, 4  ;;  %v2359_v58 = vcombine.low %v1723_v42, %v1737_v12  ;;  %v1814_v30 = vrot.slane %v1812_v52, 5  ;;  %v1765_v38 = vsel %vm2856_vm10, %v1760_v55, %v1764_v16  ;;  %v1923_v56 = vld [vmem:[#allocation2 + $0x10] sm:$0xe] }
  0x6e   : > { %v1751_v33 = vsel %vm2856_vm10, %v1746_v13, %v1750_v53  ;;  %v1774_v8 = vrot.slane %v1773_v6, 4  ;;  %v1778_v41 = vrot.slane %v1776_v14, 5  ;;  %v1804_v44 = vshll.u32 %v3170_v32, 16  ;;  %v2646_v43 = vld [vmem:[%s3314_s3 + $0x10] sm:$0xf] }
  0x6f   : > { %v3179_v31 = vld [vmem:[#allocation2 + $0x4c] sm:$0x1]  ;;  %v1788_v23 = vrot.slane %v1787_v57, 4  ;;  %v1792_v40 = vrot.slane %v1790_v11, 5  ;;  %v1801_v51 = vor.u32 %v1800_v34, %v1797_v10  ;;  %v1815_v54 = vor.u32 %v1814_v30, %v1811_v22  ;;  %v2642_v5 = vld [vmem:[#allocation2 + $0x8] ss:$8 sps:$4 sm:$0xff]  }
  0x70   : > { %v1818_v15 = vshll.u32 %v3179_v31, 16  ;;  %v2314_v60 = vcombine.low %v967_v20, %v971_v36  ;;  %v2360_v35 = vcombine.low %v1751_v33, %v1765_v38  ;;  %v1263_v48 = vshrl.u32 %v1198_v27, 16  ;;  %v1925_v11 = vld [vmem:[#allocation2 + $0x20] sm:$0xe]  ;;  %v1926_v10 = vld [vmem:[#allocation2 + $0x28] sm:$0xe] }
  0x71   : > { %v1806_v17 = vrot.slane %v1804_v44, 5  ;;  %v1277_v59 = vshrl.u32 %v1200_v49, 16  ;;  %v1280_v25 = vshll.u32 %v1200_v49, 16  ;;  %v1793_v4 = vsel %vm2856_vm10, %v1788_v23, %v1792_v40  ;;  %v1202_v36 = vld [vmem:[#allocation2 + $0x38] sm:$0xf] }
  0x72   : > { %v2367_v9 = vrot.slane %v1923_v56, 9  ;;  %v1949_v42 = vrot.slane %v3085_v21, 5  ;;  %v2368_v39 = vrot.slane %v1924_v61, 9  ;;  %v1802_v12 = vrot.slane %v1801_v51, 4  ;;  %v2643_v33 = vld [vmem:[#allocation2 + $0x18] ss:$8 sps:$4 sm:$0xff]  }
  0x73   : > { %2483 = vmatmul.mubr.msk.bf16.vlgmr.msra.gmra.mrb[0].mxu1 %vm731_vm11, %v2312_v63  ;;  %2527 = vmatmul.mubr.msk.bf16.gmra.mrb[4].mxu0 %vm731_vm11, %v2641_v19  ;;  %v1779_v63 = vsel %vm2856_vm10, %v1774_v8, %v1778_v41  ;;  %v1816_v13 = vrot.slane %v1815_v54, 4  ;;  %v1820_v53 = vrot.slane %v1818_v15, 5  ;;  %v1953_v18 = vrot.slane %v3101_v26, 5  ;;  %v1927_v23 = vld [vmem:[#allocation2 + $0x30] sm:$0xe] }
  0x74   : > { %2491 = vmatpush3.bf16.msra.mxu1 %v3105_v47  ;;  %2486 = vmatprep.mubr.msk.bf16.mxu1 %vm731_vm11, %v2313_v28  ;;  %v1266_v47 = vshll.u32 %v1198_v27, 16  ;;  %v1265_v55 = vrot.slane %v1263_v48, 4  ;;  %v1279_v6 = vrot.slane %v1277_v59, 4  ;;  %v1282_v14 = vrot.slane %v1280_v25, 5  ;;  %v1928_v40 = vld [vmem:[#allocation2 + $0x38] sm:$0xe] }
  0x75   : > { %2621 = vmatprep.subr.msk.bf16.mxu1 %vm744_vm0, %v2646_v43  ;;  %2532 = vmatprep.mubr.msk.bf16.mxu0 %vm731_vm11, %v2359_v58  ;;  %v2361_v20 = vcombine.low %v1779_v63, %v1793_v4  ;;  %v2005_v57 = vsel %vm744_vm0, %v3155_v0, 0  ;;  %v1807_v21 = vsel %vm2856_vm10, %v1802_v12, %v1806_v17  ;;  %v1821_v52 = vsel %vm2856_vm10, %v1816_v13, %v1820_v53  ;;  %v1204_v58 = vld [vmem:[#allocation2 + $0x40] sm:$0xf] }
  0x76   : > { %v1268_v16 = vrot.slane %v1266_v47, 5  ;;  %v1950_v26 = vsel %vm2956_vm14, %v2367_v9, %v1949_v42  ;;  %v1954_v28 = vsel %vm2956_vm14, %v2368_v39, %v1953_v18  ;;  %v1272_v0 = vshll.u32 %v2994_v24, 16  ;;  %v2644_v24 = vld [vmem:[#allocation2 + $0x28] ss:$8 sps:$4 sm:$0xff]   ;;  %v2645_v39 = vld [vmem:[#allocation2 + $0x38] ss:$8 sps:$4 sm:$0xff]  }
  0x77   : > { %v1283_v22 = vor.u32 %v1282_v14, %v1279_v6  ;;  %v1286_v19 = vshll.u32 %v3008_v45, 16  ;;  %v2369_v30 = vrot.slane %v1925_v11, 9  ;;  %v1957_v27 = vrot.slane %v3119_v29, 5  ;;  %v1930_v9 = vld [vmem:[#allocation2 + $0x48] sm:$0xe] }
  0x78   : > { %v1269_v34 = vor.u32 %v1268_v16, %v1265_v55  ;;  %v2362_v38 = vcombine.low %v1807_v21, %v1821_v52  ;;  %v2375_v8 = vcombine.low %v1950_v26, %v1954_v28  ;;  %v2370_v41 = vrot.slane %v1926_v10, 9 }
  0x79   : > { %v1961_v44 = vrot.slane %v3124_v50, 5  ;;  %v1291_v49 = vshrl.u32 %v1202_v36, 16  ;;  %v1294_v51 = vshll.u32 %v1202_v36, 16  ;;  %v1305_v45 = vshrl.u32 %v1204_v58, 16 }
  0x7a   : > { %v1308_v54 = vshll.u32 %v1204_v58, 16  ;;  %v1270_v15 = vrot.slane %v1269_v34, 4  ;;  %v1274_v56 = vrot.slane %v1272_v0, 5  ;;  %v1284_v61 = vrot.slane %v1283_v22, 4 }
  0x7b   : > { %2487 = vmatmul.mubr.msk.bf16.gmra.mrb[4].mxu1 %vm731_vm11, %v2314_v60  ;;  %2533 = vmatmul.mubr.msk.bf16.vlgmr.msra.gmra.mrb[0].mxu0 %vm731_vm11, %v2360_v35  ;;  %v1288_v60 = vrot.slane %v1286_v19, 5  ;;  %v2371_v35 = vrot.slane %v1927_v23, 9  ;;  %v1965_v43 = vrot.slane %v3142_v2, 5  ;;  %v2372_v29 = vrot.slane %v1928_v40, 9 }
  0x7c   : > { %2492 = vmatprep.mubr.msk.bf16.mxu1 %vm731_vm11, %v2642_v5  ;;  %2541 = vmatpush3.bf16.msra.mxu0 %v2005_v57  ;;  %v1969_v48 = vrot.slane %v3157_v1, 5  ;;  %v1293_v50 = vrot.slane %v1291_v49, 4  ;;  %v1296_v47 = vrot.slane %v1294_v51, 5  ;;  %v1307_v63 = vrot.slane %v1305_v45, 4  ;;  %v1929_v5 = vld [vmem:[#allocation2 + $0x40] sm:$0xe] }
  0x7d   : > { %2536 = vmatprep.mubr.msk.bf16.mxu0 %vm731_vm11, %v2361_v20  ;;  %v1310_v17 = vrot.slane %v1308_v54, 5  ;;  %v1275_v59 = vsel %vm2856_vm10, %v1270_v15, %v1274_v56  ;;  %v1289_v2 = vsel %vm2856_vm10, %v1284_v61, %v1288_v60  ;;  %v1958_v1 = vsel %vm2956_vm14, %v2369_v30, %v1957_v27 }
  0x7e   : > { %v1966_v25 = vsel %vm2956_vm14, %v2371_v35, %v1965_v43  ;;  %v1970_v4 = vsel %vm2956_vm14, %v2372_v29, %v1969_v48  ;;  %v1300_v42 = vshll.u32 %v3047_v62, 16  ;;  %v1314_v12 = vshll.u32 %v3087_v37, 16 }
  0x7f   : > { %v2329_v13 = vcombine.low %v1275_v59, %v1289_v2  ;;  %v1297_v53 = vor.u32 %v1296_v47, %v1293_v50  ;;  %v1311_v18 = vor.u32 %v1310_v17, %v1307_v63  ;;  %v2377_v16 = vcombine.low %v1966_v25, %v1970_v4 }
  0x80   : > { %v2373_v6 = vrot.slane %v1929_v5, 9  ;;  %v1973_v14 = vrot.slane %v3170_v32, 5  ;;  %v2374_v20 = vrot.slane %v1930_v9, 9  ;;  %v1977_v57 = vrot.slane %v3179_v31, 5 }
  0x81   : > { %v1302_v11 = vrot.slane %v1300_v42, 5  ;;  %v1316_v21 = vrot.slane %v1314_v12, 5  ;;  %v1298_v62 = vrot.slane %v1297_v53, 4  ;;  %v1312_v52 = vrot.slane %v1311_v18, 4 }
  0x82   : > { %v1974_v37 = vsel %vm2956_vm14, %v2373_v6, %v1973_v14  ;;  %v1978_v32 = vsel %vm2956_vm14, %v2374_v20, %v1977_v57 }
  0x83   : > { %2493 = vmatmul.mubr.msk.bf16.vlgmr.msra.gmra.mrb[0].mxu1 %vm731_vm11, %v2643_v33  ;;  %2537 = vmatmul.mubr.msk.bf16.gmra.mrb[4].mxu0 %vm731_vm11, %v2362_v38  ;;  %v1303_v31 = vsel %vm2856_vm10, %v1298_v62, %v1302_v11  ;;  %v1317_v26 = vsel %vm2856_vm10, %v1312_v52, %v1316_v21  ;;  %v2378_v28 = vcombine.low %v1974_v37, %v1978_v32 }
  0x84   : > { %2551 = vmatpush3.bf16.msra.mxu1 %v2714_v3  ;;  %2496 = vmatprep.mubr.msk.bf16.mxu1 %vm731_vm11, %v2644_v24  ;;  %v1962_v3 = vsel %vm2956_vm14, %v2370_v41, %v1961_v44  ;;  %v2330_v10 = vcombine.low %v1303_v31, %v1317_v26 }
  0x85   : > { %2542 = vmatprep.mubr.msk.bf16.mxu0 %vm731_vm11, %v2375_v8  ;;  %v2376_v55 = vcombine.low %v1958_v1, %v1962_v3 }
  0x8b   : > { %2497 = vmatmul.mubr.msk.bf16.gmra.mrb[4].mxu1 %vm731_vm11, %v2645_v39  ;;  %2543 = vmatmul.mubr.msk.bf16.vlgmr.msra.gmra.mrb[0].mxu0 %vm731_vm11, %v2376_v55 }
  0x8c   : > { %2506 = vmatprep.mubr.msk.bf16.mxu1 %vm731_vm11, %v2329_v13  ;;  %2546 = vmatprep.mubr.msk.bf16.mxu0 %vm731_vm11, %v2377_v16 }
  0x93   : > { %2547 = vmatmul.mubr.msk.bf16.gmra.mrb[4].mxu0 %vm731_vm11, %v2378_v28 }
  0x97   : > { %2507 = vmatmul.mubr.msk.bf16.vlgmr.msra.gmra.mrb[4].mxu1 %vm731_vm11, %v2330_v10 }
 0x156   : > { %v2494_v34 = vpop.f32.mrb[0].mxu1 }
 0x157   : > { %v1151_v0 = vpop.f32.mrb[1].mxu1 }
 0x158   : > { %v2495_v22 = vpop.f32.mrb[2].mxu1 }
 0x159   : > { %v1154_v19 = vpop.f32.mrb[3].mxu1 }
 0x15e   : > { %v2544_v36 = vpop.f32.mrb[0].mxu0 }
 0x15f   : > { %v2552_v58 = vadd.f32 %v2544_v36, %v2494_v34  ;;  %v2041_v33 = vpop.f32.mrb[1].mxu0 }
 0x160   : > { %v2553_v7 = vadd.f32 %v2041_v33, %v1151_v0  ;;  %v2545_v30 = vpop.f32.mrb[2].mxu0 }
 0x161   : > { %v2089_v27 = vadd.f32 %v2552_v58, %v2383_v46  ;;  %v2554_v38 = vadd.f32 %v2545_v30, %v2495_v22  ;;  %v2044_v8 = vpop.f32.mrb[3].mxu0 }
 0x162   : > { %v2087_v41 = vadd.f32 %v2553_v7, %v2383_v46  ;;  %v2555_v44 = vadd.f32 %v2044_v8, %v1154_v19 }
 0x163   : > { %v2097_v23 = vpack.c.bf16 %v2089_v27, %v2089_v27  ;;  %v2090_v40 = vadd.f32 %v2554_v38, %v2383_v46  ;;  %v2135_v45 = vmul.f32 %v2089_v27, %v2089_v27  ;;  %v2114_v48 = vsel %vm731_vm11, %v2089_v27, 0.0 }
 0x164   : > { %v2095_v24 = vpack.c.bf16 %v2087_v41, %v2087_v41  ;;  %v2133_v49 = vmul.f32 %v2087_v41, %v2087_v41  ;;  %v2088_v51 = vadd.f32 %v2555_v44, %v2383_v46  ;;  %v2111_v15 = vsel %vm731_vm11, %v2087_v41, 0.0 }
 0x165   : > { %2105 = vst.msk [vmem:[%s3264_s15 + $0x8] sm:$0xf] %vm297_vm1, %v2097_v23  ;;  %v2098_v54 = vpack.c.bf16 %v2090_v40, %v2090_v40  ;;  %v2136_v47 = vmul.f32 %v2090_v40, %v2090_v40  ;;  %v2144_v9 = vsel %vm731_vm11, %v2135_v45, 0.0  ;;  %v2116_v42 = vsel %vm731_vm11, %v2090_v40, 0.0 }
 0x166   : > { %2103 = vst.msk [vmem:[%s3264_s15] sm:$0xf] %vm297_vm1, %v2095_v24  ;;  %v2096_v56 = vpack.c.bf16 %v2088_v51, %v2088_v51  ;;  %v2112_v61 = vsel %vm731_vm11, %v2088_v51, 0.0  ;;  %v2134_v60 = vmul.f32 %v2088_v51, %v2088_v51  ;;  %v2548_v35 = vpop.f32.mrb[4].mxu0  ;;  %v2141_v50 = vsel %vm731_vm11, %v2133_v49, 0.0 }
 0x167   : > { %2106 = vst.msk [vmem:[%s3264_s15 + $0xc] sm:$0xf] %vm297_vm1, %v2098_v54  ;;  %v2113_v43 = vadd.f32 %v2112_v61, %v2111_v15  ;;  %v2057_v29 = vpop.f32.mrb[5].mxu0  ;;  %v2146_v16 = vsel %vm731_vm11, %v2136_v47, 0.0 }
 0x168   : > { %2104 = vst.msk [vmem:[%s3264_s15 + $0x4] sm:$0xf] %vm297_vm1, %v2096_v56  ;;  %v2142_v63 = vsel %vm731_vm11, %v2134_v60, 0.0  ;;  %v2549_v59 = vpop.f32.mrb[6].mxu0 }
 0x169   : > { %v2115_v2 = vadd.f32 %v2114_v48, %v2113_v43  ;;  %v2143_v1 = vadd.f32 %v2142_v63, %v2141_v50  ;;  %v2060_v4 = vpop.f32.mrb[7].mxu0 }
 0x16a   : > { %v2508_v17 = vpop.f32.mrb[4].mxu1 }
 0x16b   : > { %v2556_v3 = vadd.f32 %v2548_v35, %v2508_v17  ;;  %v1396_v25 = vpop.f32.mrb[5].mxu1  ;;  %v2145_v12 = vadd.f32 %v2144_v9, %v2143_v1  ;;  %v2117_v53 = vadd.f32 %v2116_v42, %v2115_v2 }
 0x16c   : > { %v2557_v39 = vadd.f32 %v2057_v29, %v1396_v25  ;;  %v2509_v5 = vpop.f32.mrb[6].mxu1 }
 0x16d   : > { %v2093_v13 = vadd.f32 %v2556_v3, %v2383_v46  ;;  %v2558_v18 = vadd.f32 %v2549_v59, %v2509_v5  ;;  %v1399_v55 = vpop.f32.mrb[7].mxu1  ;;  %v2147_v57 = vadd.f32 %v2146_v16, %v2145_v12 }
 0x16e   : > { %v2091_v6 = vadd.f32 %v2557_v39, %v2383_v46  ;;  %v2559_v14 = vadd.f32 %v2060_v4, %v1399_v55 }
 0x16f   : > { %v2101_v20 = vpack.c.bf16 %v2093_v13, %v2093_v13  ;;  %v2094_v52 = vadd.f32 %v2558_v18, %v2383_v46  ;;  %v2139_v31 = vmul.f32 %v2093_v13, %v2093_v13  ;;  %v2122_v36 = vsel %vm731_vm11, %v2093_v13, 0.0 }
 0x170   : > { %v2099_v11 = vpack.c.bf16 %v2091_v6, %v2091_v6  ;;  %v2118_v21 = vsel %vm731_vm11, %v2091_v6, 0.0  ;;  %v2137_v62 = vmul.f32 %v2091_v6, %v2091_v6  ;;  %v2092_v32 = vadd.f32 %v2559_v14, %v2383_v46 }
 0x171   : > { %2109 = vst.msk [vmem:[%s3264_s15 + $0x18] sm:$0xf] %vm297_vm1, %v2101_v20  ;;  %v2119_v37 = vadd.f32 %v2118_v21, %v2117_v53  ;;  %v2102_v28 = vpack.c.bf16 %v2094_v52, %v2094_v52  ;;  %v2140_v58 = vmul.f32 %v2094_v52, %v2094_v52  ;;  %v2152_v30 = vsel %vm731_vm11, %v2139_v31, 0.0 }
 0x172   : > { %2107 = vst.msk [vmem:[%s3264_s15 + $0x10] sm:$0xf] %vm297_vm1, %v2099_v11  ;;  %v2148_v26 = vsel %vm731_vm11, %v2137_v62, 0.0  ;;  %v2100_v34 = vpack.c.bf16 %v2092_v32, %v2092_v32  ;;  %v2120_v0 = vsel %vm731_vm11, %v2092_v32, 0.0  ;;  %v2138_v22 = vmul.f32 %v2092_v32, %v2092_v32 }
 0x173   : > { %v2149_v10 = vadd.f32 %v2148_v26, %v2147_v57  ;;  %2110 = vst.msk [vmem:[%s3264_s15 + $0x1c] sm:$0xf] %vm297_vm1, %v2102_v28  ;;  %v2121_v19 = vadd.f32 %v2120_v0, %v2119_v37  ;;  %v2124_v27 = vsel %vm731_vm11, %v2094_v52, 0.0  ;;  %v2154_v41 = vsel %vm731_vm11, %v2140_v58, 0.0 }
 0x174   : > { %2108 = vst.msk [vmem:[%s3264_s15 + $0x14] sm:$0xf] %vm297_vm1, %v2100_v34  ;;  %v2150_v46 = vsel %vm731_vm11, %v2138_v22, 0.0 }
 0x175   : > { %v2123_v33 = vadd.f32 %v2122_v36, %v2121_v19  ;;  %v2151_v7 = vadd.f32 %v2150_v46, %v2149_v10 }
 0x177   : > { %v2125_v38 = vadd.f32 %v2124_v27, %v2123_v33  ;;  %v2153_v8 = vadd.f32 %v2152_v30, %v2151_v7 }
 0x179   : > { %v2126_v44 = vrot.slane %v2125_v38, 4  ;;  %v2155_v23 = vadd.f32 %v2154_v41, %v2153_v8 }
 0x17b   : > { %v2127_v40 = vadd.f32 %v2126_v44, %v2125_v38  ;;  %v2156_v24 = vrot.slane %v2155_v23, 4 }
 0x17d   : > { %v2128_v49 = vrot.slane %v2127_v40, 2  ;;  %v2157_v51 = vadd.f32 %v2156_v24, %v2155_v23 }
 0x17f   : > { %v2129_v45 = vadd.f32 %v2128_v49, %v2127_v40  ;;  %v2158_v54 = vrot.slane %v2157_v51, 2 }
 0x181   : > { %v2130_v15 = vrot.slane %v2129_v45, 1  ;;  %v2159_v56 = vadd.f32 %v2158_v54, %v2157_v51 }
 0x183   : > { %v2131_v61 = vadd.f32 %v2130_v15, %v2129_v45  ;;  %v2160_v60 = vrot.slane %v2159_v56, 1 }
 0x185   : > { %2132 = vst.msk [vmem:[%s292_s17] sm:$0x1] %vm299_vm2, %v2131_v61  ;;  %v2161_v35 = vadd.f32 %v2160_v60, %v2159_v56 }
 0x187   : > { %2162 = vst.msk [vmem:[%s295_s20] sm:$0x1] %vm299_vm2, %v2161_v35 }
 0x188 PF: > { %s18_s24 = sadd.s32 1, %s2653_s24  }
 0x189   : > { %p15_p4 = scmp.ge.s32.totalorder %s18_s24, 4  }
 0x18b   :  { %17 = sbr.rel (!%p15_p4) target bundleno = 1 (0x1), region = 97 }

// kernel: down_forward.2
= control target key start
LH: loop header
LB: loop body
LE: loop exit
PB: predicated region body
PF: predicated region fallthrough
CT: control target
= control target key end

     0   :  { %s3478_s24 = smov 0   ;;  %s4178_s0 = inlined_call_operand.vmem [shape: bf16[2,9,9,16], index: 0, kind: input, shape index: {}]   ;;  %s4179_s1 = inlined_call_operand.vmem [shape: bf16[64,8], index: 1, kind: input, shape index: {}]   ;;  %s4180_s2 = inlined_call_operand.vmem [shape: f32[1,8], index: 2, kind: input, shape index: {}]   ;;  %s4181_s3 = inlined_call_operand.vmem [shape: bf16[72,8], index: 3, kind: input, shape index: {}]   ;;  %s4182_s4 = inlined_call_operand.vmem [shape: f32[1,8], index: 4, kind: input, shape index: {}]   ;;  %s4183_s5 = inlined_call_operand.vmem [shape: bf16[2,8,8,8], index: 5, kind: output, shape index: {0}]   ;;  %s4184_s6 = inlined_call_operand.vmem [shape: f32[2,1,8], index: 6, kind: output, shape index: {1}]   ;;  %s4185_s7 = inlined_call_operand.vmem [shape: f32[2,1,8], index: 7, kind: output, shape index: {2}]  }
   0x1 LB: > { %s2915_s25 = sadd.s32 4294967295, %s3435_s24   ;;  %p2919_p0 = scmp.ge.s32.totalorder %s3435_s24, 1  ;;  %s3435_s24 = sphi %s3478_s24, %s18_s24  }
   0x2   : > { %p242_p1 = scmp.lt.s32.totalorder %s3435_s24, 3 }
   0x4   : > { %p243_p2 = pnand %p2919_p0, %p242_p1 }
   0x5   : > { %v3405_v0 = vld [vmem:[%s4179_s1 + $0x8] sm:$0xff] (!%p243_p2)   ;;  %p280_p3 = scmp.lt.s32.totalorder (!%p243_p2), %s2915_s25, 1  ;;  %v3492_v1 = vld [vmem:[%s4179_s1] sm:$0xff] (!%p243_p2)   ;;  %vm297_vm0 = vcmask (!%p243_p2), 60416   ;;  %v3437_v2 = vmov (!%p243_p2), 0   ;;  %vm299_vm1 = vcmask (!%p243_p2), 57344  }
   0x6   : > { %246 = sbr.rel (%p243_p2) target bundleno = 675 (0x2a3), region = 40  ;;  %3165 = vmatprep.subr.bf16.mxu0 (!%p243_p2), %v3405_v0  ;;  %298 = vst.msk [vmem:[#allocation2] sm:$0xf] (!%p243_p2), %vm297_vm0, %v3437_v2  ;;  %302 = vst.msk [vmem:[#allocation2 + $0x48] sm:$0xf] (!%p243_p2), %vm297_vm0, %v3437_v2  ;;  %vm522_vm4 = vcmask (!%p243_p2), 130048  }
   0x7   : > { %3166 = vmatpush3.bf16.msra.mxu0 (!%p243_p2), %v3405_v0  ;;  %vm387_vm2 = vsmask.f32 (!%p243_p2), 3328  ;;  %vm388_vm3 = vsmask.f32 (!%p243_p2), 7440  ;;  %300 = vst.msk [vmem:[#allocation2 + $0x4] sm:$0x1] (!%p243_p2), %vm299_vm1, %v3437_v2 }
   0x8   : > { %3175 = vmatprep.subr.bf16.mxu0 (!%p243_p2), %v3492_v1  ;;  %303 = vst.msk [vmem:[#allocation2 + $0x4c] sm:$0x1] (!%p243_p2), %vm299_vm1, %v3437_v2  ;;  %vm305_vm5 = vsmask.f32 (!%p243_p2), 256  ;;  %vm3536_vm6 = vmor (!%p243_p2), %vm387_vm2, %vm388_vm3  ;;  %vm337_vm8 = vsmask.f32 (!%p243_p2), 7938 }
   0x9   : > { %vm3576_vm7 = vmand (!%p243_p2), %vm299_vm1, %vm305_vm5  ;;  %vm1391_vm10 = vcmask (!%p243_p2), 1043456   ;;  %vm1584_vm12 = vcmask (!%p243_p2), 1042432   ;;  %vm1585_vm13 = vcmask (!%p243_p2), 1046532   ;;  %vm1378_vm14 = vcmask (!%p243_p2), 64512  }
   0xa   : > { %vm3610_vm9 = vmand (!%p243_p2), %vm299_vm1, %vm337_vm8 }
   0xb   : > { %vm3755_vm11 = vmand (!%p243_p2), %vm297_vm0, %vm337_vm8 }
   0xc   : > { %vm3846_vm15 = vmor (!%p243_p2), %vm1584_vm12, %vm1585_vm13 }
   0xd   : > { %s4197_s25 = smov (!%p280_p3, %s2915_s25), 1 }
   0xe   : > { %s3395_s30 = smul.u32 72, %s4197_s25  ;;  %s3091_s16 = sshll.u32 %s4197_s25, 5 }
   0xf   : > { %s4131_s19 = scalar_lea.vmem %s4183_s5, %s3091_s16  ;;  %s292_s22 = scalar_lea.vmem %s4184_s6, %s4197_s25 }
  0x10   : > { %s3503_s10 = scalar_lea.vmem %s4178_s0, %s3395_s30  ;;  %s295_s27 = scalar_lea.vmem %s4185_s7, %s4197_s25 }
  0x11   : > { %v3508_v3 = vld [vmem:[%s3503_s10] sm:$0xf]  ;;  %v3511_v4 = vld [vmem:[%s3503_s10 + $0x8] sm:$0xf]  ;;  %v379_v5 = vld [vmem:[%s3503_s10 + $0x4] sm:$0x1] }
  0x12   : > { %v380_v6 = vld [vmem:[%s3503_s10 + $0xc] sm:$0x1]  ;;  %v391_v7 = vshrl.u32 %v3508_v3, 16  ;;  %v394_v8 = vshll.u32 %v3508_v3, 16  ;;  %v400_v9 = vshll.u32 %v379_v5, 16  ;;  %v405_v10 = vshrl.u32 %v3511_v4, 16 }
  0x13   : > { %v408_v11 = vshll.u32 %v3511_v4, 16  ;;  %v414_v12 = vshll.u32 %v380_v6, 16  ;;  %v3520_v13 = vld [vmem:[%s3503_s10 + $0x10] sm:$0xf]  ;;  %v3523_v14 = vld [vmem:[%s3503_s10 + $0x18] sm:$0xf] }
  0x14   : > { %v393_v15 = vrot.slane %v391_v7, 4  ;;  %v396_v16 = vrot.slane %v394_v8, 5  ;;  %v402_v17 = vrot.slane %v400_v9, 5  ;;  %v407_v18 = vrot.slane %v405_v10, 4  ;;  %v381_v19 = vld [vmem:[%s3503_s10 + $0x14] sm:$0x1] }
  0x15   : > { %v410_v20 = vrot.slane %v408_v11, 5  ;;  %v416_v21 = vrot.slane %v414_v12, 5  ;;  %v382_v22 = vld [vmem:[%s3503_s10 + $0x1c] sm:$0x1]  ;;  %v419_v23 = vshrl.u32 %v3520_v13, 16  ;;  %v422_v24 = vshll.u32 %v3520_v13, 16 }
  0x16   : > { %v397_v25 = vor.u32 %v396_v16, %v393_v15  ;;  %v428_v26 = vshll.u32 %v381_v19, 16  ;;  %v433_v27 = vshrl.u32 %v3523_v14, 16  ;;  %v436_v28 = vshll.u32 %v3523_v14, 16  ;;  %v3532_v29 = vld [vmem:[%s3503_s10 + $0x20] sm:$0xf]  ;;  %v3408_v12 = vld [vmem:[%s4179_s1 + $0x10] sm:$0xff]  }
  0x17   : > { %v411_v31 = vor.u32 %v410_v20, %v407_v18  ;;  %v421_v32 = vrot.slane %v419_v23, 4  ;;  %v424_v33 = vrot.slane %v422_v24, 5  ;;  %v442_v34 = vshll.u32 %v382_v22, 16  ;;  %v3541_v35 = vld [vmem:[%s3503_s10 + $0x28] sm:$0xf] }
  0x18   : > { %v398_v36 = vrot.slane %v397_v25, 4  ;;  %v430_v37 = vrot.slane %v428_v26, 5  ;;  %v435_v38 = vrot.slane %v433_v27, 4  ;;  %v438_v39 = vrot.slane %v436_v28, 5  ;;  %v383_v40 = vld [vmem:[%s3503_s10 + $0x24] sm:$0x1] }
  0x19   : > { %v412_v41 = vrot.slane %v411_v31, 4  ;;  %v425_v42 = vor.u32 %v424_v33, %v421_v32  ;;  %v444_v43 = vrot.slane %v442_v34, 5  ;;  %v447_v44 = vshrl.u32 %v3532_v29, 16  ;;  %v384_v47 = vld [vmem:[%s3503_s10 + $0x2c] sm:$0x1] }
  0x1a   : > { %v403_v45 = vsel %vm3536_vm6, %v398_v36, %v402_v17  ;;  %v439_v46 = vor.u32 %v438_v39, %v435_v38  ;;  %v450_v48 = vshll.u32 %v3532_v29, 16  ;;  %v456_v49 = vshll.u32 %v383_v40, 16  ;;  %v3553_v54 = vld [vmem:[%s3503_s10 + $0x30] sm:$0xf]  ;;  %v3556_v58 = vld [vmem:[%s3503_s10 + $0x38] sm:$0xf] }
  0x1b   : > { %v417_v50 = vsel %vm3536_vm6, %v412_v41, %v416_v21  ;;  %v426_v51 = vrot.slane %v425_v42, 4  ;;  %v449_v52 = vrot.slane %v447_v44, 4  ;;  %v461_v53 = vshrl.u32 %v3541_v35, 16  ;;  %v385_v59 = vld [vmem:[%s3503_s10 + $0x34] sm:$0x1] }
  0x1c   : > { %v2923_v55 = vcombine.low %v403_v45, %v417_v50  ;;  %v440_v56 = vrot.slane %v439_v46, 4  ;;  %v452_v57 = vrot.slane %v450_v48, 5  ;;  %v464_v62 = vshll.u32 %v3541_v35, 16  ;;  %v386_v5 = vld [vmem:[%s3503_s10 + $0x3c] sm:$0x1] }
  0x1d   : > { %v431_v60 = vsel %vm3536_vm6, %v426_v51, %v430_v37  ;;  %v463_v61 = vrot.slane %v461_v53, 4  ;;  %v470_v63 = vshll.u32 %v384_v47, 16  ;;  %v475_v6 = vshrl.u32 %v3553_v54, 16  ;;  %v316_v24 = vld [vmem:[#allocation2 + $0x18] sm:$0x1] }
  0x1e   : > { %3167 = vmatprep.mubr.msk.bf16.mxu0 %vm522_vm4, %v2923_v55  ;;  %v445_v0 = vsel %vm3536_vm6, %v440_v56, %v444_v43  ;;  %v453_v2 = vor.u32 %v452_v57, %v449_v52  ;;  %v478_v7 = vshll.u32 %v3553_v54, 16  ;;  %v458_v9 = vrot.slane %v456_v49, 5  ;;  %v2958_v45 = vld [vmem:[%s3503_s10 + $0x8] sm:$0xf]  ;;  %v2960_v47 = vld [vmem:[%s3503_s10 + $0x10] sm:$0xf] }
  0x1f   : > { %v2924_v8 = vcombine.low %v431_v60, %v445_v0  ;;  %v466_v10 = vrot.slane %v464_v62, 5  ;;  %v484_v11 = vshll.u32 %v385_v59, 16  ;;  %v477_v16 = vrot.slane %v475_v6, 4  ;;  %v3605_v48 = vld [vmem:[%s4179_s1 + $0x18] sm:$0xff]   ;;  %v2961_v55 = vld [vmem:[%s3503_s10 + $0x14] sm:$0x1] }
  0x20   : > { %v454_v15 = vrot.slane %v453_v2, 4  ;;  %v480_v17 = vrot.slane %v478_v7, 5  ;;  %v489_v18 = vshrl.u32 %v3556_v58, 16  ;;  %v472_v20 = vrot.slane %v470_v63, 5  ;;  %v2962_v59 = vld [vmem:[%s3503_s10 + $0x18] sm:$0xf] }
  0x21   : > { %3168 = vmatmul.mubr.msk.bf16.vlgmr.msra.gmra.mrb[0].mxu0 %vm522_vm4, %v2924_v8  ;;  %v467_v19 = vor.u32 %v466_v10, %v463_v61  ;;  %v492_v21 = vshll.u32 %v3556_v58, 16  ;;  %v498_v22 = vshll.u32 %v386_v5, 16  ;;  %v486_v31 = vrot.slane %v484_v11, 5  ;;  %v3412_v60 = vld [vmem:[%s3503_s10 + $0x8] ss:$8 sps:$4 sm:$0xff]  }
  0x22   : > { %3176 = vmatpush3.bf16.msra.mxu0 %v3492_v1  ;;  %v481_v25 = vor.u32 %v480_v17, %v477_v16  ;;  %v491_v26 = vrot.slane %v489_v18, 4  ;;  %v459_v27 = vsel %vm3536_vm6, %v454_v15, %v458_v9  ;;  %v317_v34 = vsel %vm3576_vm7, 0, %v316_v24  ;;  %v2964_v61 = vld [vmem:[%s3503_s10 + $0x20] sm:$0xf]  ;;  %v2966_v5 = vld [vmem:[%s3503_s10 + $0x28] sm:$0xf] }
  0x23   : > { %v468_v28 = vrot.slane %v467_v19, 4  ;;  %v494_v32 = vrot.slane %v492_v21, 5  ;;  %3185 = vmatprep.subr.bf16.mxu0 %v3408_v12  ;;  %v500_v1 = vrot.slane %v498_v22, 5  ;;  %318 = vst [vmem:[#allocation2 + $0x18] sm:$0x1] %v317_v34  ;;  %v2932_v42 = vcombine.low %v3508_v3, %v3511_v4 }
  0x24   : > { %v482_v33 = vrot.slane %v481_v25, 4  ;;  %v2933_v44 = vcombine.low %v3520_v13, %v3523_v14  ;;  %v2934_v46 = vcombine.low %v3532_v29, %v3541_v35  ;;  %v842_v3 = vshrl.u32 %v2958_v45, 16  ;;  %v348_v29 = vld [vmem:[#allocation2 + $0x1c] sm:$0x1]  ;;  %v2959_v35 = vld [vmem:[%s3503_s10 + $0xc] sm:$0x1] }
  0x25   : > { %v473_v36 = vsel %vm3536_vm6, %v468_v28, %v472_v20  ;;  %v495_v37 = vor.u32 %v494_v32, %v491_v26  ;;  %v845_v4 = vshll.u32 %v2958_v45, 16  ;;  %v856_v49 = vshrl.u32 %v2960_v47, 16  ;;  %v2968_v6 = vld [vmem:[%s3503_s10 + $0x30] sm:$0xf]  ;;  %v3414_v9 = vld [vmem:[%s3503_s10 + $0x18] ss:$8 sps:$4 sm:$0xff]  }
  0x26   : > { %v2925_v38 = vcombine.low %v459_v27, %v473_v36  ;;  %v487_v39 = vsel %vm3536_vm6, %v482_v33, %v486_v31  ;;  %v859_v13 = vshll.u32 %v2960_v47, 16  ;;  %v844_v50 = vrot.slane %v842_v3, 4  ;;  %v2963_v19 = vld [vmem:[%s3503_s10 + $0x1c] sm:$0x1]  ;;  %v2965_v22 = vld [vmem:[%s3503_s10 + $0x24] sm:$0x1] }
  0x27   : > { %v496_v40 = vrot.slane %v495_v37, 4  ;;  %v847_v51 = vrot.slane %v845_v4, 5  ;;  %v349_v52 = vsel %vm3610_vm9, 0, %v348_v29  ;;  %v2935_v53 = vcombine.low %v3553_v54, %v3556_v58  ;;  %v3415_v27 = vld [vmem:[%s3503_s10 + $0x28] ss:$8 sps:$4 sm:$0xff]  }
  0x28   : > { %3171 = vmatprep.mubr.msk.bf16.mxu0 %vm522_vm4, %v2925_v38  ;;  %v858_v56 = vrot.slane %v856_v49, 4  ;;  %v861_v57 = vrot.slane %v859_v13, 5  ;;  %350 = vst [vmem:[#allocation2 + $0x1c] sm:$0x1] %v349_v52  ;;  %v851_v62 = vshll.u32 %v2959_v35, 16  ;;  %v865_v0 = vshll.u32 %v2961_v55, 16 }
  0x29   : > { %v501_v41 = vsel %vm3536_vm6, %v496_v40, %v500_v1  ;;  %v848_v63 = vor.u32 %v847_v51, %v844_v50  ;;  %v870_v2 = vshrl.u32 %v2962_v59, 16  ;;  %v873_v54 = vshll.u32 %v2962_v59, 16  ;;  %v2970_v28 = vld [vmem:[%s3503_s10 + $0x38] sm:$0xf]  ;;  %v2972_v36 = vld [vmem:[%s3503_s10 + $0x40] sm:$0xf] }
  0x2a   : > { %v2926_v43 = vcombine.low %v487_v39, %v501_v41  ;;  %v862_v7 = vor.u32 %v861_v57, %v858_v56  ;;  %v884_v58 = vshrl.u32 %v2964_v61, 16  ;;  %v887_v8 = vshll.u32 %v2964_v61, 16  ;;  %v2967_v38 = vld [vmem:[%s3503_s10 + $0x2c] sm:$0x1]  ;;  %v2969_v39 = vld [vmem:[%s3503_s10 + $0x34] sm:$0x1] }
  0x2b   : > { %v898_v10 = vshrl.u32 %v2966_v5, 16  ;;  %v901_v11 = vshll.u32 %v2966_v5, 16  ;;  %v915_v15 = vshll.u32 %v2968_v6, 16  ;;  %v849_v16 = vrot.slane %v848_v63, 4  ;;  %v3416_v35 = vld [vmem:[%s3503_s10 + $0x38] ss:$8 sps:$4 sm:$0xff]  }
  0x2c   : > { %3172 = vmatmul.mubr.msk.bf16.gmra.mrb[4].mxu0 %vm522_vm4, %v2926_v43  ;;  %v853_v17 = vrot.slane %v851_v62, 5  ;;  %v867_v18 = vrot.slane %v865_v0, 5  ;;  %v872_v20 = vrot.slane %v870_v2, 4  ;;  %v863_v21 = vrot.slane %v862_v7, 4  ;;  %v2971_v55 = vld [vmem:[%s3503_s10 + $0x3c] sm:$0x1] }
  0x2d   : > { %3177 = vmatprep.mubr.msk.bf16.mxu0 %vm522_vm4, %v2932_v42  ;;  %v875_v24 = vrot.slane %v873_v54, 5  ;;  %v886_v25 = vrot.slane %v884_v58, 4  ;;  %v889_v26 = vrot.slane %v887_v8, 5  ;;  %v900_v31 = vrot.slane %v898_v10, 4  ;;  %v2973_v0 = vld [vmem:[%s3503_s10 + $0x44] sm:$0x1] }
  0x2e   : > { %v903_v32 = vrot.slane %v901_v11, 5  ;;  %v917_v34 = vrot.slane %v915_v15, 5  ;;  %v879_v37 = vshll.u32 %v2963_v19, 16  ;;  %v893_v1 = vshll.u32 %v2965_v22, 16  ;;  %v342_v22 = vld [vmem:[#allocation2 + $0xc] sm:$0x1] }
  0x2f   : > { %v854_v40 = vsel %vm3536_vm6, %v849_v16, %v853_v17  ;;  %v868_v41 = vsel %vm3536_vm6, %v863_v21, %v867_v18  ;;  %v876_v42 = vor.u32 %v875_v24, %v872_v20  ;;  %v890_v43 = vor.u32 %v889_v26, %v886_v25  ;;  %v310_v21 = vld [vmem:[#allocation2 + $0x8] sm:$0x1]  ;;  %v319_v26 = vld [vmem:[#allocation2 + $0x20] sm:$0x1] }
  0x30   : > { %v929_v45 = vshll.u32 %v2970_v28, 16  ;;  %v943_v47 = vshll.u32 %v2972_v36, 16  ;;  %v904_v3 = vor.u32 %v903_v32, %v900_v31  ;;  %v907_v4 = vshll.u32 %v2967_v38, 16  ;;  %v313_v32 = vld [vmem:[#allocation2 + $0x10] sm:$0x1] }
  0x31   : > { %v921_v13 = vshll.u32 %v2969_v39, 16  ;;  %v881_v29 = vrot.slane %v879_v37, 5  ;;  %v2974_v50 = vcombine.low %v854_v40, %v868_v41  ;;  %v877_v51 = vrot.slane %v876_v42, 4  ;;  %v328_v37 = vld [vmem:[#allocation2 + $0x38] sm:$0x1] }
  0x32   : > { %v891_v52 = vrot.slane %v890_v43, 4  ;;  %v931_v56 = vrot.slane %v929_v45, 5  ;;  %v945_v59 = vrot.slane %v943_v47, 5  ;;  %v909_v61 = vrot.slane %v907_v4, 5  ;;  %v360_v38 = vld [vmem:[#allocation2 + $0x3c] sm:$0x1] }
  0x33   : > { %v923_v63 = vrot.slane %v921_v13, 5  ;;  %v882_v2 = vsel %vm3536_vm6, %v877_v51, %v881_v29  ;;  %v935_v5 = vshll.u32 %v2971_v55, 16  ;;  %v949_v58 = vshll.u32 %v2973_v0, 16  ;;  %v322_v40 = vld [vmem:[#allocation2 + $0x28] sm:$0x1] }
  0x34   : > { %3178 = vmatmul.mubr.msk.bf16.vlgmr.msra.gmra.mrb[0].mxu0 %vm522_vm4, %v2933_v44  ;;  %v926_v44 = vshrl.u32 %v2970_v28, 16  ;;  %v311_v24 = vsel %vm3576_vm7, 0, %v310_v21  ;;  %v343_v25 = vsel %vm3610_vm9, 0, %v342_v22  ;;  %v320_v28 = vsel %vm3576_vm7, 0, %v319_v26  ;;  %v354_v42 = vld [vmem:[#allocation2 + $0x2c] sm:$0x1] }
  0x35   : > { %3186 = vmatpush3.bf16.msra.mxu0 %v3408_v12  ;;  %3181 = vmatprep.mubr.msk.bf16.mxu0 %vm522_vm4, %v2934_v46  ;;  %v912_v12 = vshrl.u32 %v2968_v6, 16  ;;  %v940_v46 = vshrl.u32 %v2972_v36, 16  ;;  %v937_v11 = vrot.slane %v935_v5, 5  ;;  %v951_v17 = vrot.slane %v949_v58, 5  ;;  %312 = vst [vmem:[#allocation2 + $0x8] sm:$0x1] %v311_v24 }
  0x36   : > { %3195 = vmatprep.subr.bf16.mxu0 %v3605_v48  ;;  %344 = vst [vmem:[#allocation2 + $0xc] sm:$0x1] %v343_v25  ;;  %321 = vst [vmem:[#allocation2 + $0x20] sm:$0x1] %v320_v28  ;;  %v361_v39 = vsel %vm3610_vm9, 0, %v360_v38  ;;  %v323_v41 = vsel %vm3576_vm7, 0, %v322_v40 }
  0x37   : > { %v914_v33 = vrot.slane %v912_v12, 4  ;;  %v942_v57 = vrot.slane %v940_v46, 4  ;;  %362 = vst [vmem:[#allocation2 + $0x3c] sm:$0x1] %v361_v39  ;;  %324 = vst [vmem:[#allocation2 + $0x28] sm:$0x1] %v323_v41 }
  0x38   : > { %v331_v43 = vld [vmem:[#allocation2 + $0x40] sm:$0x1]  ;;  %v355_v45 = vsel %vm3610_vm9, 0, %v354_v42  ;;  %v3704_v55 = vld [vmem:[%s4181_s3 + $0x8] sm:$0xf] }
  0x39   : > { %v918_v49 = vor.u32 %v917_v34, %v914_v33  ;;  %v946_v54 = vor.u32 %v945_v59, %v942_v57  ;;  %v345_v33 = vld [vmem:[#allocation2 + $0x14] sm:$0x1]  ;;  %v314_v34 = vsel %vm3576_vm7, 0, %v313_v32  ;;  %v332_v46 = vsel %vm3576_vm7, 0, %v331_v43  ;;  %356 = vst [vmem:[#allocation2 + $0x2c] sm:$0x1] %v355_v45  ;;  %3388 = vmatprep.subr.msk.bf16.mxu1 %vm1391_vm10, %v3704_v55 }
  0x3a   : > { %v346_v36 = vsel %vm3610_vm9, 0, %v345_v33  ;;  %315 = vst [vmem:[#allocation2 + $0x10] sm:$0x1] %v314_v34  ;;  %333 = vst [vmem:[#allocation2 + $0x40] sm:$0x1] %v332_v46 }
  0x3b   : > { %v919_v62 = vrot.slane %v918_v49, 4  ;;  %v947_v16 = vrot.slane %v946_v54, 4  ;;  %347 = vst [vmem:[#allocation2 + $0x14] sm:$0x1] %v346_v36  ;;  %v357_v49 = vld [vmem:[#allocation2 + $0x34] sm:$0x1] }
  0x3c   : > { %3182 = vmatmul.mubr.msk.bf16.gmra.mrb[4].mxu0 %vm522_vm4, %v2935_v53  ;;  %v895_v53 = vrot.slane %v893_v1, 5  ;;  %v329_v1 = vsel %vm3576_vm7, 0, %v328_v37  ;;  %v307_v13 = vld [vmem:[#allocation2] sm:$0x1]  ;;  %v358_v29 = vsel %vm3610_vm9, 0, %v357_v49 }
  0x3d   : > { %3187 = vmatprep.mubr.msk.bf16.mxu0 %vm522_vm4, %v3412_v60  ;;  %v905_v60 = vrot.slane %v904_v3, 4  ;;  %v952_v19 = vsel %vm3536_vm6, %v947_v16, %v951_v17  ;;  %330 = vst [vmem:[#allocation2 + $0x38] sm:$0x1] %v329_v1  ;;  %v325_v3 = vld [vmem:[#allocation2 + $0x30] sm:$0x1] }
  0x3e   : > { %v896_v6 = vsel %vm3536_vm6, %v891_v52, %v895_v53  ;;  %v326_v4 = vsel %vm3576_vm7, 0, %v325_v3  ;;  %359 = vst [vmem:[#allocation2 + $0x34] sm:$0x1] %v358_v29  ;;  %v1365_v52 = vld [vmem:[%s4181_s3 + $0x4] sm:$0xf] }
  0x3f   : > { %v910_v8 = vsel %vm3536_vm6, %v905_v60, %v909_v61  ;;  %v2975_v10 = vcombine.low %v882_v2, %v896_v6  ;;  %327 = vst [vmem:[#allocation2 + $0x30] sm:$0x1] %v326_v4  ;;  %v1393_v53 = vsel %vm1391_vm10, %v1365_v52, 0  ;;  %v3723_v57 = vld [vmem:[%s4181_s3] sm:$0xf] }
  0x40   : > { %v334_v59 = vld [vmem:[#allocation2 + $0x48] sm:$0x1]  ;;  %v366_v61 = vld [vmem:[#allocation2 + $0x4c] sm:$0x1]  ;;  %v3736_v0 = vld [vmem:[%s4180_s2] ss:$0 sm:$0xff] }
  0x41   : > { %v335_v60 = vsel %vm3576_vm7, 0, %v334_v59  ;;  %v1203_v21 = vld [vmem:[#allocation2 + $0x1c] sm:$0x1]  ;;  %v1188_v32 = vld [vmem:[#allocation2 + $0x8] sm:$0xf] }
  0x42   : > { %336 = vst [vmem:[#allocation2 + $0x48] sm:$0x1] %v335_v60  ;;  %v1191_v33 = vld [vmem:[#allocation2 + $0xc] sm:$0x1]  ;;  %v1197_v59 = vld [vmem:[#allocation2 + $0x14] sm:$0x1] }
  0x44   : > { %3188 = vmatmul.mubr.msk.bf16.vlgmr.msra.gmra.mrb[0].mxu0 %vm522_vm4, %v3414_v9  ;;  %v924_v9 = vsel %vm3536_vm6, %v919_v62, %v923_v63  ;;  %v367_v62 = vsel %vm3610_vm9, 0, %v366_v61 }
  0x45   : > { %3196 = vmatpush3.bf16.msra.mxu0 %v3605_v48  ;;  %3191 = vmatprep.mubr.msk.bf16.mxu0 %vm522_vm4, %v3415_v27  ;;  %v928_v48 = vrot.slane %v926_v44, 4  ;;  %v2976_v12 = vcombine.low %v910_v8, %v924_v9  ;;  %v351_v27 = vld [vmem:[#allocation2 + $0x24] sm:$0x1]  ;;  %368 = vst [vmem:[#allocation2 + $0x4c] sm:$0x1] %v367_v62 }
  0x46   : > { %v352_v31 = vsel %vm3610_vm9, 0, %v351_v27  ;;  %v363_v44 = vld [vmem:[#allocation2 + $0x44] sm:$0x1]  ;;  %3385 = vmatprep.subr.msk.bf16.mxu0 %vm1391_vm10, %v1365_v52 }
  0x47   : > { %v932_v7 = vor.u32 %v931_v56, %v928_v48  ;;  %353 = vst [vmem:[#allocation2 + $0x24] sm:$0x1] %v352_v31  ;;  %v364_v47 = vsel %vm3610_vm9, 0, %v363_v44  ;;  %v3710_v48 = vsel %vm1391_vm10, %v3704_v55, 0  ;;  %v3716_v56 = vld [vmem:[%s4181_s3 + $0xc] sm:$0xf] }
  0x48   : > { %365 = vst [vmem:[#allocation2 + $0x44] sm:$0x1] %v364_v47  ;;  %3296 = vmatpush3.bf16.msra.mxu1 %v3710_v48  ;;  %v1206_v44 = vld [vmem:[#allocation2 + $0x20] sm:$0xf] }
  0x49   : > { %v933_v15 = vrot.slane %v932_v7, 4  ;;  %3389 = vmatprep.subr.msk.bf16.mxu1 %vm1391_vm10, %v3716_v56 }
  0x4b   : > { %v938_v18 = vsel %vm3536_vm6, %v933_v15, %v937_v11 }
  0x4c   : > { %3192 = vmatmul.mubr.msk.bf16.gmra.mrb[4].mxu0 %vm522_vm4, %v3416_v35  ;;  %v2977_v20 = vcombine.low %v938_v18, %v952_v19  ;;  %v308_v35 = vsel %vm3576_vm7, 0, %v307_v13 }
  0x4d   : > { %3197 = vmatprep.mubr.msk.bf16.mxu0 %vm522_vm4, %v2974_v50  ;;  %v339_v50 = vld [vmem:[#allocation2 + $0x4] sm:$0x1]  ;;  %309 = vst [vmem:[#allocation2] sm:$0x1] %v308_v35 }
  0x4e   : > { %v340_v51 = vsel %vm3610_vm9, 0, %v339_v50  ;;  %v1209_v4 = vld [vmem:[#allocation2 + $0x24] sm:$0x1] }
  0x4f   : > { %341 = vst [vmem:[#allocation2 + $0x4] sm:$0x1] %v340_v51 }
  0x54   : > { %3198 = vmatmul.mubr.msk.bf16.vlgmr.msra.gmra.mrb[0].mxu0 %vm522_vm4, %v2975_v10  ;;  %v3731_v63 = vld [vmem:[#allocation2] sm:$0xf] }
  0x55   : > { %3201 = vmatprep.mubr.msk.bf16.mxu0 %vm522_vm4, %v2976_v12  ;;  %3206 = vmatpush3.bf16.msra.mxu0 %v1393_v53  ;;  %v1254_v2 = vshrl.u32 %v3731_v63, 16  ;;  %v1257_v5 = vshll.u32 %v3731_v63, 16  ;;  %v1194_v53 = vld [vmem:[#allocation2 + $0x10] sm:$0xf] }
  0x56   : > { %3386 = vmatprep.subr.msk.bf16.mxu0 %vm1391_vm10, %v3723_v57  ;;  %v3748_v19 = vld [vmem:[#allocation2 + $0x4] sm:$0x1] }
  0x57   : > { %v3742_v8 = vrot.slane %v1254_v2, 4  ;;  %v3744_v9 = vrot.slane %v1257_v5, 5  ;;  %v1263_v26 = vshll.u32 %v3748_v19, 16 }
  0x59   : > { %v1260_v25 = vor.u32 %v3744_v9, %v3742_v8 }
  0x5c   : > { %3202 = vmatmul.mubr.msk.bf16.gmra.mrb[4].mxu0 %vm522_vm4, %v2977_v20  ;;  %v1200_v20 = vld [vmem:[#allocation2 + $0x18] sm:$0xf] }
 0x127   : > { %v3199_v6 = vpop.f32.mrb[0].mxu0 }
 0x128   : > { %v1067_v7 = vadd.f32 %v3199_v6, %v3736_v0  ;;  %v1019_v54 = vpop.f32.mrb[1].mxu0 }
 0x129   : > { %v1065_v58 = vadd.f32 %v3736_v0, %v1019_v54  ;;  %v3200_v14 = vpop.f32.mrb[2].mxu0 }
 0x12a   : > { %v3094_v10 = vpack.c.bf16 %v1067_v7, %v1067_v7  ;;  %v1068_v11 = vadd.f32 %v3200_v14, %v3736_v0  ;;  %v1022_v12 = vpop.f32.mrb[3].mxu0 }
 0x12b   : > { %v3092_v15 = vpack.c.bf16 %v1065_v58, %v1065_v58  ;;  %v1066_v16 = vadd.f32 %v3736_v0, %v1022_v12 }
 0x12c   : > { %v1122_v17 = vshrl.u32 %v3094_v10, 16  ;;  %v3095_v18 = vpack.c.bf16 %v1068_v11, %v1068_v11  ;;  %v1125_v28 = vshll.u32 %v3094_v10, 16 }
 0x12d   : > { %v1106_v22 = vshrl.u32 %v3092_v15, 16  ;;  %v3093_v24 = vpack.c.bf16 %v1066_v16, %v1066_v16  ;;  %v1109_v31 = vshll.u32 %v3092_v15, 16  ;;  %v1224_v15 = vld [vmem:[#allocation2 + $0x38] sm:$0xf]  ;;  %v1227_v16 = vld [vmem:[#allocation2 + $0x3c] sm:$0x1] }
 0x12e   : > { %v1124_v27 = vrot.slane %v1122_v17, 7  ;;  %v1130_v34 = vshrl.u32 %v3095_v18, 16  ;;  %v1133_v1 = vshll.u32 %v3095_v18, 16 }
 0x12f   : > { %v1108_v37 = vrot.slane %v1106_v22, 7  ;;  %v1114_v38 = vshrl.u32 %v3093_v24, 16  ;;  %v1117_v39 = vshll.u32 %v3093_v24, 16  ;;  %v3203_v40 = vpop.f32.mrb[4].mxu0 }
 0x130   : > { %v1127_v41 = vor.u32 %v1125_v28, %v1124_v27  ;;  %v1128_v42 = vrot.slane %v1124_v27, 4  ;;  %v1132_v43 = vrot.slane %v1130_v34, 7  ;;  %v1071_v45 = vadd.f32 %v3203_v40, %v3736_v0  ;;  %v1035_v46 = vpop.f32.mrb[5].mxu0 }
 0x131   : > { %v1111_v47 = vor.u32 %v1109_v31, %v1108_v37  ;;  %v1112_v3 = vrot.slane %v1108_v37, 4  ;;  %v1116_v49 = vrot.slane %v1114_v38, 7  ;;  %v1069_v13 = vadd.f32 %v3736_v0, %v1035_v46  ;;  %v3204_v29 = vpop.f32.mrb[6].mxu0  ;;  %v1212_v31 = vld [vmem:[#allocation2 + $0x28] sm:$0xf] }
 0x132   : > { %v1201_v35 = vsel %vm3755_vm11, %v1127_v41, %v1200_v20  ;;  %v1204_v50 = vsel %vm3576_vm7, %v1128_v42, %v1203_v21  ;;  %v1135_v51 = vor.u32 %v1133_v1, %v1132_v43  ;;  %v1136_v52 = vrot.slane %v1132_v43, 4  ;;  %v1038_v60 = vpop.f32.mrb[7].mxu0  ;;  %v1230_v41 = vld [vmem:[#allocation2 + $0x40] sm:$0xf]  ;;  %v1233_v42 = vld [vmem:[#allocation2 + $0x44] sm:$0x1] }
 0x133   : > { %1202 = vst [vmem:[#allocation2 + $0x18] sm:$0xf] %v1201_v35  ;;  %1205 = vst [vmem:[#allocation2 + $0x1c] sm:$0x1] %v1204_v50  ;;  %v1189_v61 = vsel %vm3755_vm11, %v1111_v47, %v1188_v32  ;;  %v1192_v62 = vsel %vm3576_vm7, %v1112_v3, %v1191_v33  ;;  %v1119_v2 = vor.u32 %v1117_v39, %v1116_v49  ;;  %v1120_v5 = vrot.slane %v1116_v49, 4 }
 0x134   : > { %1190 = vst [vmem:[#allocation2 + $0x8] sm:$0xf] %v1189_v61  ;;  %1193 = vst [vmem:[#allocation2 + $0xc] sm:$0x1] %v1192_v62  ;;  %v1207_v6 = vsel %vm3755_vm11, %v1135_v51, %v1206_v44  ;;  %v1210_v7 = vsel %vm3576_vm7, %v1136_v52, %v1209_v4  ;;  %v3098_v54 = vpack.c.bf16 %v1071_v45, %v1071_v45  ;;  %v3779_v20 = vrot.slane %v1260_v25, 4 }
 0x135   : > { %v3096_v58 = vpack.c.bf16 %v1069_v13, %v1069_v13  ;;  %1208 = vst [vmem:[#allocation2 + $0x20] sm:$0xf] %v1207_v6  ;;  %1211 = vst [vmem:[#allocation2 + $0x24] sm:$0x1] %v1210_v7  ;;  %v1195_v14 = vsel %vm3755_vm11, %v1119_v2, %v1194_v53  ;;  %v1198_v8 = vsel %vm3576_vm7, %v1120_v5, %v1197_v59  ;;  %v3781_v21 = vrot.slane %v1263_v26, 5 }
 0x136   : > { %v1072_v9 = vadd.f32 %v3204_v29, %v3736_v0  ;;  %v1070_v10 = vadd.f32 %v3736_v0, %v1038_v60  ;;  %1196 = vst [vmem:[#allocation2 + $0x10] sm:$0xf] %v1195_v14  ;;  %1199 = vst [vmem:[#allocation2 + $0x14] sm:$0x1] %v1198_v8  ;;  %v1154_v11 = vshrl.u32 %v3098_v54, 16  ;;  %v1157_v24 = vshll.u32 %v3098_v54, 16 }
 0x137   : > { %v1138_v12 = vshrl.u32 %v3096_v58, 16  ;;  %v1141_v28 = vshll.u32 %v3096_v58, 16  ;;  %v1215_v32 = vld [vmem:[#allocation2 + $0x2c] sm:$0x1]  ;;  %v1218_v25 = vld [vmem:[#allocation2 + $0x30] sm:$0xf]  ;;  %v1266_v46 = vsel %vm3536_vm6, %v3779_v20, %v3781_v21 }
 0x138   : > { %v3099_v17 = vpack.c.bf16 %v1072_v9, %v1072_v9  ;;  %v3097_v18 = vpack.c.bf16 %v1070_v10, %v1070_v10  ;;  %v1156_v22 = vrot.slane %v1154_v11, 7  ;;  %v1221_v13 = vld [vmem:[#allocation2 + $0x34] sm:$0x1]  ;;  %v3821_v11 = vsel %vm1391_vm10, %v3716_v56, 0 }
 0x139   : > { %v1140_v27 = vrot.slane %v1138_v12, 7 }
 0x13a   : > { %v1162_v33 = vshrl.u32 %v3099_v17, 16  ;;  %v1165_v0 = vshll.u32 %v3099_v17, 16  ;;  %v1146_v34 = vshrl.u32 %v3097_v18, 16  ;;  %v1149_v37 = vshll.u32 %v3097_v18, 16  ;;  %v3799_v29 = vld [vmem:[#allocation2 + $0x18] sm:$0xf] }
 0x13b   : > { %v1159_v1 = vor.u32 %v1157_v24, %v1156_v22  ;;  %v1160_v38 = vrot.slane %v1156_v22, 4  ;;  %v1143_v39 = vor.u32 %v1141_v28, %v1140_v27  ;;  %v1144_v40 = vrot.slane %v1140_v27, 4  ;;  %v3783_v44 = vld [vmem:[#allocation2 + $0x8] sm:$0xf]  ;;  %v3785_v45 = vld [vmem:[#allocation2 + $0xc] sm:$0x1] }
 0x13c   : > { %v1164_v43 = vrot.slane %v1162_v33, 7  ;;  %v1148_v26 = vrot.slane %v1146_v34, 7  ;;  %v1268_v60 = vshrl.u32 %v3783_v44, 16  ;;  %v1271_v61 = vshll.u32 %v3783_v44, 16  ;;  %v3817_v58 = vld [vmem:[#allocation2 + $0x1c] sm:$0x1] }
 0x13d   : > { %v1225_v47 = vsel %vm3755_vm11, %v1159_v1, %v1224_v15  ;;  %v1228_v3 = vsel %vm3576_vm7, %v1160_v38, %v1227_v16  ;;  %v1213_v4 = vsel %vm3755_vm11, %v1143_v39, %v1212_v31  ;;  %v1216_v49 = vsel %vm3576_vm7, %v1144_v40, %v1215_v32  ;;  %v3801_v53 = vld [vmem:[#allocation2 + $0x10] sm:$0xf]  ;;  %v3803_v59 = vld [vmem:[#allocation2 + $0x14] sm:$0x1]  ;;  %v1564_v14 = vld [vmem:[#allocation2 + $0x20] sm:$0xe] }
 0x13e   : > { %1226 = vst [vmem:[#allocation2 + $0x38] sm:$0xf] %v1225_v47  ;;  %1229 = vst [vmem:[#allocation2 + $0x3c] sm:$0x1] %v1228_v3  ;;  %v1167_v35 = vor.u32 %v1165_v0, %v1164_v43  ;;  %v1168_v50 = vrot.slane %v1164_v43, 4  ;;  %v1151_v51 = vor.u32 %v1149_v37, %v1148_v26  ;;  %v1152_v52 = vrot.slane %v1148_v26, 4 }
 0x13f   : > { %1214 = vst [vmem:[#allocation2 + $0x28] sm:$0xf] %v1213_v4  ;;  %1217 = vst [vmem:[#allocation2 + $0x2c] sm:$0x1] %v1216_v49  ;;  %v1277_v62 = vshll.u32 %v3785_v45, 16  ;;  %v1282_v2 = vshrl.u32 %v3801_v53, 16 }
 0x140   : > { %v1231_v5 = vsel %vm3755_vm11, %v1167_v35, %v1230_v41  ;;  %v1234_v6 = vsel %vm3576_vm7, %v1168_v50, %v1233_v42  ;;  %v1219_v7 = vsel %vm3755_vm11, %v1151_v51, %v1218_v25  ;;  %v1222_v54 = vsel %vm3576_vm7, %v1152_v52, %v1221_v13  ;;  %v3827_v16 = vld [vmem:[#allocation2 + $0x24] sm:$0x1]  ;;  %v3832_v32 = vld [vmem:[#allocation2 + $0x20] sm:$0xf] }
 0x141   : > { %1232 = vst [vmem:[#allocation2 + $0x40] sm:$0xf] %v1231_v5  ;;  %1235 = vst [vmem:[#allocation2 + $0x44] sm:$0x1] %v1234_v6  ;;  %v1270_v8 = vrot.slane %v1268_v60, 4  ;;  %v1273_v9 = vrot.slane %v1271_v61, 5 }
 0x142   : > { %1220 = vst [vmem:[#allocation2 + $0x30] sm:$0xf] %v1219_v7  ;;  %1223 = vst [vmem:[#allocation2 + $0x34] sm:$0x1] %v1222_v54  ;;  %v1284_v10 = vrot.slane %v1282_v2, 4  ;;  %v1285_v36 = vshll.u32 %v3801_v53, 16 }
 0x143   : > { %v1291_v12 = vshll.u32 %v3803_v59, 16  ;;  %v1296_v23 = vshrl.u32 %v3799_v29, 16  ;;  %v1299_v15 = vshll.u32 %v3799_v29, 16  ;;  %v1274_v17 = vor.u32 %v1273_v9, %v1270_v8 }
 0x144   : > { %v1279_v18 = vrot.slane %v1277_v62, 5  ;;  %v1305_v22 = vshll.u32 %v3817_v58, 16  ;;  %v1493_v24 = vsel %vm1391_vm10, %v3723_v57, 0  ;;  %v1287_v27 = vrot.slane %v1285_v36, 5 }
 0x145   : > { %v1298_v56 = vrot.slane %v1296_v23, 4  ;;  %v1301_v28 = vrot.slane %v1299_v15, 5  ;;  %v3012_v31 = vrot.slane %v1564_v14, 9  ;;  %v1275_v33 = vrot.slane %v1274_v17, 4  ;;  %v3839_v42 = vld [vmem:[#allocation2 + $0x3c] sm:$0x1] }
 0x146   : > { %v1293_v0 = vrot.slane %v1291_v12, 5  ;;  %v3834_v34 = vld [vmem:[#allocation2 + $0x2c] sm:$0x1]  ;;  %v1319_v37 = vshll.u32 %v3827_v16, 16  ;;  %v1605_v1 = vrot.slane %v3827_v16, 5  ;;  %v1288_v38 = vor.u32 %v1287_v27, %v1284_v10 }
 0x147   : > { %v1302_v39 = vor.u32 %v1301_v28, %v1298_v56  ;;  %v1307_v40 = vrot.slane %v1305_v22, 5  ;;  %v1565_v41 = vld [vmem:[#allocation2 + $0x28] sm:$0xe]  ;;  %v1609_v57 = vrot.slane %v3834_v34, 5  ;;  %v1280_v25 = vsel %vm3536_vm6, %v1275_v33, %v1279_v18  ;;  %v1567_v3 = vld [vmem:[#allocation2 + $0x38] sm:$0xe] }
 0x148   : > { %v1333_v43 = vshll.u32 %v3834_v34, 16  ;;  %v3013_v47 = vrot.slane %v1565_v41, 9  ;;  %v1617_v4 = vrot.slane %v3839_v42, 5  ;;  %v2992_v49 = vcombine.low %v1266_v46, %v1280_v25  ;;  %v3858_v52 = vld [vmem:[#allocation2 + $0x28] sm:$0xf] }
 0x149   : > { %v1289_v13 = vrot.slane %v1288_v38, 4  ;;  %v1303_v35 = vrot.slane %v1302_v39, 4  ;;  %v1606_v50 = vsel %vm3846_vm15, %v3012_v31, %v1605_v1  ;;  %v1251_v51 = vld [vmem:[#allocation2 + $0x34] sm:$0x1]  ;;  %v1566_v61 = vld [vmem:[#allocation2 + $0x30] sm:$0xe] }
 0x14a   : > { %v1610_v60 = vsel %vm3846_vm15, %v3013_v47, %v1609_v57  ;;  %v1613_v62 = vrot.slane %v1251_v51, 5  ;;  %v3015_v2 = vrot.slane %v1567_v3, 9  ;;  %v1310_v5 = vshrl.u32 %v3832_v32, 16  ;;  %3207 = vmatprep.mubr.msk.bf16.mxu0 %vm1378_vm14, %v2992_v49  ;;  %v3868_v7 = vld [vmem:[#allocation2 + $0x30] sm:$0xf] }
 0x14b   : > { %v1294_v20 = vsel %vm3536_vm6, %v1289_v13, %v1293_v0  ;;  %v1308_v21 = vsel %vm3536_vm6, %v1303_v35, %v1307_v40  ;;  %v3018_v46 = vcombine.low %v1606_v50, %v1610_v60  ;;  %v3014_v6 = vrot.slane %v1566_v61, 9  ;;  %v3870_v54 = vld [vmem:[#allocation2 + $0x38] sm:$0xf]  ;;  %v3872_v14 = vld [vmem:[#allocation2] sm:$0xe] }
 0x14c   : > { %v2993_v8 = vcombine.low %v1294_v20, %v1308_v21  ;;  %v1618_v9 = vsel %vm3846_vm15, %v3015_v2, %v1617_v4  ;;  %v1312_v10 = vrot.slane %v1310_v5, 4  ;;  %v1313_v36 = vshll.u32 %v3832_v32, 16  ;;  %v1965_v12 = vld [vmem:[%s4181_s3 + $0x10] sm:$0xf]  ;;  %v1837_v57 = vld [vmem:[#allocation2 + $0x8] sm:$0xf] }
 0x14d   : > { %3231 = vmatprep.mubr.msk.bf16.mxu1 %vm1378_vm14, %v3018_v46  ;;  %v1614_v23 = vsel %vm3846_vm15, %v3014_v6, %v1613_v62  ;;  %v3417_v15 = vld [vmem:[#allocation2 + $0x8] ss:$8 sps:$4 sm:$0xff]   ;;  %v1324_v17 = vshrl.u32 %v3858_v52, 16  ;;  %v1327_v18 = vshll.u32 %v3858_v52, 16  ;;  %v1338_v22 = vshrl.u32 %v3868_v7, 16 }
 0x14e   : > { %3208 = vmatmul.mubr.msk.bf16.vlgmr.msra.gmra.mrb[8].mxu0 %vm1378_vm14, %v2993_v8  ;;  %v3019_v27 = vcombine.low %v1614_v23, %v1618_v9  ;;  %v1315_v56 = vrot.slane %v1313_v36, 5  ;;  %v1341_v28 = vshll.u32 %v3868_v7, 16  ;;  %v1347_v31 = vshll.u32 %v1251_v51, 16  ;;  %v1839_v51 = vld [vmem:[#allocation2 + $0x10] sm:$0xf] }
 0x14f   : > { %v1326_v33 = vrot.slane %v1324_v17, 4  ;;  %v1329_v0 = vrot.slane %v1327_v18, 5  ;;  %v1340_v1 = vrot.slane %v1338_v22, 4  ;;  %v1352_v38 = vshrl.u32 %v3870_v54, 16  ;;  %3216 = vmatpush3.bf16.msra.mxu0 %v1493_v24  ;;  %v3907_v20 = vld [vmem:[#allocation2 + $0xc] sm:$0x1] }
 0x150   : > { %3232 = vmatmul.mubr.msk.bf16.vlgmr.msra.gmra.mrb[0].mxu1 %vm1378_vm14, %v3019_v27  ;;  %v1316_v39 = vor.u32 %v1315_v56, %v1312_v10  ;;  %v1343_v40 = vrot.slane %v1341_v28, 5  ;;  %v1355_v41 = vshll.u32 %v3870_v54, 16  ;;  %v3008_v25 = vrot.slane %v3872_v14, 9  ;;  %3387 = vmatprep.subr.msk.bf16.mxu0 %vm1391_vm10, %v3704_v55  ;;  %v3909_v21 = vld [vmem:[#allocation2 + $0x14] sm:$0x1] }
 0x151   : > { %3236 = vmatpush3.bf16.msra.mxu1 %v3821_v11  ;;  %3237 = vmatprep.mubr.msk.bf16.mxu1 %vm1378_vm14, %v3417_v15  ;;  %v1330_v47 = vor.u32 %v1329_v0, %v1326_v33  ;;  %v1354_v3 = vrot.slane %v1352_v38, 4  ;;  %v1361_v24 = vshll.u32 %v3839_v42, 16  ;;  %v1991_v4 = vsel %vm1391_vm10, %v1965_v12, 0  ;;  %v3419_v9 = vld [vmem:[#allocation2 + $0x18] ss:$8 sps:$4 sm:$0xff]  }
 0x152   : > { %v1321_v49 = vrot.slane %v1319_v37, 5  ;;  %v1317_v13 = vrot.slane %v1316_v39, 4  ;;  %v1344_v35 = vor.u32 %v1343_v40, %v1340_v1  ;;  %v1357_v50 = vrot.slane %v1355_v41, 5  ;;  %3390 = vmatprep.subr.msk.bf16.mxu1 %vm1391_vm10, %v1965_v12  ;;  %v2122_v36 = vld [vmem:[%s4181_s3 + $0x14] sm:$0xf] }
 0x153   : > { %v1335_v55 = vrot.slane %v1333_v43, 5  ;;  %v1331_v11 = vrot.slane %v1330_v47, 4  ;;  %v1349_v60 = vrot.slane %v1347_v31, 5  ;;  %v1854_v61 = vshrl.u32 %v1837_v57, 16  ;;  %v3420_v12 = vld [vmem:[#allocation2 + $0x28] ss:$8 sps:$4 sm:$0xff]  }
 0x154   : > { %v1345_v62 = vrot.slane %v1344_v35, 4  ;;  %v1358_v2 = vor.u32 %v1357_v50, %v1354_v3  ;;  %v1363_v42 = vrot.slane %v1361_v24, 5  ;;  %v1857_v5 = vshll.u32 %v1837_v57, 16  ;;  %v1841_v17 = vld [vmem:[#allocation2 + $0x18] sm:$0xf] }
 0x155   : > { %v1322_v16 = vsel %vm3536_vm6, %v1317_v13, %v1321_v49  ;;  %v1336_v37 = vsel %vm3536_vm6, %v1331_v11, %v1335_v55  ;;  %v1856_v46 = vrot.slane %v1854_v61, 4  ;;  %v1868_v34 = vshrl.u32 %v1839_v51, 16  ;;  %v1843_v28 = vld [vmem:[#allocation2 + $0x20] sm:$0xf]  ;;  %v3932_v40 = vld [vmem:[#allocation2 + $0x1c] sm:$0x1] }
 0x156   : > { %v2994_v43 = vcombine.low %v1322_v16, %v1336_v37  ;;  %v1350_v6 = vsel %vm3536_vm6, %v1345_v62, %v1349_v60  ;;  %v1359_v8 = vrot.slane %v1358_v2, 4  ;;  %v1859_v10 = vrot.slane %v1857_v5, 5  ;;  %v3934_v41 = vld [vmem:[#allocation2 + $0x24] sm:$0x1]  ;;  %v1845_v49 = vld [vmem:[#allocation2 + $0x28] sm:$0xf] }
 0x157   : > { %v1870_v23 = vrot.slane %v1868_v34, 4  ;;  %v1871_v15 = vshll.u32 %v1839_v51, 16  ;;  %v1863_v27 = vshll.u32 %v3907_v20, 16  ;;  %v1877_v56 = vshll.u32 %v3909_v21, 16  ;;  %v1847_v13 = vld [vmem:[#allocation2 + $0x30] sm:$0xf] }
 0x158   : > { %3211 = vmatprep.mubr.msk.bf16.mxu0 %vm1378_vm14, %v2994_v43  ;;  %v1364_v18 = vsel %vm3536_vm6, %v1359_v8, %v1363_v42  ;;  %3238 = vmatmul.mubr.msk.bf16.vlgmr.msra.gmra.mrb[4].mxu1 %vm1378_vm14, %v3419_v9  ;;  %v1860_v22 = vor.u32 %v1859_v10, %v1856_v46  ;;  %v1589_v0 = vrot.slane %v3748_v19, 5  ;;  %v3925_v1 = vsel %vm1391_vm10, %v2122_v36, 0  ;;  %v1561_v50 = vld [vmem:[#allocation2 + $0x8] sm:$0xe]  ;;  %v3423_v60 = vld [vmem:[#allocation2 + $0x38] ss:$8 sps:$4 sm:$0xff]  }
 0x159   : > { %v2995_v31 = vcombine.low %v1350_v6, %v1364_v18  ;;  %3246 = vmatpush3.bf16.msra.mxu1 %v1991_v4  ;;  %3241 = vmatprep.mubr.msk.bf16.mxu1 %vm1378_vm14, %v3420_v12  ;;  %v1873_v33 = vrot.slane %v1871_v15, 5  ;;  %v3000_v38 = vcombine.low %v3731_v63, %v3783_v44  ;;  %v3001_v39 = vcombine.low %v3801_v53, %v3799_v29  ;;  %v3946_v8 = vld [vmem:[#allocation2 + $0x2c] sm:$0x1] }
 0x15a   : > { %3391 = vmatprep.subr.msk.bf16.mxu1 %vm1391_vm10, %v2122_v36  ;;  %v1882_v57 = vshrl.u32 %v1841_v17, 16  ;;  %v1885_v47 = vshll.u32 %v1841_v17, 16  ;;  %v1861_v19 = vrot.slane %v1860_v22, 4  ;;  %v1896_v24 = vshrl.u32 %v1843_v28, 16 }
 0x15b   : > { %3212 = vmatmul.mubr.msk.bf16.gmra.mrb[12].mxu0 %vm1378_vm14, %v2995_v31  ;;  %v1874_v3 = vor.u32 %v1873_v33, %v1870_v23  ;;  %v1899_v4 = vshll.u32 %v1843_v28, 16  ;;  %v1865_v63 = vrot.slane %v1863_v27, 5  ;;  %v1879_v44 = vrot.slane %v1877_v56, 5  ;;  %v3948_v23 = vld [vmem:[#allocation2 + $0x34] sm:$0x1] }
 0x15c   : > { %3217 = vmatprep.mubr.msk.bf16.mxu0 %vm1378_vm14, %v3000_v38  ;;  %v1884_v29 = vrot.slane %v1882_v57, 4  ;;  %v1887_v53 = vrot.slane %v1885_v47, 5  ;;  %v1891_v51 = vshll.u32 %v3932_v40, 16  ;;  %v1898_v55 = vrot.slane %v1896_v24, 4  ;;  %v1849_v27 = vld [vmem:[#allocation2 + $0x38] sm:$0xf] }
 0x15d   : > { %v1875_v35 = vrot.slane %v1874_v3, 4  ;;  %v1901_v11 = vrot.slane %v1899_v4, 5  ;;  %v1905_v62 = vshll.u32 %v3934_v41, 16  ;;  %v1910_v2 = vshrl.u32 %v1845_v49, 16  ;;  %v1851_v33 = vld [vmem:[#allocation2 + $0x40] sm:$0xf] }
 0x15e   : > { %v1888_v61 = vor.u32 %v1887_v53, %v1884_v29  ;;  %v1913_v42 = vshll.u32 %v1845_v49, 16  ;;  %v1866_v5 = vsel %vm3536_vm6, %v1861_v19, %v1865_v63  ;;  %v1924_v46 = vshrl.u32 %v1847_v13, 16  ;;  %v1562_v57 = vld [vmem:[#allocation2 + $0x10] sm:$0xe]  ;;  %v3966_v47 = vld [vmem:[#allocation2 + $0x3c] sm:$0x1] }
 0x15f   : > { %v1880_v16 = vsel %vm3536_vm6, %v1875_v35, %v1879_v44  ;;  %v1902_v37 = vor.u32 %v1901_v11, %v1898_v55  ;;  %v3009_v43 = vrot.slane %v1561_v50, 9  ;;  %v1593_v6 = vrot.slane %v3785_v45, 5  ;;  %v3972_v3 = vld [vmem:[#allocation2 + $0x44] sm:$0x1]  ;;  %v3977_v24 = vld [vmem:[%s4181_s3 + $0x18] sm:$0xf] }
 0x160   : > { %3242 = vmatmul.mubr.msk.bf16.gmra.mrb[0].mxu1 %vm1378_vm14, %v3423_v60  ;;  %v3032_v34 = vcombine.low %v1866_v5, %v1880_v16  ;;  %v1912_v9 = vrot.slane %v1910_v2, 4  ;;  %v1889_v10 = vrot.slane %v1888_v61, 4  ;;  %v1907_v12 = vrot.slane %v1905_v62, 5  ;;  %v2067_v44 = vld [vmem:[#allocation2 + $0x10] sm:$0xe] }
 0x161   : > { %v1903_v36 = vrot.slane %v1902_v37, 4  ;;  %v1915_v15 = vrot.slane %v1913_v42, 5  ;;  %v3002_v17 = vcombine.low %v3832_v32, %v3858_v52  ;;  %v1926_v18 = vrot.slane %v1924_v46, 4  ;;  %v1563_v55 = vld [vmem:[#allocation2 + $0x18] sm:$0xe] }
 0x162   : > { %3247 = vmatprep.mubr.msk.bf16.mxu1 %vm1378_vm14, %v3032_v34  ;;  %v1927_v22 = vshll.u32 %v1847_v13, 16  ;;  %v1893_v45 = vrot.slane %v1891_v51, 5  ;;  %v1919_v31 = vshll.u32 %v3946_v8, 16  ;;  %v1590_v32 = vsel %vm3846_vm15, %v3008_v25, %v1589_v0  ;;  %v2066_v37 = vld [vmem:[#allocation2 + $0x8] sm:$0xe] }
 0x163   : > { %3218 = vmatmul.mubr.msk.bf16.vlgmr.msra.gmra.mrb[8].mxu0 %vm1378_vm14, %v3001_v39  ;;  %v1908_v56 = vsel %vm3536_vm6, %v1903_v36, %v1907_v12  ;;  %v1916_v28 = vor.u32 %v1915_v15, %v1912_v9  ;;  %v1594_v52 = vsel %vm3846_vm15, %v3009_v43, %v1593_v6  ;;  %v1933_v39 = vshll.u32 %v3948_v23, 16 }
 0x164   : > { %3221 = vmatprep.mubr.msk.bf16.mxu0 %vm1378_vm14, %v3002_v17  ;;  %v1929_v38 = vrot.slane %v1927_v22, 5  ;;  %3226 = vmatpush3.bf16.msra.mxu0 %v3710_v48  ;;  %v3003_v19 = vcombine.low %v3868_v7, %v3870_v54  ;;  %v1894_v14 = vsel %vm3536_vm6, %v1889_v10, %v1893_v45  ;;  %v1938_v25 = vshrl.u32 %v1849_v27, 16  ;;  %v2069_v22 = vld [vmem:[#allocation2 + $0x20] sm:$0xe] }
 0x165   : > { %v1941_v0 = vshll.u32 %v1849_v27, 16  ;;  %v3033_v4 = vcombine.low %v1894_v14, %v1908_v56  ;;  %v1917_v48 = vrot.slane %v1916_v28, 4  ;;  %v1952_v63 = vshrl.u32 %v1851_v33, 16 }
 0x166   : > { %v1930_v49 = vor.u32 %v1929_v38, %v1926_v18  ;;  %v3016_v29 = vcombine.low %v1590_v32, %v1594_v52  ;;  %v1921_v53 = vrot.slane %v1919_v31, 5  ;;  %v1940_v7 = vrot.slane %v1938_v25, 4 }
 0x167   : > { %v1943_v54 = vrot.slane %v1941_v0, 5  ;;  %v1935_v35 = vrot.slane %v1933_v39, 5  ;;  %v1954_v50 = vrot.slane %v1952_v63, 4  ;;  %v1955_v51 = vshll.u32 %v1851_v33, 16  ;;  %v2068_v33 = vld [vmem:[#allocation2 + $0x18] sm:$0xe] }
 0x168   : > { %3248 = vmatmul.mubr.msk.bf16.vlgmr.msra.gmra.mrb[4].mxu1 %vm1378_vm14, %v3033_v4  ;;  %v1931_v13 = vrot.slane %v1930_v49, 4  ;;  %v3010_v11 = vrot.slane %v1562_v57, 9  ;;  %v1597_v60 = vrot.slane %v3803_v59, 5  ;;  %v1947_v62 = vshll.u32 %v3966_v47, 16  ;;  %v2070_v39 = vld [vmem:[#allocation2 + $0x28] sm:$0xe] }
 0x169   : > { %3256 = vmatpush3.bf16.msra.mxu1 %v3925_v1  ;;  %v1944_v61 = vor.u32 %v1943_v54, %v1940_v7  ;;  %v1922_v2 = vsel %vm3536_vm6, %v1917_v48, %v1921_v53  ;;  %v1957_v5 = vrot.slane %v1955_v51, 5  ;;  %v1961_v16 = vshll.u32 %v3972_v3, 16  ;;  %v2073_v49 = vld [vmem:[#allocation2 + $0x40] sm:$0xe]  ;;  %v2469_v54 = vld [vmem:[%s4181_s3 + $0x1c] sm:$0xf] }
 0x16a   : > { %v1936_v42 = vsel %vm3536_vm6, %v1931_v13, %v1935_v35  ;;  %3392 = vmatprep.subr.msk.bf16.mxu1 %vm1391_vm10, %v3977_v24  ;;  %v3041_v59 = vrot.slane %v2067_v44, 9  ;;  %v2096_v46 = vrot.slane %v3909_v21, 5  ;;  %v3011_v34 = vrot.slane %v1563_v55, 9  ;;  %v2341_v35 = vld [vmem:[#allocation2 + $0x10] sm:$0xf] }
 0x16b   : > { %3222 = vmatmul.mubr.msk.bf16.gmra.mrb[12].mxu0 %vm1378_vm14, %v3003_v19  ;;  %v3034_v1 = vcombine.low %v1922_v2, %v1936_v42  ;;  %v1601_v43 = vrot.slane %v3817_v58, 5  ;;  %v1945_v6 = vrot.slane %v1944_v61, 4  ;;  %v1958_v9 = vor.u32 %v1957_v5, %v1954_v50  ;;  %v2343_v51 = vld [vmem:[#allocation2 + $0x18] sm:$0xf]  ;;  %v2347_v5 = vld [vmem:[#allocation2 + $0x28] sm:$0xf] }
 0x16c   : > { %3227 = vmatprep.mubr.msk.bf16.mxu0 %vm1378_vm14, %v3016_v29  ;;  %v3040_v10 = vrot.slane %v2066_v37, 9  ;;  %v2092_v36 = vrot.slane %v3907_v20, 5  ;;  %v1598_v12 = vsel %vm3846_vm15, %v3010_v11, %v1597_v60  ;;  %v1949_v15 = vrot.slane %v1947_v62, 5  ;;  %v2071_v20 = vld [vmem:[#allocation2 + $0x30] sm:$0xe] }
 0x16d   : > { %3251 = vmatprep.mubr.msk.bf16.mxu1 %vm1378_vm14, %v3034_v1  ;;  %v1959_v17 = vrot.slane %v1958_v9, 4  ;;  %v1963_v18 = vrot.slane %v1961_v16, 5  ;;  %v2097_v21 = vsel %vm3846_vm15, %v3041_v59, %v2096_v46  ;;  %v1602_v58 = vsel %vm3846_vm15, %v3011_v34, %v1601_v43  ;;  %v2072_v29 = vld [vmem:[#allocation2 + $0x38] sm:$0xe]  ;;  %v2349_v16 = vld [vmem:[#allocation2 + $0x30] sm:$0xf] }
 0x16e   : > { %v1950_v27 = vsel %vm3536_vm6, %v1945_v6, %v1949_v15  ;;  %v3017_v56 = vcombine.low %v1598_v12, %v1602_v58  ;;  %v2093_v31 = vsel %vm3846_vm15, %v3040_v10, %v2092_v36  ;;  %v3043_v52 = vrot.slane %v2069_v22, 9  ;;  %v3425_v2 = vld [vmem:[#allocation2 + $0x10] ss:$8 sps:$4 sm:$0xff]   ;;  %v2345_v59 = vld [vmem:[#allocation2 + $0x20] sm:$0xf] }
 0x16f   : > { %v1964_v45 = vsel %vm3536_vm6, %v1959_v17, %v1963_v18  ;;  %v3048_v32 = vcombine.low %v2093_v31, %v2097_v21  ;;  %v2104_v38 = vrot.slane %v3934_v41, 5  ;;  %v3045_v57 = vrot.slane %v2071_v20, 9  ;;  %v4039_v46 = vld [vmem:[#allocation2 + $0x14] sm:$0x1]  ;;  %v2351_v6 = vld [vmem:[#allocation2 + $0x38] sm:$0xf] }
 0x170   : > { %v3035_v28 = vcombine.low %v1950_v27, %v1964_v45  ;;  %v2112_v19 = vrot.slane %v3948_v23, 5  ;;  %v3042_v14 = vrot.slane %v2068_v33, 9  ;;  %v2100_v25 = vrot.slane %v3932_v40, 5  ;;  %v2355_v12 = vld [vmem:[#allocation2 + $0x48] sm:$0xf] }
 0x171   : > { %v3044_v0 = vrot.slane %v2070_v39, 9  ;;  %v2108_v4 = vrot.slane %v3946_v8, 5  ;;  %v2105_v48 = vsel %vm3846_vm15, %v3043_v52, %v2104_v38  ;;  %v2266_v23 = vsel %vm1391_vm10, %v3977_v24, 0  ;;  %v4042_v17 = vld [vmem:[#allocation2 + $0x1c] sm:$0x1] }
 0x172   : > { %3252 = vmatmul.mubr.msk.bf16.gmra.mrb[0].mxu1 %vm1378_vm14, %v3035_v28  ;;  %v2113_v41 = vsel %vm3846_vm15, %v3045_v57, %v2112_v19  ;;  %v2101_v63 = vsel %vm3846_vm15, %v3042_v14, %v2100_v25  ;;  %v3047_v8 = vrot.slane %v2073_v49, 9  ;;  %v2120_v7 = vrot.slane %v3972_v3, 5  ;;  %v3426_v22 = vld [vmem:[#allocation2 + $0x20] ss:$8 sps:$4 sm:$0xff]  }
 0x173   : > { %3228 = vmatmul.mubr.msk.bf16.vlgmr.msra.gmra.mrb[8].mxu0 %vm1378_vm14, %v3017_v56  ;;  %3257 = vmatprep.mubr.msk.bf16.mxu1 %vm1378_vm14, %v3048_v32  ;;  %v3049_v44 = vcombine.low %v2101_v63, %v2105_v48  ;;  %v2109_v40 = vsel %vm3846_vm15, %v3044_v0, %v2108_v4  ;;  %v3046_v13 = vrot.slane %v2072_v29, 9  ;;  %v2116_v24 = vrot.slane %v3966_v47, 5  ;;  %v3427_v56 = vld [vmem:[#allocation2 + $0x30] ss:$8 sps:$4 sm:$0xff]   ;;  %v4048_v28 = vld [vmem:[%s4181_s3 + $0x20] sm:$0xf] }
 0x174   : > { %v3050_v53 = vcombine.low %v2109_v40, %v2113_v41  ;;  %v2121_v50 = vsel %vm3846_vm15, %v3047_v8, %v2120_v7  ;;  %v2358_v3 = vshrl.u32 %v2341_v35, 16  ;;  %v2361_v55 = vshll.u32 %v2341_v35, 16  ;;  %v2353_v57 = vld [vmem:[#allocation2 + $0x40] sm:$0xf]  ;;  %v4055_v41 = vld [vmem:[#allocation2 + $0x2c] sm:$0x1] }
 0x175   : > { %v2117_v11 = vsel %vm3846_vm15, %v3046_v13, %v2116_v24  ;;  %v2372_v61 = vshrl.u32 %v2343_v51, 16  ;;  %v2375_v62 = vshll.u32 %v2343_v51, 16  ;;  %v2400_v34 = vshrl.u32 %v2347_v5, 16  ;;  %v4059_v40 = vld [vmem:[#allocation2 + $0x34] sm:$0x1] }
 0x176   : > { %v3051_v60 = vcombine.low %v2117_v11, %v2121_v50  ;;  %v2360_v42 = vrot.slane %v2358_v3, 4  ;;  %v2363_v47 = vrot.slane %v2361_v55, 5  ;;  %v2403_v43 = vshll.u32 %v2347_v5, 16  ;;  %v4064_v35 = vld [vmem:[#allocation2 + $0x3c] sm:$0x1] }
 0x177   : > { %v2374_v37 = vrot.slane %v2372_v61, 4  ;;  %v2377_v1 = vrot.slane %v2375_v62, 5  ;;  %v2414_v10 = vshrl.u32 %v2349_v16, 16  ;;  %v2417_v36 = vshll.u32 %v2349_v16, 16  ;;  %v3428_v3 = vld [vmem:[#allocation2 + $0x40] ss:$8 sps:$4 sm:$0xff]  }
 0x178   : > { %v2364_v9 = vor.u32 %v2363_v47, %v2360_v42  ;;  %v2495_v15 = vsel %vm1391_vm10, %v2469_v54, 0  ;;  %v2386_v18 = vshrl.u32 %v2345_v59, 16  ;;  %v2389_v21 = vshll.u32 %v2345_v59, 16 }
 0x179   : > { %v2367_v58 = vshll.u32 %v4039_v46, 16  ;;  %v2378_v27 = vor.u32 %v2377_v1, %v2374_v37  ;;  %v2428_v45 = vshrl.u32 %v2351_v6, 16  ;;  %v2431_v20 = vshll.u32 %v2351_v6, 16  ;;  %v4075_v6 = vld [vmem:[#allocation2 + $0x4c] sm:$0x1] }
 0x17a   : > { %3258 = vmatmul.mubr.msk.bf16.vlgmr.msra.gmra.mrb[4].mxu1 %vm1378_vm14, %v3049_v44  ;;  %v2402_v31 = vrot.slane %v2400_v34, 4  ;;  %v2405_v33 = vrot.slane %v2403_v43, 5  ;;  %v2365_v32 = vrot.slane %v2364_v9, 4  ;;  %v2381_v52 = vshll.u32 %v4042_v17, 16  ;;  %v4057_v44 = vld [vmem:[#allocation2 + $0x24] sm:$0x1] }
 0x17b   : > { %3266 = vmatpush3.bf16.msra.mxu1 %v2266_v23  ;;  %3261 = vmatprep.mubr.msk.bf16.mxu1 %vm1378_vm14, %v3050_v53  ;;  %v2416_v38 = vrot.slane %v2414_v10, 4  ;;  %v2419_v39 = vrot.slane %v2417_v36, 5  ;;  %v2388_v19 = vrot.slane %v2386_v18, 4  ;;  %v2391_v14 = vrot.slane %v2389_v21, 5  ;;  %v4073_v43 = vld [vmem:[#allocation2 + $0x44] sm:$0x1] }
 0x17c   : > { %3393 = vmatprep.subr.msk.bf16.mxu1 %vm1391_vm10, %v2469_v54  ;;  %v2456_v25 = vshrl.u32 %v2355_v12, 16  ;;  %v2459_v0 = vshll.u32 %v2355_v12, 16  ;;  %v2369_v4 = vrot.slane %v2367_v58, 5  ;;  %v2379_v48 = vrot.slane %v2378_v27, 4  ;;  %v2570_v27 = vld [vmem:[#allocation2 + $0x10] sm:$0xe] }
 0x17d   : > { %v2430_v49 = vrot.slane %v2428_v45, 4  ;;  %v2433_v63 = vrot.slane %v2431_v20, 5  ;;  %v2406_v23 = vor.u32 %v2405_v33, %v2402_v31  ;;  %v2442_v29 = vshrl.u32 %v2353_v57, 16 }
 0x17e   : > { %v2445_v53 = vshll.u32 %v2353_v57, 16  ;;  %v2370_v8 = vsel %vm3536_vm6, %v2365_v32, %v2369_v4  ;;  %v2383_v7 = vrot.slane %v2381_v52, 5  ;;  %v2420_v54 = vor.u32 %v2419_v39, %v2416_v38  ;;  %v2571_v38 = vld [vmem:[#allocation2 + $0x18] sm:$0xe] }
 0x17f   : > { %v2392_v13 = vor.u32 %v2391_v14, %v2388_v19  ;;  %v2409_v24 = vshll.u32 %v4055_v41, 16  ;;  %v2458_v50 = vrot.slane %v2456_v25, 4  ;;  %v2461_v51 = vrot.slane %v2459_v0, 5 }
 0x180   : > { %v2384_v55 = vsel %vm3536_vm6, %v2379_v48, %v2383_v7  ;;  %v2395_v11 = vshll.u32 %v4057_v44, 16  ;;  %v2434_v61 = vor.u32 %v2433_v63, %v2430_v49  ;;  %v2444_v42 = vrot.slane %v2442_v29, 4  ;;  %v2573_v48 = vld [vmem:[#allocation2 + $0x28] sm:$0xe]  ;;  %v2574_v49 = vld [vmem:[#allocation2 + $0x30] sm:$0xe] }
 0x181   : > { %v3064_v62 = vcombine.low %v2370_v8, %v2384_v55  ;;  %v2447_v47 = vrot.slane %v2445_v53, 5  ;;  %v2421_v5 = vrot.slane %v2420_v54, 4  ;;  %v2437_v16 = vshll.u32 %v4064_v35, 16  ;;  %v2575_v8 = vld [vmem:[#allocation2 + $0x38] sm:$0xe] }
 0x182   : > { %3262 = vmatmul.mubr.msk.bf16.gmra.mrb[0].mxu1 %vm1378_vm14, %v3051_v60  ;;  %v2423_v60 = vshll.u32 %v4059_v40, 16  ;;  %v2393_v37 = vrot.slane %v2392_v13, 4  ;;  %v2411_v1 = vrot.slane %v2409_v24, 5  ;;  %v2435_v34 = vrot.slane %v2434_v61, 4  ;;  %v2576_v55 = vld [vmem:[#allocation2 + $0x40] sm:$0xe] }
 0x183   : > { %3267 = vmatprep.mubr.msk.bf16.mxu1 %vm1378_vm14, %v3425_v2  ;;  %v2407_v2 = vrot.slane %v2406_v23, 4  ;;  %v2462_v9 = vor.u32 %v2461_v51, %v2458_v50  ;;  %v2397_v10 = vrot.slane %v2395_v11, 5  ;;  %v2448_v12 = vor.u32 %v2447_v47, %v2444_v42  ;;  %v2572_v23 = vld [vmem:[#allocation2 + $0x20] sm:$0xe] }
 0x184   : > { %v2425_v59 = vrot.slane %v2423_v60, 5  ;;  %v2439_v21 = vrot.slane %v2437_v16, 5  ;;  %v2451_v58 = vshll.u32 %v4073_v43, 16  ;;  %v2652_v20 = vsel %vm1391_vm10, %v4048_v28, 0 }
 0x185   : > { %v2412_v36 = vsel %vm3536_vm6, %v2407_v2, %v2411_v1  ;;  %v2449_v33 = vrot.slane %v2448_v12, 4  ;;  %v2463_v32 = vrot.slane %v2462_v9, 4  ;;  %v3072_v39 = vrot.slane %v2570_v27, 9 }
 0x186   : > { %v2426_v18 = vsel %vm3536_vm6, %v2421_v5, %v2425_v59  ;;  %v2596_v57 = vrot.slane %v4039_v46, 5  ;;  %v2453_v19 = vrot.slane %v2451_v58, 5  ;;  %v3073_v14 = vrot.slane %v2571_v38, 9 }
 0x187   : > { %v3075_v53 = vrot.slane %v2573_v48, 9  ;;  %v3076_v7 = vrot.slane %v2574_v49, 9  ;;  %v2612_v30 = vrot.slane %v4059_v40, 5  ;;  %v3074_v54 = vrot.slane %v2572_v23, 9 }
 0x188   : > { %v2454_v25 = vsel %vm3536_vm6, %v2449_v33, %v2453_v19  ;;  %v2597_v4 = vsel %vm3846_vm15, %v3072_v39, %v2596_v57  ;;  %v2604_v13 = vrot.slane %v4057_v44, 5  ;;  %v3077_v24 = vrot.slane %v2575_v8, 9 }
 0x189   : > { %v2616_v50 = vrot.slane %v4064_v35, 5  ;;  %v2620_v35 = vrot.slane %v4073_v43, 5  ;;  %v2624_v2 = vrot.slane %v4075_v6, 5 }
 0x18a   : > { %3268 = vmatmul.mubr.msk.bf16.vlgmr.msra.gmra.mrb[4].mxu1 %vm1378_vm14, %v3426_v22  ;;  %v2398_v22 = vsel %vm3536_vm6, %v2393_v37, %v2397_v10  ;;  %v2605_v11 = vsel %vm3846_vm15, %v3074_v54, %v2604_v13 }
 0x18b   : > { %3276 = vmatpush3.bf16.msra.mxu1 %v2495_v15  ;;  %3271 = vmatprep.mubr.msk.bf16.mxu1 %vm1378_vm14, %v3427_v56  ;;  %v2465_v15 = vshll.u32 %v4075_v6, 16  ;;  %v3065_v45 = vcombine.low %v2398_v22, %v2412_v36  ;;  %v2440_v56 = vsel %vm3536_vm6, %v2435_v34, %v2439_v21  ;;  %v2617_v60 = vsel %vm3846_vm15, %v3077_v24, %v2616_v50  ;;  %v3088_v36 = vld [vmem:[%s4182_s4] ss:$0 sm:$0xff] }
 0x18c   : > { %3394 = vmatprep.subr.msk.bf16.mxu1 %vm1391_vm10, %v4048_v28  ;;  %v3066_v31 = vcombine.low %v2426_v18, %v2440_v56  ;;  %v2600_v28 = vrot.slane %v4042_v17, 5  ;;  %v2608_v17 = vrot.slane %v4055_v41, 5  ;;  %v2613_v41 = vsel %vm3846_vm15, %v3076_v7, %v2612_v30 }
 0x18d   : > { %v2467_v52 = vrot.slane %v2465_v15, 5  ;;  %v3082_v44 = vcombine.low %v2613_v41, %v2617_v60 }
 0x18e   : > { %v2601_v46 = vsel %vm3846_vm15, %v3073_v14, %v2600_v28  ;;  %v2609_v51 = vsel %vm3846_vm15, %v3075_v53, %v2608_v17 }
 0x18f   : > { %v2468_v0 = vsel %vm3536_vm6, %v2463_v32, %v2467_v52  ;;  %v3080_v29 = vcombine.low %v2597_v4, %v2601_v46  ;;  %v3081_v40 = vcombine.low %v2605_v11, %v2609_v51 }
 0x190   : > { %v3067_v63 = vcombine.low %v2454_v25, %v2468_v0 }
 0x192   : > { %3272 = vmatmul.mubr.msk.bf16.gmra.mrb[0].mxu1 %vm1378_vm14, %v3428_v3  ;;  %v2577_v3 = vld [vmem:[#allocation2 + $0x48] sm:$0xe] }
 0x193   : > { %3277 = vmatprep.mubr.msk.bf16.mxu1 %vm1378_vm14, %v3064_v62  ;;  %v3079_v61 = vrot.slane %v2577_v3, 9  ;;  %v3078_v62 = vrot.slane %v2576_v55, 9 }
 0x195   : > { %v2621_v42 = vsel %vm3846_vm15, %v3078_v62, %v2620_v35  ;;  %v2625_v47 = vsel %vm3846_vm15, %v3079_v61, %v2624_v2 }
 0x196   : > { %v3083_v5 = vcombine.low %v2621_v42, %v2625_v47 }
 0x19a   : > { %3278 = vmatmul.mubr.msk.bf16.vlgmr.msra.gmra.mrb[4].mxu1 %vm1378_vm14, %v3065_v45 }
 0x19b   : > { %3286 = vmatpush3.bf16.msra.mxu1 %v2652_v20  ;;  %3281 = vmatprep.mubr.msk.bf16.mxu1 %vm1378_vm14, %v3066_v31 }
 0x1a2   : > { %3282 = vmatmul.mubr.msk.bf16.gmra.mrb[0].mxu1 %vm1378_vm14, %v3067_v63 }
 0x1a3   : > { %3287 = vmatprep.mubr.msk.bf16.mxu1 %vm1378_vm14, %v3080_v29 }
 0x1aa   : > { %3288 = vmatmul.mubr.msk.bf16.vlgmr.msra.gmra.mrb[4].mxu1 %vm1378_vm14, %v3081_v40 }
 0x1ab   : > { %3291 = vmatprep.mubr.msk.bf16.mxu1 %vm1378_vm14, %v3082_v44 }
 0x1b2   : > { %3292 = vmatmul.mubr.msk.bf16.gmra.mrb[0].mxu1 %vm1378_vm14, %v3083_v5 }
 0x23e   : > { %v3223_v16 = vpop.f32.mrb[12].mxu0 }
 0x23f   : > { %v1545_v37 = vpop.f32.mrb[13].mxu0 }
 0x240   : > { %v3224_v1 = vpop.f32.mrb[14].mxu0 }
 0x241   : > { %v1548_v59 = vpop.f32.mrb[15].mxu0 }
 0x246   : > { %v3229_v34 = vpop.f32.mrb[8].mxu0 }
 0x247   : > { %v1681_v43 = vpop.f32.mrb[9].mxu0 }
 0x248   : > { %v3230_v6 = vpop.f32.mrb[10].mxu0 }
 0x249   : > { %v1684_v9 = vpop.f32.mrb[11].mxu0 }
 0x27d   : > { %v3289_v10 = vpop.f32.mrb[4].mxu1 }
 0x27e   : > { %v3297_v12 = vadd.f32 %v3289_v10, %v3229_v34  ;;  %v2688_v26 = vpop.f32.mrb[5].mxu1 }
 0x27f   : > { %v3298_v15 = vadd.f32 %v2688_v26, %v1681_v43  ;;  %v3290_v18 = vpop.f32.mrb[6].mxu1 }
 0x280   : > { %v2736_v21 = vadd.f32 %v3297_v12, %v3088_v36  ;;  %v3299_v22 = vadd.f32 %v3290_v18, %v3230_v6  ;;  %v2691_v58 = vpop.f32.mrb[7].mxu1 }
 0x281   : > { %v2734_v27 = vadd.f32 %v3298_v15, %v3088_v36  ;;  %v3300_v45 = vadd.f32 %v2691_v58, %v1684_v9 }
 0x282   : > { %v2744_v20 = vpack.c.bf16 %v2736_v21, %v2736_v21  ;;  %v2737_v56 = vadd.f32 %v3299_v22, %v3088_v36  ;;  %v2782_v52 = vmul.f32 %v2736_v21, %v2736_v21  ;;  %v2761_v49 = vsel %vm1378_vm14, %v2736_v21, 0.0 }
 0x283   : > { %v2742_v31 = vpack.c.bf16 %v2734_v27, %v2734_v27  ;;  %v2780_v33 = vmul.f32 %v2734_v27, %v2734_v27  ;;  %v2735_v32 = vadd.f32 %v3300_v45, %v3088_v36  ;;  %v2758_v39 = vsel %vm1378_vm14, %v2734_v27, 0.0 }
 0x284   : > { %2752 = vst.msk [vmem:[%s4131_s19 + $0x8] sm:$0xf] %vm297_vm0, %v2744_v20  ;;  %v2745_v38 = vpack.c.bf16 %v2737_v56, %v2737_v56  ;;  %v2783_v25 = vmul.f32 %v2737_v56, %v2737_v56  ;;  %v2791_v54 = vsel %vm1378_vm14, %v2782_v52, 0.0  ;;  %v2763_v50 = vsel %vm1378_vm14, %v2737_v56, 0.0 }
 0x285   : > { %2750 = vst.msk [vmem:[%s4131_s19] sm:$0xf] %vm297_vm0, %v2742_v31  ;;  %v2743_v57 = vpack.c.bf16 %v2735_v32, %v2735_v32  ;;  %v2759_v19 = vsel %vm1378_vm14, %v2735_v32, 0.0  ;;  %v2781_v14 = vmul.f32 %v2735_v32, %v2735_v32  ;;  %v3293_v28 = vpop.f32.mrb[0].mxu1  ;;  %v2788_v63 = vsel %vm1378_vm14, %v2780_v33, 0.0 }
 0x286   : > { %2753 = vst.msk [vmem:[%s4131_s19 + $0xc] sm:$0xf] %vm297_vm0, %v2745_v38  ;;  %v2760_v0 = vadd.f32 %v2759_v19, %v2758_v39  ;;  %v3301_v4 = vadd.f32 %v3293_v28, %v3223_v16  ;;  %v2704_v48 = vpop.f32.mrb[1].mxu1  ;;  %v2793_v51 = vsel %vm1378_vm14, %v2783_v25, 0.0 }
 0x287   : > { %2751 = vst.msk [vmem:[%s4131_s19 + $0x4] sm:$0xf] %vm297_vm0, %v2743_v57  ;;  %v2789_v46 = vsel %vm1378_vm14, %v2781_v14, 0.0  ;;  %v3302_v23 = vadd.f32 %v2704_v48, %v1545_v37  ;;  %v3294_v29 = vpop.f32.mrb[2].mxu1 }
 0x288   : > { %v2762_v53 = vadd.f32 %v2761_v49, %v2760_v0  ;;  %v2790_v17 = vadd.f32 %v2789_v46, %v2788_v63  ;;  %v2740_v8 = vadd.f32 %v3301_v4, %v3088_v36  ;;  %v3303_v7 = vadd.f32 %v3294_v29, %v3224_v1  ;;  %v2707_v30 = vpop.f32.mrb[3].mxu1 }
 0x289   : > { %v2738_v13 = vadd.f32 %v3302_v23, %v3088_v36  ;;  %v3304_v24 = vadd.f32 %v2707_v30, %v1548_v59 }
 0x28a   : > { %v2792_v3 = vadd.f32 %v2791_v54, %v2790_v17  ;;  %v2748_v41 = vpack.c.bf16 %v2740_v8, %v2740_v8  ;;  %v2764_v11 = vadd.f32 %v2763_v50, %v2762_v53  ;;  %v2741_v44 = vadd.f32 %v3303_v7, %v3088_v36 }
 0x28b   : > { %v2746_v55 = vpack.c.bf16 %v2738_v13, %v2738_v13  ;;  %v2765_v40 = vsel %vm1378_vm14, %v2738_v13, 0.0  ;;  %v2784_v60 = vmul.f32 %v2738_v13, %v2738_v13  ;;  %v2739_v62 = vadd.f32 %v3304_v24, %v3088_v36 }
 0x28c   : > { %2756 = vst.msk [vmem:[%s4131_s19 + $0x18] sm:$0xf] %vm297_vm0, %v2748_v41  ;;  %v2794_v61 = vadd.f32 %v2793_v51, %v2792_v3  ;;  %v2766_v35 = vadd.f32 %v2765_v40, %v2764_v11  ;;  %v2749_v47 = vpack.c.bf16 %v2741_v44, %v2741_v44  ;;  %v2786_v5 = vmul.f32 %v2740_v8, %v2740_v8 }
 0x28d   : > { %2754 = vst.msk [vmem:[%s4131_s19 + $0x10] sm:$0xf] %vm297_vm0, %v2746_v55  ;;  %v2795_v2 = vsel %vm1378_vm14, %v2784_v60, 0.0  ;;  %v2747_v16 = vpack.c.bf16 %v2739_v62, %v2739_v62  ;;  %v2767_v37 = vsel %vm1378_vm14, %v2739_v62, 0.0  ;;  %v2785_v1 = vmul.f32 %v2739_v62, %v2739_v62 }
 0x28e   : > { %v2796_v42 = vadd.f32 %v2795_v2, %v2794_v61  ;;  %2757 = vst.msk [vmem:[%s4131_s19 + $0x1c] sm:$0xf] %vm297_vm0, %v2749_v47  ;;  %v2768_v59 = vadd.f32 %v2767_v37, %v2766_v35  ;;  %v2769_v34 = vsel %vm1378_vm14, %v2740_v8, 0.0  ;;  %v2787_v43 = vmul.f32 %v2741_v44, %v2741_v44 }
 0x28f   : > { %2755 = vst.msk [vmem:[%s4131_s19 + $0x14] sm:$0xf] %vm297_vm0, %v2747_v16  ;;  %v2797_v6 = vsel %vm1378_vm14, %v2785_v1, 0.0  ;;  %v2799_v36 = vsel %vm1378_vm14, %v2786_v5, 0.0  ;;  %v2771_v12 = vsel %vm1378_vm14, %v2741_v44, 0.0 }
 0x290   : > { %v2770_v9 = vadd.f32 %v2769_v34, %v2768_v59  ;;  %v2798_v10 = vadd.f32 %v2797_v6, %v2796_v42  ;;  %v2801_v18 = vsel %vm1378_vm14, %v2787_v43, 0.0 }
 0x292   : > { %v2772_v26 = vadd.f32 %v2771_v12, %v2770_v9  ;;  %v2800_v15 = vadd.f32 %v2799_v36, %v2798_v10 }
 0x294   : > { %v2773_v21 = vrot.slane %v2772_v26, 4  ;;  %v2802_v22 = vadd.f32 %v2801_v18, %v2800_v15 }
 0x296   : > { %v2774_v58 = vadd.f32 %v2773_v21, %v2772_v26  ;;  %v2803_v27 = vrot.slane %v2802_v22, 4 }
 0x298   : > { %v2775_v45 = vrot.slane %v2774_v58, 2  ;;  %v2804_v20 = vadd.f32 %v2803_v27, %v2802_v22 }
 0x29a   : > { %v2776_v56 = vadd.f32 %v2775_v45, %v2774_v58  ;;  %v2805_v31 = vrot.slane %v2804_v20, 2 }
 0x29c   : > { %v2777_v33 = vrot.slane %v2776_v56, 1  ;;  %v2806_v32 = vadd.f32 %v2805_v31, %v2804_v20 }
 0x29e   : > { %v2778_v52 = vadd.f32 %v2777_v33, %v2776_v56  ;;  %v2807_v38 = vrot.slane %v2806_v32, 1 }
 0x2a0   : > { %2779 = vst.msk [vmem:[%s292_s22] sm:$0x1] %vm299_vm1, %v2778_v52  ;;  %v2808_v39 = vadd.f32 %v2807_v38, %v2806_v32 }
 0x2a2   : > { %2809 = vst.msk [vmem:[%s295_s27] sm:$0x1] %vm299_vm1, %v2808_v39 }
 0x2a3 PF: > { %s18_s24 = sadd.s32 1, %s3435_s24  }
 0x2a4   : > { %p15_p4 = scmp.ge.s32.totalorder %s18_s24, 4  }
 0x2a6   :  { %17 = sbr.rel (!%p15_p4) target bundleno = 1 (0x1), region = 98 }

</bundles_post_ra>
